<compile_context>
chip_gen: v5e
topology: v5e:2x2
jax: 0.10.0
libtpu: 0.0.40
codegen_flags: <defaults>
</compile_context>

<pallas_src>
import functools

import jax
import jax.numpy as jnp
from jax import lax
from jax.experimental import pallas as pl
from jax.experimental.pallas import tpu as pltpu

EPS = 1e-5          # nn.BatchNorm2d default eps
LANE = 128          # TPU lane width


def _round_up(n, m):
    return (n + m - 1) // m * m


# ---------------------------------------------------------------------------
# stage 1: 1x1 conv + per-image BN partial stats (sum, sum of squares)
# ---------------------------------------------------------------------------
def conv1x1_stats_kernel(x_ref, w_ref, y_ref, st_ref):
    x = x_ref[0].astype(jnp.bfloat16)                       # (HW, Cin)
    y = jnp.dot(x, w_ref[...], preferred_element_type=jnp.float32)
    y_ref[0] = y
    s = jnp.sum(y, axis=0, keepdims=True)
    q = jnp.sum(y * y, axis=0, keepdims=True)
    st_ref[0] = jnp.concatenate([s, q], axis=0)


# ---------------------------------------------------------------------------
# stage 2: BN1+ReLU -> 3x3 conv via zero-padded halo scratch + im2col matmul
# ---------------------------------------------------------------------------
def conv3x3_stats_kernel(y1_ref, sb_ref, w2_ref, y2_ref, st_ref, pad_ref,
                         *, H, W):
    C = y1_ref.shape[-1]
    scale = sb_ref[0:1, :]
    bias = sb_ref[1:2, :]
    h = jnp.maximum(y1_ref[0] * scale + bias, 0.0)          # (HW, C) f32
    h3 = h.reshape(H, W, C)

    # zero-padded (H+2, W+2, C) halo buffer; stores only slice the outer dim.
    zrow = jnp.zeros((1, W + 2, C), jnp.float32)
    zcol = jnp.zeros((H, 1, C), jnp.float32)
    pad_ref[0:1, :, :] = zrow
    pad_ref[H + 1:H + 2, :, :] = zrow
    pad_ref[1:H + 1, :, :] = jnp.concatenate([zcol, h3, zcol], axis=1)

    # im2col: 9 static slices -> (HW, 9*C) slab -> single K=9*C MXU matmul.
    patches = [pad_ref[ky:ky + H, kx:kx + W, :]
               for ky in range(3) for kx in range(3)]
    slab = jnp.concatenate(patches, axis=-1).reshape(H * W, 9 * C)
    y2 = jnp.dot(slab.astype(jnp.bfloat16), w2_ref[...],
                 preferred_element_type=jnp.float32)
    y2_ref[0] = y2
    s = jnp.sum(y2, axis=0, keepdims=True)
    q = jnp.sum(y2 * y2, axis=0, keepdims=True)
    st_ref[0] = jnp.concatenate([s, q], axis=0)


# ---------------------------------------------------------------------------
# stage 3: BN2+ReLU -> 1x1 conv + per-image BN partial stats
# ---------------------------------------------------------------------------
def bn_relu_conv1x1_kernel(y2_ref, sb_ref, w_ref, y3_ref, st_ref):
    scale = sb_ref[0:1, :]
    bias = sb_ref[1:2, :]
    h = jnp.maximum(y2_ref[0] * scale + bias, 0.0).astype(jnp.bfloat16)
    y = jnp.dot(h, w_ref[...], preferred_element_type=jnp.float32)
    y3_ref[0] = y
    s = jnp.sum(y, axis=0, keepdims=True)
    q = jnp.sum(y * y, axis=0, keepdims=True)
    st_ref[0] = jnp.concatenate([s, q], axis=0)


# ---------------------------------------------------------------------------
# stage 4: BN3 + residual add + final ReLU
# ---------------------------------------------------------------------------
def bn_residual_relu_kernel(y3_ref, sb_ref, x_ref, o_ref):
    scale = sb_ref[0:1, :]
    bias = sb_ref[1:2, :]
    o_ref[0] = jnp.maximum(y3_ref[0] * scale + bias + x_ref[0], 0.0)


def bottleneck_forward(x_nchw, params):
    """x_nchw: (B, Cin, H, W) float32; params are torch-layout weights."""
    w1, w2, w3, g1, b1, g2, b2, g3, b3 = params
    B, Cin, H, W = x_nchw.shape
    Cw = w1.shape[0]          # torch OIHW: (Cw, Cin, 1, 1)
    Cout = w3.shape[0]        # (Cout, Cw, 1, 1)
    assert Cout == Cin, "residual add requires input == output*4 (no downsample)"
    HW = H * W
    Cin_p = _round_up(Cin, LANE)
    Cw_p = _round_up(Cw, LANE)
    Cout_p = _round_up(Cout, LANE)

    # NCHW -> (B, H*W, C) flat NHWC, zero-padded to the lane width.
    # TODO(synk): accept NHWC input directly to avoid this extra HBM transpose.
    x2d = jnp.transpose(x_nchw, (0, 2, 3, 1)).reshape(B, HW, Cin)
    x2d = jnp.pad(x2d, ((0, 0), (0, 0), (0, Cin_p - Cin))).astype(jnp.float32)

    # torch OIHW weights -> matmul layouts, zero-padded, bf16 (MXU native).
    w1_k = jnp.pad(jnp.transpose(w1[:, :, 0, 0], (1, 0)),
                   ((0, Cin_p - Cin), (0, Cw_p - Cw))).astype(jnp.bfloat16)
    w2_t = jnp.transpose(w2, (2, 3, 1, 0))                      # (kh, kw, I, O)
    w2_k = jnp.pad(w2_t, ((0, 0), (0, 0), (0, Cw_p - Cw), (0, Cw_p - Cw)))
    w2_k = w2_k.reshape(9 * Cw_p, Cw_p).astype(jnp.bfloat16)
    w3_k = jnp.pad(jnp.transpose(w3[:, :, 0, 0], (1, 0)),
                   ((0, Cw_p - Cw), (0, Cout_p - Cout))).astype(jnp.bfloat16)

    padc = lambda v, n: jnp.pad(v.astype(jnp.float32), (0, n - v.shape[0]))
    g1p, b1p = padc(g1, Cw_p), padc(b1, Cw_p)
    g2p, b2p = padc(g2, Cw_p), padc(b2, Cw_p)
    g3p, b3p = padc(g3, Cout_p), padc(b3, Cout_p)

    count = float(B * HW)

    def fold_bn(partial, g, b):
        # one-pass batch stats (sum / sum-of-squares) folded into scale/bias
        s = jnp.sum(partial[:, 0, :], axis=0)
        q = jnp.sum(partial[:, 1, :], axis=0)
        mu = s / count
        var = jnp.maximum(q / count - mu * mu, 0.0)
        scale = g * lax.rsqrt(var + EPS)
        bias = b - mu * scale
        return jnp.stack([scale, bias], axis=0)                 # (2, C)

    par = pltpu.CompilerParams(dimension_semantics=("parallel",))
    img = lambda c: pl.BlockSpec((1, HW, c), lambda b: (b, 0, 0))
    res = lambda shape: pl.BlockSpec(shape, lambda b: (0,) * len(shape))
    stat = lambda c: pl.BlockSpec((1, 2, c), lambda b: (b, 0, 0))

    # ---- stage 1: conv1 (1x1) ----
    y1, st1 = pl.pallas_call(
        conv1x1_stats_kernel,
        grid=(B,),
        in_specs=[img(Cin_p), res((Cin_p, Cw_p))],
        out_specs=(img(Cw_p), stat(Cw_p)),
        out_shape=(jax.ShapeDtypeStruct((B, HW, Cw_p), jnp.float32),
                   jax.ShapeDtypeStruct((B, 2, Cw_p), jnp.float32)),
        compiler_params=par,
    )(x2d, w1_k)
    sb1 = fold_bn(st1, g1p, b1p)

    # ---- stage 2: bn1 + relu + conv2 (3x3, stride 1, pad 1) ----
    y2, st2 = pl.pallas_call(
        functools.partial(conv3x3_stats_kernel, H=H, W=W),
        grid=(B,),
        in_specs=[img(Cw_p), res((2, Cw_p)), res((9 * Cw_p, Cw_p))],
        out_specs=(img(Cw_p), stat(Cw_p)),
        out_shape=(jax.ShapeDtypeStruct((B, HW, Cw_p), jnp.float32),
                   jax.ShapeDtypeStruct((B, 2, Cw_p), jnp.float32)),
        scratch_shapes=[pltpu.VMEM((H + 2, W + 2, Cw_p), jnp.float32)],
        compiler_params=par,
    )(y1, sb1, w2_k)
    sb2 = fold_bn(st2, g2p, b2p)

    # ---- stage 3: bn2 + relu + conv3 (1x1) ----
    y3, st3 = pl.pallas_call(
        bn_relu_conv1x1_kernel,
        grid=(B,),
        in_specs=[img(Cw_p), res((2, Cw_p)), res((Cw_p, Cout_p))],
        out_specs=(img(Cout_p), stat(Cout_p)),
        out_shape=(jax.ShapeDtypeStruct((B, HW, Cout_p), jnp.float32),
                   jax.ShapeDtypeStruct((B, 2, Cout_p), jnp.float32)),
        compiler_params=par,
    )(y2, sb2, w3_k)
    sb3 = fold_bn(st3, g3p, b3p)

    # ---- stage 4: bn3 + residual + relu ----
    out2d = pl.pallas_call(
        bn_residual_relu_kernel,
        grid=(B,),
        in_specs=[img(Cout_p), res((2, Cout_p)), img(Cin_p)],
        out_specs=img(Cout_p),
        out_shape=jax.ShapeDtypeStruct((B, HW, Cout_p), jnp.float32),
        compiler_params=par,
    )(y3, sb3, x2d)

    out = out2d[:, :, :Cout].reshape(B, H, W, Cout)
    return jnp.transpose(out, (0, 3, 1, 2)).astype(x_nchw.dtype)


def ref_forward(x, w1, w2, w3, g1, b1, g2, b2, g3, b3):
    """Pure-JAX reference mirroring the PyTorch forward (training-mode BN).

    Convolution inputs/weights are cast to bf16 with f32 accumulation to match
    the kernel's MXU dtype, so the comparison isolates implementation error.
    """
    def bn(y, g, b):
        mu = y.mean(axis=(0, 2, 3), keepdims=True)
        var = ((y - mu) ** 2).mean(axis=(0, 2, 3), keepdims=True)
        return ((y - mu) * lax.rsqrt(var + EPS) * g.reshape(1, -1, 1, 1)
                + b.reshape(1, -1, 1, 1))

    def conv(y, w, pad):
        return lax.conv_general_dilated(
            y.astype(jnp.bfloat16), w.astype(jnp.bfloat16), (1, 1), pad,
            dimension_numbers=("NCHW", "OIHW", "NCHW"),
            preferred_element_type=jnp.float32)

    h = jax.nn.relu(bn(conv(x, w1, "VALID"), g1, b1))
    h = jax.nn.relu(bn(conv(h, w2, ((1, 1), (1, 1))), g2, b2))
    h = bn(conv(h, w3, "VALID"), g3, b3)
    return jax.nn.relu(h + x)


if __name__ == "__main__":
    key = jax.random.PRNGKey(0)
    B, H, W = 2, 16, 16
    output = 4                               # BottleNeck(input=16, output=4)
    Cin = output * 4                         # 16 (so the residual add is valid)
    Cw = int(output * (64 / 64)) * 1         # actual_width = 4
    Cout = output * 4                        # 16

    ks = jax.random.split(key, 10)
    x = jax.random.normal(ks[0], (B, Cin, H, W), jnp.float32)
    w1 = jax.random.normal(ks[1], (Cw, Cin, 1, 1), jnp.float32) * 0.2
    w2 = jax.random.normal(ks[2], (Cw, Cw, 3, 3), jnp.float32) * 0.2
    w3 = jax.random.normal(ks[3], (Cout, Cw, 1, 1), jnp.float32) * 0.2
    g1 = 1.0 + 0.1 * jax.random.normal(ks[4], (Cw,), jnp.float32)
    b1 = 0.1 * jax.random.normal(ks[5], (Cw,), jnp.float32)
    g2 = 1.0 + 0.1 * jax.random.normal(ks[6], (Cw,), jnp.float32)
    b2 = 0.1 * jax.random.normal(ks[7], (Cw,), jnp.float32)
    g3 = 1.0 + 0.1 * jax.random.normal(ks[8], (Cout,), jnp.float32)
    b3 = 0.1 * jax.random.normal(ks[9], (Cout,), jnp.float32)
    params = (w1, w2, w3, g1, b1, g2, b2, g3, b3)

    forward = jax.jit(bottleneck_forward)
    out = jax.block_until_ready(forward(x, params))

    ref = ref_forward(x, *params)
    assert out.shape == ref.shape == (B, Cout, H, W)
    max_err = float(jnp.max(jnp.abs(out - ref)))
    if not (max_err < 2e-3):
        raise AssertionError(f"kernel/reference mismatch, max abs err = {max_err}")
    print("KERNEL_OK")
</pallas_src>

<mosaic_0001>
module attributes {stable_mosaic.version = 11 : i64} {
  func.func @conv1x1_stats_kernel(%arg0: i32, %arg1: memref<1x256x128xf32, #tpu.memory_space<vmem>>, %arg2: memref<128x128xbf16, #tpu.memory_space<vmem>>, %arg3: memref<1x256x128xf32, #tpu.memory_space<vmem>>, %arg4: memref<1x2x128xf32, #tpu.memory_space<vmem>>) attributes {dimension_semantics = [#tpu.dimension_semantics<parallel>], iteration_bounds = array<i64: 2>, scalar_prefetch = 0 : i64, scratch_operands = 0 : i64, tpu.core_type = #tpu.core_type<tc>, window_params = [{transform_indices = @transform_0, window_bounds = array<i64: 1, 256, 128>}, {pipeline_mode = #tpu.pipeline_mode<synchronous>, transform_indices = @transform_1, window_bounds = array<i64: 128, 128>}, {transform_indices = @transform_2, window_bounds = array<i64: 1, 256, 128>}, {transform_indices = @transform_3, window_bounds = array<i64: 1, 2, 128>}]} {
    %c0 = arith.constant 0 : index
    %c0_0 = arith.constant 0 : index
    %c0_1 = arith.constant 0 : index
    %0 = vector.load %arg1[%c0, %c0_0, %c0_1] : memref<1x256x128xf32, #tpu.memory_space<vmem>>, vector<1x256x128xf32>
    %1 = vector.shape_cast %0 : vector<1x256x128xf32> to vector<256x128xf32>
    %2 = arith.truncf %1 : vector<256x128xf32> to vector<256x128xbf16>
    %c0_2 = arith.constant 0 : index
    %c0_3 = arith.constant 0 : index
    %3 = vector.load %arg2[%c0_2, %c0_3] : memref<128x128xbf16, #tpu.memory_space<vmem>>, vector<128x128xbf16>
    %cst = arith.constant dense<0.000000e+00> : vector<256x128xf32>
    %4 = tpu.matmul %2, %3, %cst {dimension_numbers = #tpu.dot_dimension_numbers<[1], [0], [0], [1], [0, 0, 1, 1], [], []>} : vector<256x128xbf16>, vector<128x128xbf16>, vector<256x128xf32> -> vector<256x128xf32>
    %c0_4 = arith.constant 0 : index
    %c0_5 = arith.constant 0 : index
    %c0_6 = arith.constant 0 : index
    %5 = vector.load %arg3[%c0_4, %c0_5, %c0_6] : memref<1x256x128xf32, #tpu.memory_space<vmem>>, vector<1x256x128xf32>
    %6 = vector.shape_cast %5 : vector<1x256x128xf32> to vector<256x128xf32>
    %7 = vector.shape_cast %4 : vector<256x128xf32> to vector<1x256x128xf32>
    tpu.vector_store %arg3[%c0_4, %c0_5, %c0_6], %7 {strides = array<i32>} : memref<1x256x128xf32, #tpu.memory_space<vmem>>, vector<1x256x128xf32>,
    %cst_7 = arith.constant dense<0.000000e+00> : vector<128xf32>
    %8 = vector.multi_reduction <add>, %4, %cst_7 [0] : vector<256x128xf32> to vector<128xf32>
    %9 = vector.shape_cast %8 : vector<128xf32> to vector<1x128xf32>
    %10 = arith.mulf %4, %4 : vector<256x128xf32>
    %cst_8 = arith.constant dense<0.000000e+00> : vector<128xf32>
    %11 = vector.multi_reduction <add>, %10, %cst_8 [0] : vector<256x128xf32> to vector<128xf32>
    %12 = vector.shape_cast %11 : vector<128xf32> to vector<1x128xf32>
    %13 = tpu.concatenate %9, %12 in 0 : vector<1x128xf32>, vector<1x128xf32> -> vector<2x128xf32>
    %c0_9 = arith.constant 0 : index
    %c0_10 = arith.constant 0 : index
    %c0_11 = arith.constant 0 : index
    %14 = vector.load %arg4[%c0_9, %c0_10, %c0_11] : memref<1x2x128xf32, #tpu.memory_space<vmem>>, vector<1x2x128xf32>
    %15 = vector.shape_cast %14 : vector<1x2x128xf32> to vector<2x128xf32>
    %16 = vector.shape_cast %13 : vector<2x128xf32> to vector<1x2x128xf32>
    tpu.vector_store %arg4[%c0_9, %c0_10, %c0_11], %16 {strides = array<i32>} : memref<1x2x128xf32, #tpu.memory_space<vmem>>, vector<1x2x128xf32>,
    return
  }
  func.func @transform_0(%arg0: i32) -> (i32, i32, i32) {
    %c0_i32 = arith.constant 0 : i32
    %c0_i32_0 = arith.constant 0 : i32
    %c0_i32_1 = arith.constant 0 : i32
    return %arg0, %c0_i32, %c0_i32_0 : i32, i32, i32
  }
  func.func @transform_1(%arg0: i32) -> (i32, i32) {
    %c0_i32 = arith.constant 0 : i32
    %c0_i32_0 = arith.constant 0 : i32
    %c0_i32_1 = arith.constant 0 : i32
    return %c0_i32, %c0_i32_0 : i32, i32
  }
  func.func @transform_2(%arg0: i32) -> (i32, i32, i32) {
    %c0_i32 = arith.constant 0 : i32
    %c0_i32_0 = arith.constant 0 : i32
    %c0_i32_1 = arith.constant 0 : i32
    return %arg0, %c0_i32, %c0_i32_0 : i32, i32, i32
  }
  func.func @transform_3(%arg0: i32) -> (i32, i32, i32) {
    %c0_i32 = arith.constant 0 : i32
    %c0_i32_0 = arith.constant 0 : i32
    %c0_i32_1 = arith.constant 0 : i32
    return %arg0, %c0_i32, %c0_i32_0 : i32, i32, i32
  }
}

module attributes {stable_mosaic.version = 11 : i64} {
  func.func @conv3x3_stats_kernel(%arg0: i32, %arg1: memref<1x256x128xf32, #tpu.memory_space<vmem>>, %arg2: memref<2x128xf32, #tpu.memory_space<vmem>>, %arg3: memref<1152x128xbf16, #tpu.memory_space<vmem>>, %arg4: memref<1x256x128xf32, #tpu.memory_space<vmem>>, %arg5: memref<1x2x128xf32, #tpu.memory_space<vmem>>, %arg6: memref<18x18x128xf32, #tpu.memory_space<vmem>>) attributes {dimension_semantics = [#tpu.dimension_semantics<parallel>], iteration_bounds = array<i64: 2>, scalar_prefetch = 0 : i64, scratch_operands = 1 : i64, tpu.core_type = #tpu.core_type<tc>, window_params = [{transform_indices = @transform_0, window_bounds = array<i64: 1, 256, 128>}, {pipeline_mode = #tpu.pipeline_mode<synchronous>, transform_indices = @transform_1, window_bounds = array<i64: 2, 128>}, {pipeline_mode = #tpu.pipeline_mode<synchronous>, transform_indices = @transform_2, window_bounds = array<i64: 1152, 128>}, {transform_indices = @transform_3, window_bounds = array<i64: 1, 256, 128>}, {transform_indices = @transform_4, window_bounds = array<i64: 1, 2, 128>}]} {
    %c0 = arith.constant 0 : index
    %c0_0 = arith.constant 0 : index
    %0 = vector.load %arg2[%c0, %c0_0] : memref<2x128xf32, #tpu.memory_space<vmem>>, vector<1x128xf32>
    %c1 = arith.constant 1 : index
    %c0_1 = arith.constant 0 : index
    %1 = vector.load %arg2[%c1, %c0_1] : memref<2x128xf32, #tpu.memory_space<vmem>>, vector<1x128xf32>
    %c0_2 = arith.constant 0 : index
    %c0_3 = arith.constant 0 : index
    %c0_4 = arith.constant 0 : index
    %2 = vector.load %arg1[%c0_2, %c0_3, %c0_4] : memref<1x256x128xf32, #tpu.memory_space<vmem>>, vector<1x256x128xf32>
    %3 = vector.shape_cast %2 : vector<1x256x128xf32> to vector<256x128xf32>
    %4 = vector.broadcast %0 : vector<1x128xf32> to vector<256x128xf32>
    %5 = arith.mulf %3, %4 : vector<256x128xf32>
    %6 = vector.broadcast %1 : vector<1x128xf32> to vector<256x128xf32>
    %7 = arith.addf %5, %6 : vector<256x128xf32>
    %cst = arith.constant 0.000000e+00 : f32
    %8 = vector.broadcast %cst : f32 to vector<256x128xf32>
    %9 = arith.maximumf %7, %8 : vector<256x128xf32>
    %10 = vector.shape_cast %9 : vector<256x128xf32> to vector<16x16x128xf32>
    %cst_5 = arith.constant 0.000000e+00 : f32
    %11 = vector.broadcast %cst_5 : f32 to vector<1x18x128xf32>
    %cst_6 = arith.constant 0.000000e+00 : f32
    %12 = vector.broadcast %cst_6 : f32 to vector<16x1x128xf32>
    %c0_7 = arith.constant 0 : index
    %c0_8 = arith.constant 0 : index
    %c0_9 = arith.constant 0 : index
    %13 = vector.load %arg6[%c0_7, %c0_8, %c0_9] : memref<18x18x128xf32, #tpu.memory_space<vmem>>, vector<1x18x128xf32>
    tpu.vector_store %arg6[%c0_7, %c0_8, %c0_9], %11 {strides = array<i32>} : memref<18x18x128xf32, #tpu.memory_space<vmem>>, vector<1x18x128xf32>,
    %c17 = arith.constant 17 : index
    %c0_10 = arith.constant 0 : index
    %c0_11 = arith.constant 0 : index
    %14 = vector.load %arg6[%c17, %c0_10, %c0_11] : memref<18x18x128xf32, #tpu.memory_space<vmem>>, vector<1x18x128xf32>
    tpu.vector_store %arg6[%c17, %c0_10, %c0_11], %11 {strides = array<i32>} : memref<18x18x128xf32, #tpu.memory_space<vmem>>, vector<1x18x128xf32>,
    %15 = tpu.concatenate %12, %10, %12 in 1 : vector<16x1x128xf32>, vector<16x16x128xf32>, vector<16x1x128xf32> -> vector<16x18x128xf32>
    %c1_12 = arith.constant 1 : index
    %c0_13 = arith.constant 0 : index
    %c0_14 = arith.constant 0 : index
    %16 = vector.load %arg6[%c1_12, %c0_13, %c0_14] : memref<18x18x128xf32, #tpu.memory_space<vmem>>, vector<16x18x128xf32>
    tpu.vector_store %arg6[%c1_12, %c0_13, %c0_14], %15 {strides = array<i32>} : memref<18x18x128xf32, #tpu.memory_space<vmem>>, vector<16x18x128xf32>,
    %c0_15 = arith.constant 0 : index
    %c0_16 = arith.constant 0 : index
    %c0_17 = arith.constant 0 : index
    %17 = vector.load %arg6[%c0_15, %c0_16, %c0_17] : memref<18x18x128xf32, #tpu.memory_space<vmem>>, vector<16x16x128xf32>
    %c0_18 = arith.constant 0 : index
    %c1_19 = arith.constant 1 : index
    %c0_20 = arith.constant 0 : index
    %18 = vector.load %arg6[%c0_18, %c1_19, %c0_20] : memref<18x18x128xf32, #tpu.memory_space<vmem>>, vector<16x16x128xf32>
    %c0_21 = arith.constant 0 : index
    %c2 = arith.constant 2 : index
    %c0_22 = arith.constant 0 : index
    %19 = vector.load %arg6[%c0_21, %c2, %c0_22] : memref<18x18x128xf32, #tpu.memory_space<vmem>>, vector<16x16x128xf32>
    %c1_23 = arith.constant 1 : index
    %c0_24 = arith.constant 0 : index
    %c0_25 = arith.constant 0 : index
    %20 = vector.load %arg6[%c1_23, %c0_24, %c0_25] : memref<18x18x128xf32, #tpu.memory_space<vmem>>, vector<16x16x128xf32>
    %c1_26 = arith.constant 1 : index
    %c1_27 = arith.constant 1 : index
    %c0_28 = arith.constant 0 : index
    %21 = vector.load %arg6[%c1_26, %c1_27, %c0_28] : memref<18x18x128xf32, #tpu.memory_space<vmem>>, vector<16x16x128xf32>
    %c1_29 = arith.constant 1 : index
    %c2_30 = arith.constant 2 : index
    %c0_31 = arith.constant 0 : index
    %22 = vector.load %arg6[%c1_29, %c2_30, %c0_31] : memref<18x18x128xf32, #tpu.memory_space<vmem>>, vector<16x16x128xf32>
    %c2_32 = arith.constant 2 : index
    %c0_33 = arith.constant 0 : index
    %c0_34 = arith.constant 0 : index
    %23 = vector.load %arg6[%c2_32, %c0_33, %c0_34] : memref<18x18x128xf32, #tpu.memory_space<vmem>>, vector<16x16x128xf32>
    %c2_35 = arith.constant 2 : index
    %c1_36 = arith.constant 1 : index
    %c0_37 = arith.constant 0 : index
    %24 = vector.load %arg6[%c2_35, %c1_36, %c0_37] : memref<18x18x128xf32, #tpu.memory_space<vmem>>, vector<16x16x128xf32>
    %c2_38 = arith.constant 2 : index
    %c2_39 = arith.constant 2 : index
    %c0_40 = arith.constant 0 : index
    %25 = vector.load %arg6[%c2_38, %c2_39, %c0_40] : memref<18x18x128xf32, #tpu.memory_space<vmem>>, vector<16x16x128xf32>
    %26 = tpu.concatenate %17, %18, %19, %20, %21, %22, %23, %24, %25 in 2 : vector<16x16x128xf32>, vector<16x16x128xf32>, vector<16x16x128xf32>, vector<16x16x128xf32>, vector<16x16x128xf32>, vector<16x16x128xf32>, vector<16x16x128xf32>, vector<16x16x128xf32>, vector<16x16x128xf32> -> vector<16x16x1152xf32>
    %27 = vector.shape_cast %26 : vector<16x16x1152xf32> to vector<256x1152xf32>
    %28 = arith.truncf %27 : vector<256x1152xf32> to vector<256x1152xbf16>
    %c0_41 = arith.constant 0 : index
    %c0_42 = arith.constant 0 : index
    %29 = vector.load %arg3[%c0_41, %c0_42] : memref<1152x128xbf16, #tpu.memory_space<vmem>>, vector<1152x128xbf16>
    %cst_43 = arith.constant dense<0.000000e+00> : vector<256x128xf32>
    %30 = tpu.matmul %28, %29, %cst_43 {dimension_numbers = #tpu.dot_dimension_numbers<[1], [0], [0], [1], [0, 0, 1, 1], [], []>} : vector<256x1152xbf16>, vector<1152x128xbf16>, vector<256x128xf32> -> vector<256x128xf32>
    %c0_44 = arith.constant 0 : index
    %c0_45 = arith.constant 0 : index
    %c0_46 = arith.constant 0 : index
    %31 = vector.load %arg4[%c0_44, %c0_45, %c0_46] : memref<1x256x128xf32, #tpu.memory_space<vmem>>, vector<1x256x128xf32>
    %32 = vector.shape_cast %31 : vector<1x256x128xf32> to vector<256x128xf32>
    %33 = vector.shape_cast %30 : vector<256x128xf32> to vector<1x256x128xf32>
    tpu.vector_store %arg4[%c0_44, %c0_45, %c0_46], %33 {strides = array<i32>} : memref<1x256x128xf32, #tpu.memory_space<vmem>>, vector<1x256x128xf32>,
    %cst_47 = arith.constant dense<0.000000e+00> : vector<128xf32>
    %34 = vector.multi_reduction <add>, %30, %cst_47 [0] : vector<256x128xf32> to vector<128xf32>
    %35 = vector.shape_cast %34 : vector<128xf32> to vector<1x128xf32>
    %36 = arith.mulf %30, %30 : vector<256x128xf32>
    %cst_48 = arith.constant dense<0.000000e+00> : vector<128xf32>
    %37 = vector.multi_reduction <add>, %36, %cst_48 [0] : vector<256x128xf32> to vector<128xf32>
    %38 = vector.shape_cast %37 : vector<128xf32> to vector<1x128xf32>
    %39 = tpu.concatenate %35, %38 in 0 : vector<1x128xf32>, vector<1x128xf32> -> vector<2x128xf32>
    %c0_49 = arith.constant 0 : index
    %c0_50 = arith.constant 0 : index
    %c0_51 = arith.constant 0 : index
    %40 = vector.load %arg5[%c0_49, %c0_50, %c0_51] : memref<1x2x128xf32, #tpu.memory_space<vmem>>, vector<1x2x128xf32>
    %41 = vector.shape_cast %40 : vector<1x2x128xf32> to vector<2x128xf32>
    %42 = vector.shape_cast %39 : vector<2x128xf32> to vector<1x2x128xf32>
    tpu.vector_store %arg5[%c0_49, %c0_50, %c0_51], %42 {strides = array<i32>} : memref<1x2x128xf32, #tpu.memory_space<vmem>>, vector<1x2x128xf32>,
    return
  }
  func.func @transform_0(%arg0: i32) -> (i32, i32, i32) {
    %c0_i32 = arith.constant 0 : i32
    %c0_i32_0 = arith.constant 0 : i32
    %c0_i32_1 = arith.constant 0 : i32
    return %arg0, %c0_i32, %c0_i32_0 : i32, i32, i32
  }
  func.func @transform_1(%arg0: i32) -> (i32, i32) {
    %c0_i32 = arith.constant 0 : i32
    %c0_i32_0 = arith.constant 0 : i32
    %c0_i32_1 = arith.constant 0 : i32
    return %c0_i32, %c0_i32_0 : i32, i32
  }
  func.func @transform_2(%arg0: i32) -> (i32, i32) {
    %c0_i32 = arith.constant 0 : i32
    %c0_i32_0 = arith.constant 0 : i32
    %c0_i32_1 = arith.constant 0 : i32
    return %c0_i32, %c0_i32_0 : i32, i32
  }
  func.func @transform_3(%arg0: i32) -> (i32, i32, i32) {
    %c0_i32 = arith.constant 0 : i32
    %c0_i32_0 = arith.constant 0 : i32
    %c0_i32_1 = arith.constant 0 : i32
    return %arg0, %c0_i32, %c0_i32_0 : i32, i32, i32
  }
  func.func @transform_4(%arg0: i32) -> (i32, i32, i32) {
    %c0_i32 = arith.constant 0 : i32
    %c0_i32_0 = arith.constant 0 : i32
    %c0_i32_1 = arith.constant 0 : i32
    return %arg0, %c0_i32, %c0_i32_0 : i32, i32, i32
  }
}

module attributes {stable_mosaic.version = 11 : i64} {
  func.func @bn_relu_conv1x1_kernel(%arg0: i32, %arg1: memref<1x256x128xf32, #tpu.memory_space<vmem>>, %arg2: memref<2x128xf32, #tpu.memory_space<vmem>>, %arg3: memref<128x128xbf16, #tpu.memory_space<vmem>>, %arg4: memref<1x256x128xf32, #tpu.memory_space<vmem>>, %arg5: memref<1x2x128xf32, #tpu.memory_space<vmem>>) attributes {dimension_semantics = [#tpu.dimension_semantics<parallel>], iteration_bounds = array<i64: 2>, scalar_prefetch = 0 : i64, scratch_operands = 0 : i64, tpu.core_type = #tpu.core_type<tc>, window_params = [{transform_indices = @transform_0, window_bounds = array<i64: 1, 256, 128>}, {pipeline_mode = #tpu.pipeline_mode<synchronous>, transform_indices = @transform_1, window_bounds = array<i64: 2, 128>}, {pipeline_mode = #tpu.pipeline_mode<synchronous>, transform_indices = @transform_2, window_bounds = array<i64: 128, 128>}, {transform_indices = @transform_3, window_bounds = array<i64: 1, 256, 128>}, {transform_indices = @transform_4, window_bounds = array<i64: 1, 2, 128>}]} {
    %c0 = arith.constant 0 : index
    %c0_0 = arith.constant 0 : index
    %0 = vector.load %arg2[%c0, %c0_0] : memref<2x128xf32, #tpu.memory_space<vmem>>, vector<1x128xf32>
    %c1 = arith.constant 1 : index
    %c0_1 = arith.constant 0 : index
    %1 = vector.load %arg2[%c1, %c0_1] : memref<2x128xf32, #tpu.memory_space<vmem>>, vector<1x128xf32>
    %c0_2 = arith.constant 0 : index
    %c0_3 = arith.constant 0 : index
    %c0_4 = arith.constant 0 : index
    %2 = vector.load %arg1[%c0_2, %c0_3, %c0_4] : memref<1x256x128xf32, #tpu.memory_space<vmem>>, vector<1x256x128xf32>
    %3 = vector.shape_cast %2 : vector<1x256x128xf32> to vector<256x128xf32>
    %4 = vector.broadcast %0 : vector<1x128xf32> to vector<256x128xf32>
    %5 = arith.mulf %3, %4 : vector<256x128xf32>
    %6 = vector.broadcast %1 : vector<1x128xf32> to vector<256x128xf32>
    %7 = arith.addf %5, %6 : vector<256x128xf32>
    %cst = arith.constant 0.000000e+00 : f32
    %8 = vector.broadcast %cst : f32 to vector<256x128xf32>
    %9 = arith.maximumf %7, %8 : vector<256x128xf32>
    %10 = arith.truncf %9 : vector<256x128xf32> to vector<256x128xbf16>
    %c0_5 = arith.constant 0 : index
    %c0_6 = arith.constant 0 : index
    %11 = vector.load %arg3[%c0_5, %c0_6] : memref<128x128xbf16, #tpu.memory_space<vmem>>, vector<128x128xbf16>
    %cst_7 = arith.constant dense<0.000000e+00> : vector<256x128xf32>
    %12 = tpu.matmul %10, %11, %cst_7 {dimension_numbers = #tpu.dot_dimension_numbers<[1], [0], [0], [1], [0, 0, 1, 1], [], []>} : vector<256x128xbf16>, vector<128x128xbf16>, vector<256x128xf32> -> vector<256x128xf32>
    %c0_8 = arith.constant 0 : index
    %c0_9 = arith.constant 0 : index
    %c0_10 = arith.constant 0 : index
    %13 = vector.load %arg4[%c0_8, %c0_9, %c0_10] : memref<1x256x128xf32, #tpu.memory_space<vmem>>, vector<1x256x128xf32>
    %14 = vector.shape_cast %13 : vector<1x256x128xf32> to vector<256x128xf32>
    %15 = vector.shape_cast %12 : vector<256x128xf32> to vector<1x256x128xf32>
    tpu.vector_store %arg4[%c0_8, %c0_9, %c0_10], %15 {strides = array<i32>} : memref<1x256x128xf32, #tpu.memory_space<vmem>>, vector<1x256x128xf32>,
    %cst_11 = arith.constant dense<0.000000e+00> : vector<128xf32>
    %16 = vector.multi_reduction <add>, %12, %cst_11 [0] : vector<256x128xf32> to vector<128xf32>
    %17 = vector.shape_cast %16 : vector<128xf32> to vector<1x128xf32>
    %18 = arith.mulf %12, %12 : vector<256x128xf32>
    %cst_12 = arith.constant dense<0.000000e+00> : vector<128xf32>
    %19 = vector.multi_reduction <add>, %18, %cst_12 [0] : vector<256x128xf32> to vector<128xf32>
    %20 = vector.shape_cast %19 : vector<128xf32> to vector<1x128xf32>
    %21 = tpu.concatenate %17, %20 in 0 : vector<1x128xf32>, vector<1x128xf32> -> vector<2x128xf32>
    %c0_13 = arith.constant 0 : index
    %c0_14 = arith.constant 0 : index
    %c0_15 = arith.constant 0 : index
    %22 = vector.load %arg5[%c0_13, %c0_14, %c0_15] : memref<1x2x128xf32, #tpu.memory_space<vmem>>, vector<1x2x128xf32>
    %23 = vector.shape_cast %22 : vector<1x2x128xf32> to vector<2x128xf32>
    %24 = vector.shape_cast %21 : vector<2x128xf32> to vector<1x2x128xf32>
    tpu.vector_store %arg5[%c0_13, %c0_14, %c0_15], %24 {strides = array<i32>} : memref<1x2x128xf32, #tpu.memory_space<vmem>>, vector<1x2x128xf32>,
    return
  }
  func.func @transform_0(%arg0: i32) -> (i32, i32, i32) {
    %c0_i32 = arith.constant 0 : i32
    %c0_i32_0 = arith.constant 0 : i32
    %c0_i32_1 = arith.constant 0 : i32
    return %arg0, %c0_i32, %c0_i32_0 : i32, i32, i32
  }
  func.func @transform_1(%arg0: i32) -> (i32, i32) {
    %c0_i32 = arith.constant 0 : i32
    %c0_i32_0 = arith.constant 0 : i32
    %c0_i32_1 = arith.constant 0 : i32
    return %c0_i32, %c0_i32_0 : i32, i32
  }
  func.func @transform_2(%arg0: i32) -> (i32, i32) {
    %c0_i32 = arith.constant 0 : i32
    %c0_i32_0 = arith.constant 0 : i32
    %c0_i32_1 = arith.constant 0 : i32
    return %c0_i32, %c0_i32_0 : i32, i32
  }
  func.func @transform_3(%arg0: i32) -> (i32, i32, i32) {
    %c0_i32 = arith.constant 0 : i32
    %c0_i32_0 = arith.constant 0 : i32
    %c0_i32_1 = arith.constant 0 : i32
    return %arg0, %c0_i32, %c0_i32_0 : i32, i32, i32
  }
  func.func @transform_4(%arg0: i32) -> (i32, i32, i32) {
    %c0_i32 = arith.constant 0 : i32
    %c0_i32_0 = arith.constant 0 : i32
    %c0_i32_1 = arith.constant 0 : i32
    return %arg0, %c0_i32, %c0_i32_0 : i32, i32, i32
  }
}

module attributes {stable_mosaic.version = 11 : i64} {
  func.func @bn_residual_relu_kernel(%arg0: i32, %arg1: memref<1x256x128xf32, #tpu.memory_space<vmem>>, %arg2: memref<2x128xf32, #tpu.memory_space<vmem>>, %arg3: memref<1x256x128xf32, #tpu.memory_space<vmem>>, %arg4: memref<1x256x128xf32, #tpu.memory_space<vmem>>) attributes {dimension_semantics = [#tpu.dimension_semantics<parallel>], iteration_bounds = array<i64: 2>, scalar_prefetch = 0 : i64, scratch_operands = 0 : i64, tpu.core_type = #tpu.core_type<tc>, window_params = [{transform_indices = @transform_0, window_bounds = array<i64: 1, 256, 128>}, {pipeline_mode = #tpu.pipeline_mode<synchronous>, transform_indices = @transform_1, window_bounds = array<i64: 2, 128>}, {transform_indices = @transform_2, window_bounds = array<i64: 1, 256, 128>}, {transform_indices = @transform_3, window_bounds = array<i64: 1, 256, 128>}]} {
    %c0 = arith.constant 0 : index
    %c0_0 = arith.constant 0 : index
    %0 = vector.load %arg2[%c0, %c0_0] : memref<2x128xf32, #tpu.memory_space<vmem>>, vector<1x128xf32>
    %c1 = arith.constant 1 : index
    %c0_1 = arith.constant 0 : index
    %1 = vector.load %arg2[%c1, %c0_1] : memref<2x128xf32, #tpu.memory_space<vmem>>, vector<1x128xf32>
    %c0_2 = arith.constant 0 : index
    %c0_3 = arith.constant 0 : index
    %c0_4 = arith.constant 0 : index
    %2 = vector.load %arg1[%c0_2, %c0_3, %c0_4] : memref<1x256x128xf32, #tpu.memory_space<vmem>>, vector<1x256x128xf32>
    %3 = vector.shape_cast %2 : vector<1x256x128xf32> to vector<256x128xf32>
    %4 = vector.broadcast %0 : vector<1x128xf32> to vector<256x128xf32>
    %5 = arith.mulf %3, %4 : vector<256x128xf32>
    %6 = vector.broadcast %1 : vector<1x128xf32> to vector<256x128xf32>
    %7 = arith.addf %5, %6 : vector<256x128xf32>
    %c0_5 = arith.constant 0 : index
    %c0_6 = arith.constant 0 : index
    %c0_7 = arith.constant 0 : index
    %8 = vector.load %arg3[%c0_5, %c0_6, %c0_7] : memref<1x256x128xf32, #tpu.memory_space<vmem>>, vector<1x256x128xf32>
    %9 = vector.shape_cast %8 : vector<1x256x128xf32> to vector<256x128xf32>
    %10 = arith.addf %7, %9 : vector<256x128xf32>
    %cst = arith.constant 0.000000e+00 : f32
    %11 = vector.broadcast %cst : f32 to vector<256x128xf32>
    %12 = arith.maximumf %10, %11 : vector<256x128xf32>
    %c0_8 = arith.constant 0 : index
    %c0_9 = arith.constant 0 : index
    %c0_10 = arith.constant 0 : index
    %13 = vector.load %arg4[%c0_8, %c0_9, %c0_10] : memref<1x256x128xf32, #tpu.memory_space<vmem>>, vector<1x256x128xf32>
    %14 = vector.shape_cast %13 : vector<1x256x128xf32> to vector<256x128xf32>
    %15 = vector.shape_cast %12 : vector<256x128xf32> to vector<1x256x128xf32>
    tpu.vector_store %arg4[%c0_8, %c0_9, %c0_10], %15 {strides = array<i32>} : memref<1x256x128xf32, #tpu.memory_space<vmem>>, vector<1x256x128xf32>,
    return
  }
  func.func @transform_0(%arg0: i32) -> (i32, i32, i32) {
    %c0_i32 = arith.constant 0 : i32
    %c0_i32_0 = arith.constant 0 : i32
    %c0_i32_1 = arith.constant 0 : i32
    return %arg0, %c0_i32, %c0_i32_0 : i32, i32, i32
  }
  func.func @transform_1(%arg0: i32) -> (i32, i32) {
    %c0_i32 = arith.constant 0 : i32
    %c0_i32_0 = arith.constant 0 : i32
    %c0_i32_1 = arith.constant 0 : i32
    return %c0_i32, %c0_i32_0 : i32, i32
  }
  func.func @transform_2(%arg0: i32) -> (i32, i32, i32) {
    %c0_i32 = arith.constant 0 : i32
    %c0_i32_0 = arith.constant 0 : i32
    %c0_i32_1 = arith.constant 0 : i32
    return %arg0, %c0_i32, %c0_i32_0 : i32, i32, i32
  }
  func.func @transform_3(%arg0: i32) -> (i32, i32, i32) {
    %c0_i32 = arith.constant 0 : i32
    %c0_i32_0 = arith.constant 0 : i32
    %c0_i32_1 = arith.constant 0 : i32
    return %arg0, %c0_i32, %c0_i32_0 : i32, i32, i32
  }
}

</mosaic_0001>

<bundles_post_ra>
// kernel: bottleneck_forward.4
= control target key start
LH: loop header
LB: loop body
LE: loop exit
PB: predicated region body
PF: predicated region fallthrough
CT: control target
= control target key end

     0   :  { %s724_s12 = smov 0   ;;  %s958_s0 = inlined_call_operand.vmem [shape: f32[2,256,128], index: 0, kind: input, shape index: {}]   ;;  %s959_s1 = inlined_call_operand.vmem [shape: bf16[128,128], index: 1, kind: input, shape index: {}]   ;;  %s960_s2 = inlined_call_operand.vmem [shape: f32[2,256,128], index: 2, kind: output, shape index: {0}]   ;;  %s961_s3 = inlined_call_operand.vmem [shape: f32[2,2,128], index: 3, kind: output, shape index: {1}]  }
   0x1 LB: > { %s610_s13 = sadd.s32 4294967295, %s702_s12   ;;  %p614_p0 = scmp.ge.s32.totalorder %s702_s12, 1  ;;  %s702_s12 = sphi %s724_s12, %s14_s12  }
   0x2   : > { %p140_p1 = scmp.lt.s32.totalorder %s702_s12, 3 }
   0x4   : > { %p141_p2 = pnand %p614_p0, %p140_p1 }
   0x5   : > { %p168_p3 = scmp.lt.s32.totalorder (!%p141_p2), %s610_s13, 1 }
   0x6   : > { %144 = sbr.rel (%p141_p2) target bundleno = 291 (0x123), region = 28 }
   0xb   : > { %v663_v0 = vld [vmem:[%s959_s1 + $0x38] sm:$0xff]  ;;  %v662_v1 = vld [vmem:[%s959_s1 + $0x30] sm:$0xff]  ;;  %v661_v2 = vld [vmem:[%s959_s1 + $0x28] sm:$0xff]  ;;  %s963_s13 = smov (!%p168_p3, %s610_s13), 1  ;;  %vm521_vm0 = vcmask 1040384  }
   0xc   : > { %294 = vmatpush.bf16.msra.mxu0 %v663_v0  ;;  %664 = vmatpush.bf16.msra.mxu1 %v663_v0  ;;  %v660_v3 = vld [vmem:[%s959_s1 + $0x20] sm:$0xff]  ;;  %v659_v4 = vld [vmem:[%s959_s1 + $0x18] sm:$0xff]  ;;  %v658_v5 = vld [vmem:[%s959_s1 + $0x10] sm:$0xff]  ;;  %s654_s26 = sshll.u32 %s963_s13, 8  ;;  %s619_s10 = sshll.u32 %s963_s13, 1 }
   0xd   : > { %665 = vmatpush.bf16.msra.mxu2 %v663_v0  ;;  %666 = vmatpush.bf16.msra.mxu3 %v663_v0  ;;  %v657_v6 = vld [vmem:[%s959_s1 + $0x8] sm:$0xff]  ;;  %s761_s4 = scalar_lea.vmem %s958_s0, %s654_s26  ;;  %v656_v7 = vld [vmem:[%s959_s1] sm:$0xff]  ;;  %s803_s9 = scalar_lea.vmem %s960_s2, %s654_s26 }
   0xe   : > { %v182_v8 = vld [vmem:[%s761_s4] sm:$0xff]  ;;  %v183_v9 = vld [vmem:[%s761_s4 + $0x8] sm:$0xff]  ;;  %v184_v20 = vld [vmem:[%s761_s4 + $0x10] sm:$0xff]  ;;  %s181_s15 = scalar_lea.vmem %s961_s3, %s619_s10 }
   0xf   : > { %v190_v10 = vld [vmem:[%s761_s4 + $0x40] sm:$0xff]  ;;  %v191_v11 = vld [vmem:[%s761_s4 + $0x48] sm:$0xff]  ;;  %v214_v14 = vpack.c.bf16 %v183_v9, %v182_v8  ;;  %v185_v21 = vld [vmem:[%s761_s4 + $0x18] sm:$0xff] }
  0x10   : > { %295 = vmatpush.bf16.msra.mxu0 %v662_v1  ;;  %667 = vmatpush.bf16.msra.mxu1 %v662_v1  ;;  %v198_v12 = vld [vmem:[%s761_s4 + $0x80] sm:$0xff]  ;;  %v199_v13 = vld [vmem:[%s761_s4 + $0x88] sm:$0xff]  ;;  %v218_v15 = vpack.c.bf16 %v191_v11, %v190_v10  ;;  %v192_v22 = vld [vmem:[%s761_s4 + $0x50] sm:$0xff]  ;;  %v215_v26 = vpack.c.bf16 %v185_v21, %v184_v20 }
  0x11   : > { %668 = vmatpush.bf16.msra.mxu2 %v662_v1  ;;  %669 = vmatpush.bf16.msra.mxu3 %v662_v1  ;;  %v222_v16 = vpack.c.bf16 %v199_v13, %v198_v12  ;;  %v206_v17 = vld [vmem:[%s761_s4 + $0xc0] sm:$0xff]  ;;  %v207_v18 = vld [vmem:[%s761_s4 + $0xc8] sm:$0xff]  ;;  %v193_v23 = vld [vmem:[%s761_s4 + $0x58] sm:$0xff] }
  0x12   : > { %v226_v19 = vpack.c.bf16 %v207_v18, %v206_v17  ;;  %v200_v24 = vld [vmem:[%s761_s4 + $0x90] sm:$0xff]  ;;  %v201_v25 = vld [vmem:[%s761_s4 + $0x98] sm:$0xff]  ;;  %v219_v27 = vpack.c.bf16 %v193_v23, %v192_v22  ;;  %v186_v32 = vld [vmem:[%s761_s4 + $0x20] sm:$0xff] }
  0x13   : > { %v223_v28 = vpack.c.bf16 %v201_v25, %v200_v24  ;;  %v208_v29 = vld [vmem:[%s761_s4 + $0xd0] sm:$0xff]  ;;  %v209_v30 = vld [vmem:[%s761_s4 + $0xd8] sm:$0xff]  ;;  %v187_v33 = vld [vmem:[%s761_s4 + $0x28] sm:$0xff] }
  0x14   : > { %296 = vmatpush.bf16.msra.mxu0 %v661_v2  ;;  %670 = vmatpush.bf16.msra.mxu1 %v661_v2  ;;  %v227_v31 = vpack.c.bf16 %v209_v30, %v208_v29  ;;  %v194_v34 = vld [vmem:[%s761_s4 + $0x60] sm:$0xff]  ;;  %v195_v35 = vld [vmem:[%s761_s4 + $0x68] sm:$0xff]  ;;  %v216_v38 = vpack.c.bf16 %v187_v33, %v186_v32  ;;  %v188_v44 = vld [vmem:[%s761_s4 + $0x30] sm:$0xff] }
  0x15   : > { %671 = vmatpush.bf16.msra.mxu2 %v661_v2  ;;  %672 = vmatpush.bf16.msra.mxu3 %v661_v2  ;;  %v202_v36 = vld [vmem:[%s761_s4 + $0xa0] sm:$0xff]  ;;  %v203_v37 = vld [vmem:[%s761_s4 + $0xa8] sm:$0xff]  ;;  %v220_v39 = vpack.c.bf16 %v195_v35, %v194_v34  ;;  %v189_v45 = vld [vmem:[%s761_s4 + $0x38] sm:$0xff] }
  0x16   : > { %v210_v40 = vld [vmem:[%s761_s4 + $0xe0] sm:$0xff]  ;;  %v211_v41 = vld [vmem:[%s761_s4 + $0xe8] sm:$0xff]  ;;  %v224_v42 = vpack.c.bf16 %v203_v37, %v202_v36  ;;  %v196_v46 = vld [vmem:[%s761_s4 + $0x70] sm:$0xff]  ;;  %v217_v50 = vpack.c.bf16 %v189_v45, %v188_v44 }
  0x17   : > { %v228_v43 = vpack.c.bf16 %v211_v41, %v210_v40  ;;  %v197_v47 = vld [vmem:[%s761_s4 + $0x78] sm:$0xff]  ;;  %v204_v48 = vld [vmem:[%s761_s4 + $0xb0] sm:$0xff] }
  0x18   : > { %297 = vmatpush.bf16.msra.mxu0 %v660_v3  ;;  %673 = vmatpush.bf16.msra.mxu1 %v660_v3  ;;  %v205_v49 = vld [vmem:[%s761_s4 + $0xb8] sm:$0xff]  ;;  %v221_v51 = vpack.c.bf16 %v197_v47, %v196_v46  ;;  %v212_v52 = vld [vmem:[%s761_s4 + $0xf0] sm:$0xff] }
  0x19   : > { %674 = vmatpush.bf16.msra.mxu2 %v660_v3  ;;  %675 = vmatpush.bf16.msra.mxu3 %v660_v3  ;;  %v213_v53 = vld [vmem:[%s761_s4 + $0xf8] sm:$0xff]  ;;  %v225_v54 = vpack.c.bf16 %v205_v49, %v204_v48 }
  0x1a   : > { %v229_v55 = vpack.c.bf16 %v213_v53, %v212_v52 }
  0x1c   : > { %298 = vmatpush.bf16.msra.mxu0 %v659_v4  ;;  %676 = vmatpush.bf16.msra.mxu1 %v659_v4 }
  0x1d   : > { %677 = vmatpush.bf16.msra.mxu2 %v659_v4  ;;  %678 = vmatpush.bf16.msra.mxu3 %v659_v4 }
  0x20   : > { %299 = vmatpush.bf16.msra.mxu0 %v658_v5  ;;  %679 = vmatpush.bf16.msra.mxu1 %v658_v5 }
  0x21   : > { %680 = vmatpush.bf16.msra.mxu2 %v658_v5  ;;  %681 = vmatpush.bf16.msra.mxu3 %v658_v5 }
  0x24   : > { %300 = vmatpush.bf16.msra.mxu0 %v657_v6  ;;  %682 = vmatpush.bf16.msra.mxu1 %v657_v6 }
  0x25   : > { %683 = vmatpush.bf16.msra.mxu2 %v657_v6  ;;  %684 = vmatpush.bf16.msra.mxu3 %v657_v6 }
  0x28   : > { %301 = vmatpush.bf16.msra.mxu0 %v656_v7  ;;  %685 = vmatpush.bf16.msra.mxu1 %v656_v7 }
  0x29   : > { %686 = vmatpush.bf16.msra.mxu2 %v656_v7  ;;  %687 = vmatpush.bf16.msra.mxu3 %v656_v7 }
  0x2b   : > { %302 = vmatmul.bf16.vlgmr.msra.gmra.mxu0 %v214_v14  ;;  %322 = vmatmul.bf16.vlgmr.msra.gmra.mxu1 %v218_v15 }
  0x2c   : > { %342 = vmatmul.bf16.vlgmr.msra.gmra.mxu2 %v222_v16  ;;  %362 = vmatmul.bf16.vlgmr.msra.gmra.mxu3 %v226_v19 }
  0x3b   : > { %307 = vmatmul.bf16.gmra.mxu0 %v215_v26  ;;  %327 = vmatmul.bf16.gmra.mxu1 %v219_v27 }
  0x3c   : > { %347 = vmatmul.bf16.gmra.mxu2 %v223_v28  ;;  %367 = vmatmul.bf16.gmra.mxu3 %v227_v31 }
  0x4b   : > { %312 = vmatmul.bf16.gmra.mxu0 %v216_v38  ;;  %332 = vmatmul.bf16.gmra.mxu1 %v220_v39 }
  0x4c   : > { %352 = vmatmul.bf16.gmra.mxu2 %v224_v42  ;;  %372 = vmatmul.bf16.gmra.mxu3 %v228_v43 }
  0x5b   : > { %317 = vmatmul.bf16.gmra.mxu0 %v217_v50  ;;  %337 = vmatmul.bf16.gmra.mxu1 %v221_v51 }
  0x5c   : > { %357 = vmatmul.bf16.gmra.mxu2 %v225_v54  ;;  %377 = vmatmul.bf16.gmra.mxu3 %v229_v55 }
  0xa8   : > { %v303_v56 = vpop.f32.mrf.mxu0  ;;  %v805_v57 = vpop.f32.mrf.mxu1 }
  0xa9   : > { %383 = vst [vmem:[%s803_s9] sm:$0xff] %v303_v56  ;;  %v452_v15 = vmul.f32 %v303_v56, %v303_v56  ;;  %v460_v43 = vmul.f32 %v805_v57, %v805_v57 }
  0xaa   : > { %391 = vst [vmem:[%s803_s9 + $0x40] sm:$0xff] %v805_v57 }
  0xaf   : > { %v810_v58 = vpop.f32.mrf.mxu2  ;;  %v817_v61 = vpop.f32.mrf.mxu3 }
  0xb0   : > { %v305_v59 = vpop.f32.mrf.mxu0  ;;  %v812_v60 = vpop.f32.mrf.mxu1  ;;  %399 = vst [vmem:[%s803_s9 + $0x80] sm:$0xff] %v810_v58 }
  0xb1   : > { %384 = vst [vmem:[%s803_s9 + $0x8] sm:$0xff] %v305_v59  ;;  %v453_v14 = vmul.f32 %v305_v59, %v305_v59  ;;  %v415_v16 = vadd.f32 %v305_v59, %v303_v56  ;;  %v461_v46 = vmul.f32 %v812_v60, %v812_v60 }
  0xb2   : > { %392 = vst [vmem:[%s803_s9 + $0x48] sm:$0xff] %v812_v60 }
  0xb3   : > { %407 = vst [vmem:[%s803_s9 + $0xc0] sm:$0xff] %v817_v61  ;;  %v484_v18 = vadd.f32 %v453_v14, %v452_v15 }
  0xb7   : > { %v823_v62 = vpop.f32.mrf.mxu2  ;;  %v830_v1 = vpop.f32.mrf.mxu3 }
  0xb8   : > { %v308_v63 = vpop.f32.mrf.mxu0  ;;  %v825_v0 = vpop.f32.mrf.mxu1  ;;  %400 = vst [vmem:[%s803_s9 + $0x88] sm:$0xff] %v823_v62 }
  0xb9   : > { %385 = vst [vmem:[%s803_s9 + $0x10] sm:$0xff] %v308_v63  ;;  %v454_v17 = vmul.f32 %v308_v63, %v308_v63  ;;  %v416_v19 = vadd.f32 %v415_v16, %v308_v63  ;;  %v462_v49 = vmul.f32 %v825_v0, %v825_v0 }
  0xba   : > { %393 = vst [vmem:[%s803_s9 + $0x50] sm:$0xff] %v825_v0 }
  0xbb   : > { %408 = vst [vmem:[%s803_s9 + $0xc8] sm:$0xff] %v830_v1  ;;  %v485_v24 = vadd.f32 %v484_v18, %v454_v17  ;;  %v468_v17 = vmul.f32 %v810_v58, %v810_v58 }
  0xbf   : > { %v836_v2 = vpop.f32.mrf.mxu2  ;;  %v843_v5 = vpop.f32.mrf.mxu3 }
  0xc0   : > { %v310_v3 = vpop.f32.mrf.mxu0  ;;  %v838_v4 = vpop.f32.mrf.mxu1  ;;  %401 = vst [vmem:[%s803_s9 + $0x90] sm:$0xff] %v836_v2 }
  0xc1   : > { %386 = vst [vmem:[%s803_s9 + $0x18] sm:$0xff] %v310_v3  ;;  %v455_v20 = vmul.f32 %v310_v3, %v310_v3  ;;  %v417_v25 = vadd.f32 %v416_v19, %v310_v3  ;;  %v463_v53 = vmul.f32 %v838_v4, %v838_v4 }
  0xc2   : > { %394 = vst [vmem:[%s803_s9 + $0x58] sm:$0xff] %v838_v4 }
  0xc3   : > { %409 = vst [vmem:[%s803_s9 + $0xd0] sm:$0xff] %v843_v5  ;;  %v486_v28 = vadd.f32 %v485_v24, %v455_v20 }
  0xc7   : > { %v849_v6 = vpop.f32.mrf.mxu2  ;;  %v856_v9 = vpop.f32.mrf.mxu3 }
  0xc8   : > { %v313_v7 = vpop.f32.mrf.mxu0  ;;  %v851_v8 = vpop.f32.mrf.mxu1  ;;  %402 = vst [vmem:[%s803_s9 + $0x98] sm:$0xff] %v849_v6 }
  0xc9   : > { %387 = vst [vmem:[%s803_s9 + $0x20] sm:$0xff] %v313_v7  ;;  %v456_v26 = vmul.f32 %v313_v7, %v313_v7  ;;  %v418_v29 = vadd.f32 %v417_v25, %v313_v7  ;;  %v471_v25 = vmul.f32 %v849_v6, %v849_v6 }
  0xca   : > { %395 = vst [vmem:[%s803_s9 + $0x60] sm:$0xff] %v851_v8 }
  0xcb   : > { %410 = vst [vmem:[%s803_s9 + $0xd8] sm:$0xff] %v856_v9  ;;  %v487_v31 = vadd.f32 %v486_v28, %v456_v26 }
  0xcf   : > { %v862_v10 = vpop.f32.mrf.mxu2  ;;  %v869_v13 = vpop.f32.mrf.mxu3 }
  0xd0   : > { %v315_v11 = vpop.f32.mrf.mxu0  ;;  %v864_v12 = vpop.f32.mrf.mxu1  ;;  %403 = vst [vmem:[%s803_s9 + $0xa0] sm:$0xff] %v862_v10 }
  0xd1   : > { %388 = vst [vmem:[%s803_s9 + $0x28] sm:$0xff] %v315_v11  ;;  %v457_v30 = vmul.f32 %v315_v11, %v315_v11  ;;  %v419_v32 = vadd.f32 %v418_v29, %v315_v11  ;;  %v465_v63 = vmul.f32 %v864_v12, %v864_v12 }
  0xd2   : > { %396 = vst [vmem:[%s803_s9 + $0x68] sm:$0xff] %v864_v12 }
  0xd3   : > { %411 = vst [vmem:[%s803_s9 + $0xe0] sm:$0xff] %v869_v13  ;;  %v488_v34 = vadd.f32 %v487_v31, %v457_v30 }
  0xd7   : > { %v875_v21 = vpop.f32.mrf.mxu2  ;;  %v880_v27 = vpop.f32.mrf.mxu3 }
  0xd8   : > { %v318_v22 = vpop.f32.mrf.mxu0  ;;  %v338_v23 = vpop.f32.mrf.mxu1  ;;  %404 = vst [vmem:[%s803_s9 + $0xa8] sm:$0xff] %v875_v21  ;;  %v473_v31 = vmul.f32 %v875_v21, %v875_v21 }
  0xd9   : > { %389 = vst [vmem:[%s803_s9 + $0x30] sm:$0xff] %v318_v22  ;;  %v458_v33 = vmul.f32 %v318_v22, %v318_v22  ;;  %v420_v35 = vadd.f32 %v419_v32, %v318_v22  ;;  %v466_v11 = vmul.f32 %v338_v23, %v338_v23 }
  0xda   : > { %397 = vst [vmem:[%s803_s9 + $0x70] sm:$0xff] %v338_v23 }
  0xdb   : > { %412 = vst [vmem:[%s803_s9 + $0xe8] sm:$0xff] %v880_v27  ;;  %v489_v39 = vadd.f32 %v488_v34, %v458_v33 }
  0xdf   : > { %v358_v36 = vpop.f32.mrf.mxu2  ;;  %v887_v42 = vpop.f32.mrf.mxu3 }
  0xe0   : > { %v320_v37 = vpop.f32.mrf.mxu0  ;;  %v340_v38 = vpop.f32.mrf.mxu1  ;;  %405 = vst [vmem:[%s803_s9 + $0xb0] sm:$0xff] %v358_v36  ;;  %v474_v34 = vmul.f32 %v358_v36, %v358_v36 }
  0xe1   : > { %390 = vst [vmem:[%s803_s9 + $0x38] sm:$0xff] %v320_v37  ;;  %v421_v40 = vadd.f32 %v420_v35, %v320_v37  ;;  %v459_v41 = vmul.f32 %v320_v37, %v320_v37 }
  0xe2   : > { %398 = vst [vmem:[%s803_s9 + $0x78] sm:$0xff] %v340_v38 }
  0xe3   : > { %v422_v44 = vadd.f32 %v421_v40, %v805_v57  ;;  %v490_v45 = vadd.f32 %v489_v39, %v459_v41  ;;  %413 = vst [vmem:[%s803_s9 + $0xf0] sm:$0xff] %v887_v42  ;;  %v464_v57 = vmul.f32 %v851_v8, %v851_v8 }
  0xe5   : > { %v423_v47 = vadd.f32 %v422_v44, %v812_v60  ;;  %v491_v48 = vadd.f32 %v490_v45, %v460_v43  ;;  %v479_v45 = vmul.f32 %v856_v9, %v856_v9 }
  0xe7   : > { %v424_v50 = vadd.f32 %v423_v47, %v825_v0  ;;  %v492_v51 = vadd.f32 %v491_v48, %v461_v46  ;;  %v360_v52 = vpop.f32.mrf.mxu2  ;;  %v380_v56 = vpop.f32.mrf.mxu3 }
  0xe8   : > { %406 = vst [vmem:[%s803_s9 + $0xb8] sm:$0xff] %v360_v52 }
  0xe9   : > { %v493_v54 = vadd.f32 %v492_v51, %v462_v49  ;;  %v425_v55 = vadd.f32 %v424_v50, %v838_v4  ;;  %414 = vst [vmem:[%s803_s9 + $0xf8] sm:$0xff] %v380_v56  ;;  %v467_v4 = vmul.f32 %v340_v38, %v340_v38  ;;  %v481_v50 = vmul.f32 %v880_v27, %v880_v27 }
  0xeb   : > { %v426_v59 = vadd.f32 %v425_v55, %v851_v8  ;;  %v494_v60 = vadd.f32 %v493_v54, %v463_v53  ;;  %v469_v8 = vmul.f32 %v823_v62, %v823_v62  ;;  %v482_v53 = vmul.f32 %v887_v42, %v887_v42 }
  0xec   : > { %v483_v55 = vmul.f32 %v380_v56, %v380_v56 }
  0xed   : > { %v427_v0 = vadd.f32 %v426_v59, %v864_v12  ;;  %v495_v3 = vadd.f32 %v494_v60, %v464_v57  ;;  %v470_v12 = vmul.f32 %v836_v2, %v836_v2 }
  0xef   : > { %v428_v7 = vadd.f32 %v427_v0, %v338_v23  ;;  %v496_v14 = vadd.f32 %v495_v3, %v465_v63 }
  0xf1   : > { %v497_v15 = vadd.f32 %v496_v14, %v466_v11  ;;  %v429_v16 = vadd.f32 %v428_v7, %v340_v38  ;;  %v475_v38 = vmul.f32 %v360_v52, %v360_v52 }
  0xf3   : > { %v430_v18 = vadd.f32 %v429_v16, %v810_v58  ;;  %v498_v19 = vadd.f32 %v497_v15, %v467_v4  ;;  %v472_v58 = vmul.f32 %v862_v10, %v862_v10 }
  0xf5   : > { %v431_v20 = vadd.f32 %v430_v18, %v823_v62  ;;  %v499_v22 = vadd.f32 %v498_v19, %v468_v17 }
  0xf7   : > { %v432_v23 = vadd.f32 %v431_v20, %v836_v2  ;;  %v500_v24 = vadd.f32 %v499_v22, %v469_v8 }
  0xf9   : > { %v501_v26 = vadd.f32 %v500_v24, %v470_v12  ;;  %v433_v28 = vadd.f32 %v432_v23, %v849_v6  ;;  %v476_v6 = vmul.f32 %v817_v61, %v817_v61 }
  0xfb   : > { %v434_v29 = vadd.f32 %v433_v28, %v862_v10  ;;  %v502_v30 = vadd.f32 %v501_v26, %v471_v25  ;;  %v477_v10 = vmul.f32 %v830_v1, %v830_v1 }
  0xfd   : > { %v435_v62 = vadd.f32 %v434_v29, %v875_v21  ;;  %v503_v32 = vadd.f32 %v502_v30, %v472_v58  ;;  %v478_v21 = vmul.f32 %v843_v5, %v843_v5 }
  0xff   : > { %v504_v2 = vadd.f32 %v503_v32, %v473_v31  ;;  %v436_v33 = vadd.f32 %v435_v62, %v358_v36 }
 0x101   : > { %v505_v35 = vadd.f32 %v504_v2, %v474_v34  ;;  %v437_v37 = vadd.f32 %v436_v33, %v360_v52 }
 0x103   : > { %v438_v39 = vadd.f32 %v437_v37, %v817_v61  ;;  %v506_v40 = vadd.f32 %v505_v35, %v475_v38  ;;  %v480_v61 = vmul.f32 %v869_v13, %v869_v13 }
 0x105   : > { %v439_v41 = vadd.f32 %v438_v39, %v830_v1  ;;  %v507_v43 = vadd.f32 %v506_v40, %v476_v6 }
 0x107   : > { %v440_v36 = vadd.f32 %v439_v41, %v843_v5  ;;  %v508_v44 = vadd.f32 %v507_v43, %v477_v10 }
 0x109   : > { %v509_v46 = vadd.f32 %v508_v44, %v478_v21  ;;  %v441_v47 = vadd.f32 %v440_v36, %v856_v9 }
 0x10b   : > { %v442_v48 = vadd.f32 %v441_v47, %v869_v13  ;;  %v510_v49 = vadd.f32 %v509_v46, %v479_v45 }
 0x10d   : > { %v443_v1 = vadd.f32 %v442_v48, %v880_v27  ;;  %v511_v51 = vadd.f32 %v510_v49, %v480_v61 }
 0x10f   : > { %v512_v5 = vadd.f32 %v511_v51, %v481_v50  ;;  %v444_v52 = vadd.f32 %v443_v1, %v887_v42 }
 0x111   : > { %v513_v9 = vadd.f32 %v512_v5, %v482_v53  ;;  %v445_v54 = vadd.f32 %v444_v52, %v380_v56 }
 0x113   : > { %v446_v57 = vrot.slane %v445_v54, 4  ;;  %v514_v59 = vadd.f32 %v513_v9, %v483_v55 }
 0x115   : > { %v447_v13 = vadd.f32 %v446_v57, %v445_v54  ;;  %v515_v60 = vrot.slane %v514_v59, 4 }
 0x117   : > { %v448_v63 = vrot.slane %v447_v13, 2  ;;  %v516_v0 = vadd.f32 %v515_v60, %v514_v59 }
 0x119   : > { %v449_v3 = vadd.f32 %v448_v63, %v447_v13  ;;  %v517_v7 = vrot.slane %v516_v0, 2 }
 0x11b   : > { %v450_v27 = vrot.slane %v449_v3, 1  ;;  %v518_v11 = vadd.f32 %v517_v7, %v516_v0 }
 0x11d   : > { %v519_v14 = vrot.slane %v518_v11, 1  ;;  %v451_v42 = vadd.f32 %v450_v27, %v449_v3 }
 0x11f   : > { %v520_v15 = vadd.f32 %v519_v14, %v518_v11 }
 0x121   : > { %v522_v56 = vsel %vm521_vm0, %v451_v42, %v520_v15 }
 0x122   : > { %523 = vst [vmem:[%s181_s15] sm:$0x3] %v522_v56 }
 0x123 PF: > { %s14_s12 = sadd.s32 1, %s702_s12  }
 0x124   : > { %p11_p4 = scmp.ge.s32.totalorder %s14_s12, 4  }
 0x126   :  { %13 = sbr.rel (!%p11_p4) target bundleno = 1 (0x1), region = 70 }

// kernel: bottleneck_forward.7
= control target key start
LH: loop header
LB: loop body
LE: loop exit
PB: predicated region body
PF: predicated region fallthrough
CT: control target
= control target key end

     0   :  { %s540_s12 = smov 0   ;;  %s741_s0 = inlined_call_operand.vmem [shape: f32[2,256,128], index: 0, kind: input, shape index: {}]   ;;  %s742_s1 = inlined_call_operand.vmem [shape: f32[2,128], index: 1, kind: input, shape index: {}]   ;;  %s743_s2 = inlined_call_operand.vmem [shape: f32[2,256,128], index: 2, kind: input, shape index: {}]   ;;  %s744_s3 = inlined_call_operand.vmem [shape: f32[2,256,128], index: 3, kind: output, shape index: {}]  }
   0x1 LB: > { %s486_s13 = sadd.s32 4294967295, %s518_s12   ;;  %p490_p0 = scmp.ge.s32.totalorder %s518_s12, 1  ;;  %s518_s12 = sphi %s540_s12, %s13_s12  }
   0x2   : > { %p147_p1 = scmp.lt.s32.totalorder %s518_s12, 3 }
   0x4   : > { %p148_p2 = pnand %p490_p0, %p147_p1 }
   0x5   : > { %p176_p3 = scmp.lt.s32.totalorder (!%p148_p2), %s486_s13, 1 }
   0x6   : > { %151 = sbr.rel (%p148_p2) target bundleno = 55 (0x37), region = 32 }
   0xb   : > { %s746_s13 = smov (!%p176_p3, %s486_s13), 1  ;;  %v551_v0 = vld [vmem:[%s742_s1] ss:$0 sm:$0xff]  ;;  %v570_v1 = vld [vmem:[%s742_s1 + $0x1] ss:$0 sm:$0xff] }
   0xc   : > { %s553_s16 = sshll.u32 %s746_s13, 8 }
   0xd   : > { %s559_s19 = scalar_lea.vmem %s741_s0, %s553_s16  ;;  %s565_s22 = scalar_lea.vmem %s743_s2, %s553_s16 }
   0xe   : > { %v193_v2 = vld [vmem:[%s559_s19] sm:$0xff]  ;;  %v194_v3 = vld [vmem:[%s559_s19 + $0x8] sm:$0xff]  ;;  %v195_v7 = vld [vmem:[%s559_s19 + $0x10] sm:$0xff]  ;;  %s601_s27 = scalar_lea.vmem %s744_s3, %s553_s16 }
   0xf   : > { %v226_v4 = vmul.f32 %v551_v0, %v193_v2  ;;  %v291_v5 = vld [vmem:[%s565_s22] sm:$0xff]  ;;  %v227_v6 = vmul.f32 %v551_v0, %v194_v3  ;;  %v292_v8 = vld [vmem:[%s565_s22 + $0x8] sm:$0xff]  ;;  %v228_v9 = vmul.f32 %v551_v0, %v195_v7  ;;  %v196_v10 = vld [vmem:[%s559_s19 + $0x18] sm:$0xff] }
  0x10   : > { %v197_v11 = vld [vmem:[%s559_s19 + $0x20] sm:$0xff]  ;;  %v293_v14 = vld [vmem:[%s565_s22 + $0x10] sm:$0xff]  ;;  %v229_v15 = vmul.f32 %v551_v0, %v196_v10  ;;  %v294_v16 = vld [vmem:[%s565_s22 + $0x18] sm:$0xff] }
  0x11   : > { %v259_v12 = vadd.f32 %v570_v1, %v226_v4  ;;  %v260_v13 = vadd.f32 %v570_v1, %v227_v6  ;;  %v230_v17 = vmul.f32 %v551_v0, %v197_v11  ;;  %v198_v18 = vld [vmem:[%s559_s19 + $0x28] sm:$0xff]  ;;  %v261_v19 = vadd.f32 %v570_v1, %v228_v9  ;;  %v295_v20 = vld [vmem:[%s565_s22 + $0x20] sm:$0xff]  ;;  %v199_v22 = vld [vmem:[%s559_s19 + $0x30] sm:$0xff] }
  0x12   : > { %v231_v21 = vmul.f32 %v551_v0, %v198_v18  ;;  %v200_v23 = vld [vmem:[%s559_s19 + $0x38] sm:$0xff]  ;;  %v262_v26 = vadd.f32 %v570_v1, %v229_v15  ;;  %v296_v28 = vld [vmem:[%s565_s22 + $0x28] sm:$0xff]  ;;  %v232_v31 = vmul.f32 %v551_v0, %v199_v22  ;;  %v201_v33 = vld [vmem:[%s559_s19 + $0x40] sm:$0xff] }
  0x13   : > { %v323_v24 = vadd.f32 %v291_v5, %v259_v12  ;;  %v324_v25 = vadd.f32 %v292_v8, %v260_v13  ;;  %v263_v27 = vadd.f32 %v570_v1, %v230_v17  ;;  %v325_v29 = vadd.f32 %v293_v14, %v261_v19  ;;  %v202_v34 = vld [vmem:[%s559_s19 + $0x48] sm:$0xff]  ;;  %v297_v39 = vld [vmem:[%s565_s22 + $0x30] sm:$0xff]  ;;  %v298_v40 = vld [vmem:[%s565_s22 + $0x38] sm:$0xff] }
  0x14   : > { %v264_v30 = vadd.f32 %v570_v1, %v231_v21  ;;  %v233_v32 = vmul.f32 %v551_v0, %v200_v23  ;;  %v326_v37 = vadd.f32 %v294_v16, %v262_v26  ;;  %v203_v41 = vld [vmem:[%s559_s19 + $0x50] sm:$0xff]  ;;  %v265_v44 = vadd.f32 %v570_v1, %v232_v31  ;;  %v204_v46 = vld [vmem:[%s559_s19 + $0x58] sm:$0xff]  ;;  %v205_v47 = vld [vmem:[%s559_s19 + $0x60] sm:$0xff] }
  0x15   : > { %v355_v35 = vmax.f32 %v323_v24, 0.0  ;;  %v356_v36 = vmax.f32 %v324_v25, 0.0  ;;  %v327_v38 = vadd.f32 %v295_v20, %v263_v27  ;;  %v357_v42 = vmax.f32 %v325_v29, 0.0  ;;  %v206_v52 = vld [vmem:[%s559_s19 + $0x68] sm:$0xff]  ;;  %v299_v56 = vld [vmem:[%s565_s22 + $0x40] sm:$0xff]  ;;  %v301_v61 = vld [vmem:[%s565_s22 + $0x50] sm:$0xff] }
  0x16   : > { %v328_v43 = vadd.f32 %v296_v28, %v264_v30  ;;  %v266_v45 = vadd.f32 %v570_v1, %v233_v32  ;;  %v358_v48 = vmax.f32 %v326_v37, 0.0  ;;  %v234_v50 = vmul.f32 %v551_v0, %v201_v33  ;;  %v300_v57 = vld [vmem:[%s565_s22 + $0x48] sm:$0xff]  ;;  %v207_v2 = vld [vmem:[%s559_s19 + $0x70] sm:$0xff]  ;;  %v208_v3 = vld [vmem:[%s559_s19 + $0x78] sm:$0xff] }
  0x17   : > { %387 = vst [vmem:[%s601_s27] sm:$0xff] %v355_v35  ;;  %v359_v49 = vmax.f32 %v327_v38, 0.0  ;;  %v235_v51 = vmul.f32 %v551_v0, %v202_v34  ;;  %v329_v54 = vadd.f32 %v297_v39, %v265_v44  ;;  %v236_v58 = vmul.f32 %v551_v0, %v203_v41  ;;  %v302_v7 = vld [vmem:[%s565_s22 + $0x58] sm:$0xff]  ;;  %v303_v8 = vld [vmem:[%s565_s22 + $0x60] sm:$0xff]  ;;  %v304_v14 = vld [vmem:[%s565_s22 + $0x68] sm:$0xff] }
  0x18   : > { %388 = vst [vmem:[%s601_s27 + $0x8] sm:$0xff] %v356_v36  ;;  %v360_v53 = vmax.f32 %v328_v43, 0.0  ;;  %v330_v55 = vadd.f32 %v298_v40, %v266_v45  ;;  %v267_v59 = vadd.f32 %v570_v1, %v234_v50  ;;  %v237_v62 = vmul.f32 %v551_v0, %v204_v46  ;;  %v209_v19 = vld [vmem:[%s559_s19 + $0x80] sm:$0xff]  ;;  %v210_v20 = vld [vmem:[%s559_s19 + $0x88] sm:$0xff]  ;;  %v305_v25 = vld [vmem:[%s565_s22 + $0x70] sm:$0xff] }
  0x19   : > { %389 = vst [vmem:[%s601_s27 + $0x10] sm:$0xff] %v357_v42  ;;  %v268_v60 = vadd.f32 %v570_v1, %v235_v51  ;;  %v238_v63 = vmul.f32 %v551_v0, %v205_v47  ;;  %v361_v4 = vmax.f32 %v329_v54, 0.0  ;;  %v269_v6 = vadd.f32 %v570_v1, %v236_v58  ;;  %v306_v26 = vld [vmem:[%s565_s22 + $0x78] sm:$0xff]  ;;  %v211_v27 = vld [vmem:[%s559_s19 + $0x90] sm:$0xff]  ;;  %v213_v33 = vld [vmem:[%s559_s19 + $0xa0] sm:$0xff] }
  0x1a   : > { %390 = vst [vmem:[%s601_s27 + $0x18] sm:$0xff] %v358_v48  ;;  %v362_v5 = vmax.f32 %v330_v55, 0.0  ;;  %v239_v9 = vmul.f32 %v551_v0, %v206_v52  ;;  %v331_v10 = vadd.f32 %v299_v56, %v267_v59  ;;  %v270_v12 = vadd.f32 %v570_v1, %v237_v62  ;;  %v212_v32 = vld [vmem:[%s559_s19 + $0x98] sm:$0xff]  ;;  %v214_v38 = vld [vmem:[%s559_s19 + $0xa8] sm:$0xff]  ;;  %v307_v42 = vld [vmem:[%s565_s22 + $0x80] sm:$0xff] }
  0x1b   : > { %391 = vst [vmem:[%s601_s27 + $0x20] sm:$0xff] %v359_v49  ;;  %v332_v11 = vadd.f32 %v300_v57, %v268_v60  ;;  %v271_v13 = vadd.f32 %v570_v1, %v238_v63  ;;  %v333_v15 = vadd.f32 %v301_v61, %v269_v6  ;;  %v240_v17 = vmul.f32 %v551_v0, %v207_v2  ;;  %v308_v43 = vld [vmem:[%s565_s22 + $0x88] sm:$0xff]  ;;  %v309_v47 = vld [vmem:[%s565_s22 + $0x90] sm:$0xff]  ;;  %v216_v51 = vld [vmem:[%s559_s19 + $0xb8] sm:$0xff] }
  0x1c   : > { %392 = vst [vmem:[%s601_s27 + $0x28] sm:$0xff] %v360_v53  ;;  %v272_v16 = vadd.f32 %v570_v1, %v239_v9  ;;  %v241_v18 = vmul.f32 %v551_v0, %v208_v3  ;;  %v363_v21 = vmax.f32 %v331_v10, 0.0  ;;  %v334_v23 = vadd.f32 %v302_v7, %v270_v12  ;;  %v215_v50 = vld [vmem:[%s559_s19 + $0xb0] sm:$0xff]  ;;  %v310_v55 = vld [vmem:[%s565_s22 + $0x98] sm:$0xff]  ;;  %v311_v56 = vld [vmem:[%s565_s22 + $0xa0] sm:$0xff] }
  0x1d   : > { %393 = vst [vmem:[%s601_s27 + $0x30] sm:$0xff] %v361_v4  ;;  %v364_v22 = vmax.f32 %v332_v11, 0.0  ;;  %v335_v24 = vadd.f32 %v303_v8, %v271_v13  ;;  %v365_v28 = vmax.f32 %v333_v15, 0.0  ;;  %v273_v30 = vadd.f32 %v570_v1, %v240_v17  ;;  %v312_v62 = vld [vmem:[%s565_s22 + $0xa8] sm:$0xff]  ;;  %v313_v11 = vld [vmem:[%s565_s22 + $0xb0] sm:$0xff]  ;;  %v314_v12 = vld [vmem:[%s565_s22 + $0xb8] sm:$0xff] }
  0x1e   : > { %394 = vst [vmem:[%s601_s27 + $0x38] sm:$0xff] %v362_v5  ;;  %v336_v29 = vadd.f32 %v304_v14, %v272_v16  ;;  %v274_v31 = vadd.f32 %v570_v1, %v241_v18  ;;  %v366_v34 = vmax.f32 %v334_v23, 0.0  ;;  %v242_v36 = vmul.f32 %v551_v0, %v209_v19  ;;  %v217_v5 = vld [vmem:[%s559_s19 + $0xc0] sm:$0xff]  ;;  %v218_v6 = vld [vmem:[%s559_s19 + $0xc8] sm:$0xff]  ;;  %v219_v13 = vld [vmem:[%s559_s19 + $0xd0] sm:$0xff] }
  0x1f   : > { %395 = vst [vmem:[%s601_s27 + $0x40] sm:$0xff] %v363_v21  ;;  %v367_v35 = vmax.f32 %v335_v24, 0.0  ;;  %v243_v37 = vmul.f32 %v551_v0, %v210_v20  ;;  %v337_v40 = vadd.f32 %v305_v25, %v273_v30  ;;  %v244_v44 = vmul.f32 %v551_v0, %v211_v27  ;;  %v220_v18 = vld [vmem:[%s559_s19 + $0xd8] sm:$0xff]  ;;  %v221_v19 = vld [vmem:[%s559_s19 + $0xe0] sm:$0xff]  ;;  %v222_v24 = vld [vmem:[%s559_s19 + $0xe8] sm:$0xff] }
  0x20   : > { %396 = vst [vmem:[%s601_s27 + $0x48] sm:$0xff] %v364_v22  ;;  %v368_v39 = vmax.f32 %v336_v29, 0.0  ;;  %v338_v41 = vadd.f32 %v306_v26, %v274_v31  ;;  %v275_v45 = vadd.f32 %v570_v1, %v242_v36  ;;  %v245_v48 = vmul.f32 %v551_v0, %v212_v32  ;;  %v316_v29 = vld [vmem:[%s565_s22 + $0xc8] sm:$0xff]  ;;  %v223_v36 = vld [vmem:[%s559_s19 + $0xf0] sm:$0xff] }
  0x21   : > { %397 = vst [vmem:[%s601_s27 + $0x50] sm:$0xff] %v365_v28  ;;  %v276_v46 = vadd.f32 %v570_v1, %v243_v37  ;;  %v246_v49 = vmul.f32 %v551_v0, %v213_v33  ;;  %v369_v52 = vmax.f32 %v337_v40, 0.0  ;;  %v277_v54 = vadd.f32 %v570_v1, %v244_v44  ;;  %v315_v28 = vld [vmem:[%s565_s22 + $0xc0] sm:$0xff]  ;;  %v317_v33 = vld [vmem:[%s565_s22 + $0xd0] sm:$0xff]  ;;  %v224_v37 = vld [vmem:[%s559_s19 + $0xf8] sm:$0xff] }
  0x22   : > { %398 = vst [vmem:[%s601_s27 + $0x58] sm:$0xff] %v366_v34  ;;  %v370_v53 = vmax.f32 %v338_v41, 0.0  ;;  %v247_v57 = vmul.f32 %v551_v0, %v214_v38  ;;  %v339_v58 = vadd.f32 %v307_v42, %v275_v45  ;;  %v278_v60 = vadd.f32 %v570_v1, %v245_v48  ;;  %v318_v41 = vld [vmem:[%s565_s22 + $0xd8] sm:$0xff]  ;;  %v319_v42 = vld [vmem:[%s565_s22 + $0xe0] sm:$0xff]  ;;  %v320_v48 = vld [vmem:[%s565_s22 + $0xe8] sm:$0xff] }
  0x23   : > { %399 = vst [vmem:[%s601_s27 + $0x60] sm:$0xff] %v367_v35  ;;  %v340_v59 = vadd.f32 %v308_v43, %v276_v46  ;;  %v279_v61 = vadd.f32 %v570_v1, %v246_v49  ;;  %v341_v63 = vadd.f32 %v309_v47, %v277_v54  ;;  %v248_v3 = vmul.f32 %v551_v0, %v215_v50 }
  0x24   : > { %400 = vst [vmem:[%s601_s27 + $0x68] sm:$0xff] %v368_v39  ;;  %v280_v2 = vadd.f32 %v570_v1, %v247_v57  ;;  %v249_v4 = vmul.f32 %v551_v0, %v216_v51  ;;  %v371_v7 = vmax.f32 %v339_v58, 0.0  ;;  %v342_v9 = vadd.f32 %v310_v55, %v278_v60  ;;  %v321_v57 = vld [vmem:[%s565_s22 + $0xf0] sm:$0xff]  ;;  %v322_v58 = vld [vmem:[%s565_s22 + $0xf8] sm:$0xff] }
  0x25   : > { %401 = vst [vmem:[%s601_s27 + $0x70] sm:$0xff] %v369_v52  ;;  %v372_v8 = vmax.f32 %v340_v59, 0.0  ;;  %v343_v10 = vadd.f32 %v311_v56, %v279_v61  ;;  %v373_v14 = vmax.f32 %v341_v63, 0.0  ;;  %v281_v16 = vadd.f32 %v570_v1, %v248_v3 }
  0x26   : > { %402 = vst [vmem:[%s601_s27 + $0x78] sm:$0xff] %v370_v53  ;;  %v344_v15 = vadd.f32 %v312_v62, %v280_v2  ;;  %v282_v17 = vadd.f32 %v570_v1, %v249_v4  ;;  %v374_v20 = vmax.f32 %v342_v9, 0.0  ;;  %v250_v22 = vmul.f32 %v551_v0, %v217_v5 }
  0x27   : > { %403 = vst [vmem:[%s601_s27 + $0x80] sm:$0xff] %v371_v7  ;;  %v375_v21 = vmax.f32 %v343_v10, 0.0  ;;  %v251_v23 = vmul.f32 %v551_v0, %v218_v6  ;;  %v345_v26 = vadd.f32 %v313_v11, %v281_v16  ;;  %v252_v30 = vmul.f32 %v551_v0, %v219_v13 }
  0x28   : > { %404 = vst [vmem:[%s601_s27 + $0x88] sm:$0xff] %v372_v8  ;;  %v376_v25 = vmax.f32 %v344_v15, 0.0  ;;  %v346_v27 = vadd.f32 %v314_v12, %v282_v17  ;;  %v283_v31 = vadd.f32 %v570_v1, %v250_v22  ;;  %v253_v34 = vmul.f32 %v551_v0, %v220_v18 }
  0x29   : > { %405 = vst [vmem:[%s601_s27 + $0x90] sm:$0xff] %v373_v14  ;;  %v284_v32 = vadd.f32 %v570_v1, %v251_v23  ;;  %v254_v35 = vmul.f32 %v551_v0, %v221_v19  ;;  %v377_v38 = vmax.f32 %v345_v26, 0.0  ;;  %v285_v40 = vadd.f32 %v570_v1, %v252_v30 }
  0x2a   : > { %406 = vst [vmem:[%s601_s27 + $0x98] sm:$0xff] %v374_v20  ;;  %v378_v39 = vmax.f32 %v346_v27, 0.0  ;;  %v255_v43 = vmul.f32 %v551_v0, %v222_v24  ;;  %v347_v44 = vadd.f32 %v315_v28, %v283_v31  ;;  %v286_v46 = vadd.f32 %v570_v1, %v253_v34 }
  0x2b   : > { %407 = vst [vmem:[%s601_s27 + $0xa0] sm:$0xff] %v375_v21  ;;  %v348_v45 = vadd.f32 %v316_v29, %v284_v32  ;;  %v287_v47 = vadd.f32 %v570_v1, %v254_v35  ;;  %v349_v49 = vadd.f32 %v317_v33, %v285_v40  ;;  %v256_v51 = vmul.f32 %v551_v0, %v223_v36 }
  0x2c   : > { %408 = vst [vmem:[%s601_s27 + $0xa8] sm:$0xff] %v376_v25  ;;  %v288_v50 = vadd.f32 %v570_v1, %v255_v43  ;;  %v257_v52 = vmul.f32 %v551_v0, %v224_v37  ;;  %v379_v53 = vmax.f32 %v347_v44, 0.0  ;;  %v350_v55 = vadd.f32 %v318_v41, %v286_v46 }
  0x2d   : > { %409 = vst [vmem:[%s601_s27 + $0xb0] sm:$0xff] %v377_v38  ;;  %v380_v54 = vmax.f32 %v348_v45, 0.0  ;;  %v351_v56 = vadd.f32 %v319_v42, %v287_v47  ;;  %v381_v59 = vmax.f32 %v349_v49, 0.0  ;;  %v289_v61 = vadd.f32 %v570_v1, %v256_v51 }
  0x2e   : > { %410 = vst [vmem:[%s601_s27 + $0xb8] sm:$0xff] %v378_v39  ;;  %v352_v60 = vadd.f32 %v320_v48, %v288_v50  ;;  %v290_v0 = vadd.f32 %v570_v1, %v257_v52  ;;  %v382_v62 = vmax.f32 %v350_v55, 0.0 }
  0x2f   : > { %411 = vst [vmem:[%s601_s27 + $0xc0] sm:$0xff] %v379_v53  ;;  %v383_v63 = vmax.f32 %v351_v56, 0.0  ;;  %v353_v3 = vadd.f32 %v321_v57, %v289_v61 }
  0x30   : > { %412 = vst [vmem:[%s601_s27 + $0xc8] sm:$0xff] %v380_v54  ;;  %v384_v2 = vmax.f32 %v352_v60, 0.0  ;;  %v354_v4 = vadd.f32 %v322_v58, %v290_v0 }
  0x31   : > { %413 = vst [vmem:[%s601_s27 + $0xd0] sm:$0xff] %v381_v59  ;;  %v385_v5 = vmax.f32 %v353_v3, 0.0 }
  0x32   : > { %414 = vst [vmem:[%s601_s27 + $0xd8] sm:$0xff] %v382_v62  ;;  %v386_v6 = vmax.f32 %v354_v4, 0.0 }
  0x33   : > { %415 = vst [vmem:[%s601_s27 + $0xe0] sm:$0xff] %v383_v63 }
  0x34   : > { %416 = vst [vmem:[%s601_s27 + $0xe8] sm:$0xff] %v384_v2 }
  0x35   : > { %417 = vst [vmem:[%s601_s27 + $0xf0] sm:$0xff] %v385_v5 }
  0x36   : > { %418 = vst [vmem:[%s601_s27 + $0xf8] sm:$0xff] %v386_v6 }
  0x37 PF: > { %s13_s12 = sadd.s32 1, %s518_s12  }
  0x38   : > { %p10_p4 = scmp.ge.s32.totalorder %s13_s12, 4  }
  0x3a   :  { %12 = sbr.rel (!%p10_p4) target bundleno = 1 (0x1), region = 65 }

// kernel: bottleneck_forward.6
= control target key start
LH: loop header
LB: loop body
LE: loop exit
PB: predicated region body
PF: predicated region fallthrough
CT: control target
= control target key end

     0   :  { %s858_s15 = smov 0   ;;  %s1166_s0 = inlined_call_operand.vmem [shape: f32[2,256,128], index: 0, kind: input, shape index: {}]   ;;  %s1167_s1 = inlined_call_operand.vmem [shape: f32[2,128], index: 1, kind: input, shape index: {}]   ;;  %s1168_s2 = inlined_call_operand.vmem [shape: bf16[128,128], index: 2, kind: input, shape index: {}]   ;;  %s1169_s3 = inlined_call_operand.vmem [shape: f32[2,256,128], index: 3, kind: output, shape index: {0}]   ;;  %s1170_s4 = inlined_call_operand.vmem [shape: f32[2,2,128], index: 4, kind: output, shape index: {1}]  }
   0x1 LB: > { %s737_s16 = sadd.s32 4294967295, %s831_s15   ;;  %p741_p0 = scmp.ge.s32.totalorder %s831_s15, 1  ;;  %s831_s15 = sphi %s858_s15, %s15_s15  }
   0x2   : > { %p165_p1 = scmp.lt.s32.totalorder %s831_s15, 3 }
   0x4   : > { %p166_p2 = pnand %p741_p0, %p165_p1 }
   0x5   : > { %p195_p3 = scmp.lt.s32.totalorder (!%p166_p2), %s737_s16, 1 }
   0x6   : > { %169 = sbr.rel (%p166_p2) target bundleno = 291 (0x123), region = 32 }
   0xb   : > { %v790_v0 = vld [vmem:[%s1168_s2 + $0x38] sm:$0xff]  ;;  %v789_v1 = vld [vmem:[%s1168_s2 + $0x30] sm:$0xff]  ;;  %s1172_s16 = smov (!%p195_p3, %s737_s16), 1  ;;  %v788_v2 = vld [vmem:[%s1168_s2 + $0x28] sm:$0xff]  ;;  %vm648_vm0 = vcmask 1040384  }
   0xc   : > { %421 = vmatpush.bf16.msra.mxu0 %v790_v0  ;;  %791 = vmatpush.bf16.msra.mxu1 %v790_v0  ;;  %s781_s23 = sshll.u32 %s1172_s16, 8  ;;  %v787_v3 = vld [vmem:[%s1168_s2 + $0x20] sm:$0xff]  ;;  %v786_v4 = vld [vmem:[%s1168_s2 + $0x18] sm:$0xff]  ;;  %v785_v17 = vld [vmem:[%s1168_s2 + $0x10] sm:$0xff]  ;;  %s746_s20 = sshll.u32 %s1172_s16, 1 }
   0xd   : > { %792 = vmatpush.bf16.msra.mxu2 %v790_v0  ;;  %793 = vmatpush.bf16.msra.mxu3 %v790_v0  ;;  %s886_s28 = scalar_lea.vmem %s1166_s0, %s781_s23  ;;  %v895_v6 = vld [vmem:[%s1167_s1] ss:$0 sm:$0xff]  ;;  %v907_v14 = vld [vmem:[%s1167_s1 + $0x1] ss:$0 sm:$0xff]  ;;  %v784_v24 = vld [vmem:[%s1168_s2 + $0x8] sm:$0xff]  ;;  %s1011_s19 = scalar_lea.vmem %s1169_s3, %s781_s23 }
   0xe   : > { %v211_v5 = vld [vmem:[%s886_s28] sm:$0xff]  ;;  %v212_v7 = vld [vmem:[%s886_s28 + $0x8] sm:$0xff]  ;;  %v213_v40 = vld [vmem:[%s886_s28 + $0x10] sm:$0xff]  ;;  %s208_s23 = scalar_lea.vmem %s1170_s4, %s746_s20 }
   0xf   : > { %v219_v8 = vld [vmem:[%s886_s28 + $0x40] sm:$0xff]  ;;  %v220_v9 = vld [vmem:[%s886_s28 + $0x48] sm:$0xff]  ;;  %v244_v12 = vmul.f32 %v895_v6, %v211_v5  ;;  %v245_v13 = vmul.f32 %v895_v6, %v212_v7  ;;  %v214_v42 = vld [vmem:[%s886_s28 + $0x18] sm:$0xff]  ;;  %v246_v50 = vmul.f32 %v895_v6, %v213_v40 }
  0x10   : > { %422 = vmatpush.bf16.msra.mxu0 %v789_v1  ;;  %794 = vmatpush.bf16.msra.mxu1 %v789_v1  ;;  %v227_v10 = vld [vmem:[%s886_s28 + $0x80] sm:$0xff]  ;;  %v228_v11 = vld [vmem:[%s886_s28 + $0x88] sm:$0xff]  ;;  %v252_v15 = vmul.f32 %v895_v6, %v219_v8  ;;  %v253_v16 = vmul.f32 %v895_v6, %v220_v9  ;;  %v221_v44 = vld [vmem:[%s886_s28 + $0x50] sm:$0xff]  ;;  %v247_v52 = vmul.f32 %v895_v6, %v214_v42 }
  0x11   : > { %795 = vmatpush.bf16.msra.mxu2 %v789_v1  ;;  %796 = vmatpush.bf16.msra.mxu3 %v789_v1  ;;  %v260_v18 = vmul.f32 %v895_v6, %v227_v10  ;;  %v261_v19 = vmul.f32 %v895_v6, %v228_v11  ;;  %v277_v20 = vadd.f32 %v907_v14, %v244_v12  ;;  %v783_v31 = vld [vmem:[%s1168_s2] sm:$0xff]  ;;  %v236_v35 = vld [vmem:[%s886_s28 + $0xc8] sm:$0xff]  ;;  %v222_v45 = vld [vmem:[%s886_s28 + $0x58] sm:$0xff] }
  0x12   : > { %v278_v21 = vadd.f32 %v907_v14, %v245_v13  ;;  %v285_v22 = vadd.f32 %v907_v14, %v252_v15  ;;  %v286_v23 = vadd.f32 %v907_v14, %v253_v16  ;;  %v235_v34 = vld [vmem:[%s886_s28 + $0xc0] sm:$0xff]  ;;  %v269_v37 = vmul.f32 %v895_v6, %v236_v35  ;;  %v229_v47 = vld [vmem:[%s886_s28 + $0x90] sm:$0xff]  ;;  %v230_v48 = vld [vmem:[%s886_s28 + $0x98] sm:$0xff] }
  0x13   : > { %v293_v25 = vadd.f32 %v907_v14, %v260_v18  ;;  %v294_v26 = vadd.f32 %v907_v14, %v261_v19  ;;  %v309_v27 = vmax.f32 %v277_v20, 0.0  ;;  %v268_v36 = vmul.f32 %v895_v6, %v235_v34  ;;  %v237_v7 = vld [vmem:[%s886_s28 + $0xd0] sm:$0xff]  ;;  %v238_v8 = vld [vmem:[%s886_s28 + $0xd8] sm:$0xff]  ;;  %v215_v13 = vld [vmem:[%s886_s28 + $0x20] sm:$0xff] }
  0x14   : > { %423 = vmatpush.bf16.msra.mxu0 %v788_v2  ;;  %797 = vmatpush.bf16.msra.mxu1 %v788_v2  ;;  %v310_v28 = vmax.f32 %v278_v21, 0.0  ;;  %v317_v29 = vmax.f32 %v285_v22, 0.0  ;;  %v318_v30 = vmax.f32 %v286_v23, 0.0  ;;  %v302_v46 = vadd.f32 %v907_v14, %v269_v37  ;;  %v216_v16 = vld [vmem:[%s886_s28 + $0x28] sm:$0xff]  ;;  %v223_v18 = vld [vmem:[%s886_s28 + $0x60] sm:$0xff] }
  0x15   : > { %798 = vmatpush.bf16.msra.mxu2 %v788_v2  ;;  %799 = vmatpush.bf16.msra.mxu3 %v788_v2  ;;  %v325_v32 = vmax.f32 %v293_v25, 0.0  ;;  %v326_v33 = vmax.f32 %v294_v26, 0.0  ;;  %v301_v41 = vadd.f32 %v907_v14, %v268_v36  ;;  %v254_v53 = vmul.f32 %v895_v6, %v221_v44  ;;  %v224_v19 = vld [vmem:[%s886_s28 + $0x68] sm:$0xff]  ;;  %v231_v21 = vld [vmem:[%s886_s28 + $0xa0] sm:$0xff] }
  0x16   : > { %v341_v38 = vpack.c.bf16 %v310_v28, %v309_v27  ;;  %v345_v39 = vpack.c.bf16 %v318_v30, %v317_v29  ;;  %v334_v51 = vmax.f32 %v302_v46, 0.0  ;;  %v255_v54 = vmul.f32 %v895_v6, %v222_v45  ;;  %v232_v22 = vld [vmem:[%s886_s28 + $0xa8] sm:$0xff] }
  0x17   : > { %v349_v43 = vpack.c.bf16 %v326_v33, %v325_v32  ;;  %v333_v49 = vmax.f32 %v301_v41, 0.0  ;;  %v262_v55 = vmul.f32 %v895_v6, %v229_v47  ;;  %v263_v56 = vmul.f32 %v895_v6, %v230_v48  ;;  %v239_v32 = vld [vmem:[%s886_s28 + $0xe0] sm:$0xff]  ;;  %v240_v33 = vld [vmem:[%s886_s28 + $0xe8] sm:$0xff] }
  0x18   : > { %424 = vmatpush.bf16.msra.mxu0 %v787_v3  ;;  %800 = vmatpush.bf16.msra.mxu1 %v787_v3  ;;  %v279_v58 = vadd.f32 %v907_v14, %v246_v50  ;;  %v280_v59 = vadd.f32 %v907_v14, %v247_v52  ;;  %v287_v60 = vadd.f32 %v907_v14, %v254_v53 }
  0x19   : > { %801 = vmatpush.bf16.msra.mxu2 %v787_v3  ;;  %802 = vmatpush.bf16.msra.mxu3 %v787_v3  ;;  %v353_v57 = vpack.c.bf16 %v334_v51, %v333_v49  ;;  %v288_v61 = vadd.f32 %v907_v14, %v255_v54  ;;  %v295_v62 = vadd.f32 %v907_v14, %v262_v55  ;;  %v217_v54 = vld [vmem:[%s886_s28 + $0x30] sm:$0xff]  ;;  %v218_v55 = vld [vmem:[%s886_s28 + $0x38] sm:$0xff] }
  0x1a   : > { %v296_v63 = vadd.f32 %v907_v14, %v263_v56  ;;  %v311_v0 = vmax.f32 %v279_v58, 0.0  ;;  %v312_v1 = vmax.f32 %v280_v59, 0.0  ;;  %v319_v2 = vmax.f32 %v287_v60, 0.0  ;;  %v226_v58 = vld [vmem:[%s886_s28 + $0x78] sm:$0xff]  ;;  %v233_v59 = vld [vmem:[%s886_s28 + $0xb0] sm:$0xff] }
  0x1b   : > { %v320_v3 = vmax.f32 %v288_v61, 0.0  ;;  %v270_v9 = vmul.f32 %v895_v6, %v237_v7  ;;  %v271_v10 = vmul.f32 %v895_v6, %v238_v8  ;;  %v249_v26 = vmul.f32 %v895_v6, %v216_v16  ;;  %v234_v60 = vld [vmem:[%s886_s28 + $0xb8] sm:$0xff] }
  0x1c   : > { %425 = vmatpush.bf16.msra.mxu0 %v786_v4  ;;  %803 = vmatpush.bf16.msra.mxu1 %v786_v4  ;;  %v328_v5 = vmax.f32 %v296_v63, 0.0  ;;  %v342_v11 = vpack.c.bf16 %v312_v1, %v311_v0  ;;  %v256_v27 = vmul.f32 %v895_v6, %v223_v18  ;;  %v257_v28 = vmul.f32 %v895_v6, %v224_v19 }
  0x1d   : > { %804 = vmatpush.bf16.msra.mxu2 %v786_v4  ;;  %805 = vmatpush.bf16.msra.mxu3 %v786_v4  ;;  %v327_v4 = vmax.f32 %v295_v62, 0.0  ;;  %v346_v12 = vpack.c.bf16 %v320_v3, %v319_v2  ;;  %v303_v15 = vadd.f32 %v907_v14, %v270_v9  ;;  %v304_v20 = vadd.f32 %v907_v14, %v271_v10  ;;  %v241_v2 = vld [vmem:[%s886_s28 + $0xf0] sm:$0xff]  ;;  %v242_v3 = vld [vmem:[%s886_s28 + $0xf8] sm:$0xff] }
  0x1e   : > { %v264_v29 = vmul.f32 %v895_v6, %v231_v21  ;;  %v265_v30 = vmul.f32 %v895_v6, %v232_v22  ;;  %v272_v34 = vmul.f32 %v895_v6, %v239_v32  ;;  %v273_v35 = vmul.f32 %v895_v6, %v240_v33 }
  0x1f   : > { %v335_v23 = vmax.f32 %v303_v15, 0.0  ;;  %v336_v25 = vmax.f32 %v304_v20, 0.0  ;;  %v282_v37 = vadd.f32 %v907_v14, %v249_v26  ;;  %v250_v61 = vmul.f32 %v895_v6, %v217_v54 }
  0x20   : > { %426 = vmatpush.bf16.msra.mxu0 %v785_v17  ;;  %806 = vmatpush.bf16.msra.mxu1 %v785_v17  ;;  %v297_v40 = vadd.f32 %v907_v14, %v264_v29  ;;  %v298_v41 = vadd.f32 %v907_v14, %v265_v30  ;;  %v305_v42 = vadd.f32 %v907_v14, %v272_v34 }
  0x21   : > { %807 = vmatpush.bf16.msra.mxu2 %v785_v17  ;;  %808 = vmatpush.bf16.msra.mxu3 %v785_v17  ;;  %v350_v17 = vpack.c.bf16 %v328_v5, %v327_v4  ;;  %v314_v45 = vmax.f32 %v282_v37, 0.0  ;;  %v251_v63 = vmul.f32 %v895_v6, %v218_v55  ;;  %v259_v1 = vmul.f32 %v895_v6, %v226_v58 }
  0x22   : > { %v329_v48 = vmax.f32 %v297_v40, 0.0  ;;  %v330_v49 = vmax.f32 %v298_v41, 0.0  ;;  %v337_v50 = vmax.f32 %v305_v42, 0.0  ;;  %v266_v4 = vmul.f32 %v895_v6, %v233_v59 }
  0x23   : > { %v267_v5 = vmul.f32 %v895_v6, %v234_v60  ;;  %v274_v7 = vmul.f32 %v895_v6, %v241_v2  ;;  %v275_v8 = vmul.f32 %v895_v6, %v242_v3  ;;  %v283_v9 = vadd.f32 %v907_v14, %v250_v61 }
  0x24   : > { %427 = vmatpush.bf16.msra.mxu0 %v784_v24  ;;  %809 = vmatpush.bf16.msra.mxu1 %v784_v24  ;;  %v351_v56 = vpack.c.bf16 %v330_v49, %v329_v48  ;;  %v284_v10 = vadd.f32 %v907_v14, %v251_v63 }
  0x25   : > { %810 = vmatpush.bf16.msra.mxu2 %v784_v24  ;;  %811 = vmatpush.bf16.msra.mxu3 %v784_v24  ;;  %v248_v24 = vmul.f32 %v895_v6, %v215_v13  ;;  %v299_v13 = vadd.f32 %v907_v14, %v266_v4  ;;  %v300_v15 = vadd.f32 %v907_v14, %v267_v5  ;;  %v315_v18 = vmax.f32 %v283_v9, 0.0 }
  0x26   : > { %v307_v16 = vadd.f32 %v907_v14, %v274_v7  ;;  %v316_v19 = vmax.f32 %v284_v10, 0.0 }
  0x27   : > { %v281_v36 = vadd.f32 %v907_v14, %v248_v24  ;;  %v331_v21 = vmax.f32 %v299_v13, 0.0  ;;  %v332_v22 = vmax.f32 %v300_v15, 0.0 }
  0x28   : > { %428 = vmatpush.bf16.msra.mxu0 %v783_v31  ;;  %812 = vmatpush.bf16.msra.mxu1 %v783_v31 }
  0x29   : > { %813 = vmatpush.bf16.msra.mxu2 %v783_v31  ;;  %814 = vmatpush.bf16.msra.mxu3 %v783_v31  ;;  %v354_v31 = vpack.c.bf16 %v336_v25, %v335_v23  ;;  %v313_v44 = vmax.f32 %v281_v36, 0.0  ;;  %v339_v23 = vmax.f32 %v307_v16, 0.0  ;;  %v344_v25 = vpack.c.bf16 %v316_v19, %v315_v18 }
  0x2b   : > { %429 = vmatmul.bf16.vlgmr.msra.gmra.mxu0 %v341_v38  ;;  %449 = vmatmul.bf16.vlgmr.msra.gmra.mxu1 %v345_v39  ;;  %v289_v38 = vadd.f32 %v907_v14, %v256_v27  ;;  %v290_v39 = vadd.f32 %v907_v14, %v257_v28  ;;  %v343_v52 = vpack.c.bf16 %v314_v45, %v313_v44 }
  0x2c   : > { %469 = vmatmul.bf16.vlgmr.msra.gmra.mxu2 %v349_v43  ;;  %489 = vmatmul.bf16.vlgmr.msra.gmra.mxu3 %v353_v57  ;;  %v306_v43 = vadd.f32 %v907_v14, %v273_v35  ;;  %v225_v57 = vld [vmem:[%s886_s28 + $0x70] sm:$0xff]  ;;  %v352_v27 = vpack.c.bf16 %v332_v22, %v331_v21 }
  0x2d   : > { %v321_v46 = vmax.f32 %v289_v38, 0.0  ;;  %v322_v47 = vmax.f32 %v290_v39, 0.0  ;;  %v258_v0 = vmul.f32 %v895_v6, %v225_v57 }
  0x2e   : > { %v338_v51 = vmax.f32 %v306_v43, 0.0 }
  0x2f   : > { %v347_v53 = vpack.c.bf16 %v322_v47, %v321_v46 }
  0x30   : > { %v355_v62 = vpack.c.bf16 %v338_v51, %v337_v50 }
  0x3b   : > { %434 = vmatmul.bf16.gmra.mxu0 %v342_v11  ;;  %454 = vmatmul.bf16.gmra.mxu1 %v346_v12  ;;  %v291_v11 = vadd.f32 %v907_v14, %v258_v0  ;;  %v292_v12 = vadd.f32 %v907_v14, %v259_v1 }
  0x3c   : > { %474 = vmatmul.bf16.gmra.mxu2 %v350_v17  ;;  %494 = vmatmul.bf16.gmra.mxu3 %v354_v31  ;;  %v308_v17 = vadd.f32 %v907_v14, %v275_v8 }
  0x3d   : > { %v323_v6 = vmax.f32 %v291_v11, 0.0  ;;  %v324_v20 = vmax.f32 %v292_v12, 0.0 }
  0x3e   : > { %v340_v24 = vmax.f32 %v308_v17, 0.0 }
  0x3f   : > { %v348_v26 = vpack.c.bf16 %v324_v20, %v323_v6 }
  0x40   : > { %v356_v28 = vpack.c.bf16 %v340_v24, %v339_v23 }
  0x4b   : > { %439 = vmatmul.bf16.gmra.mxu0 %v343_v52  ;;  %459 = vmatmul.bf16.gmra.mxu1 %v347_v53 }
  0x4c   : > { %479 = vmatmul.bf16.gmra.mxu2 %v351_v56  ;;  %499 = vmatmul.bf16.gmra.mxu3 %v355_v62 }
  0x5b   : > { %444 = vmatmul.bf16.gmra.mxu0 %v344_v25  ;;  %464 = vmatmul.bf16.gmra.mxu1 %v348_v26 }
  0x5c   : > { %484 = vmatmul.bf16.gmra.mxu2 %v352_v27  ;;  %504 = vmatmul.bf16.gmra.mxu3 %v356_v28 }
  0xa8   : > { %v430_v14 = vpop.f32.mrf.mxu0  ;;  %v1013_v29 = vpop.f32.mrf.mxu1 }
  0xa9   : > { %510 = vst [vmem:[%s1011_s19] sm:$0xff] %v430_v14  ;;  %v579_v51 = vmul.f32 %v430_v14, %v430_v14  ;;  %v587_v17 = vmul.f32 %v1013_v29, %v1013_v29 }
  0xaa   : > { %518 = vst [vmem:[%s1011_s19 + $0x40] sm:$0xff] %v1013_v29 }
  0xaf   : > { %v1018_v30 = vpop.f32.mrf.mxu2  ;;  %v1025_v33 = vpop.f32.mrf.mxu3 }
  0xb0   : > { %v432_v31 = vpop.f32.mrf.mxu0  ;;  %v1020_v32 = vpop.f32.mrf.mxu1  ;;  %526 = vst [vmem:[%s1011_s19 + $0x80] sm:$0xff] %v1018_v30 }
  0xb1   : > { %511 = vst [vmem:[%s1011_s19 + $0x8] sm:$0xff] %v432_v31  ;;  %v580_v50 = vmul.f32 %v432_v31, %v432_v31  ;;  %v542_v52 = vadd.f32 %v432_v31, %v430_v14  ;;  %v588_v6 = vmul.f32 %v1020_v32, %v1020_v32 }
  0xb2   : > { %519 = vst [vmem:[%s1011_s19 + $0x48] sm:$0xff] %v1020_v32 }
  0xb3   : > { %534 = vst [vmem:[%s1011_s19 + $0xc0] sm:$0xff] %v1025_v33  ;;  %v611_v54 = vadd.f32 %v580_v50, %v579_v51 }
  0xb7   : > { %v1031_v34 = vpop.f32.mrf.mxu2  ;;  %v1038_v37 = vpop.f32.mrf.mxu3 }
  0xb8   : > { %v435_v35 = vpop.f32.mrf.mxu0  ;;  %v1033_v36 = vpop.f32.mrf.mxu1  ;;  %527 = vst [vmem:[%s1011_s19 + $0x88] sm:$0xff] %v1031_v34 }
  0xb9   : > { %512 = vst [vmem:[%s1011_s19 + $0x10] sm:$0xff] %v435_v35  ;;  %v581_v53 = vmul.f32 %v435_v35, %v435_v35  ;;  %v543_v55 = vadd.f32 %v542_v52, %v435_v35  ;;  %v589_v22 = vmul.f32 %v1033_v36, %v1033_v36 }
  0xba   : > { %520 = vst [vmem:[%s1011_s19 + $0x50] sm:$0xff] %v1033_v36 }
  0xbb   : > { %535 = vst [vmem:[%s1011_s19 + $0xc8] sm:$0xff] %v1038_v37  ;;  %v612_v60 = vadd.f32 %v611_v54, %v581_v53  ;;  %v595_v53 = vmul.f32 %v1018_v30, %v1018_v30 }
  0xbf   : > { %v1044_v38 = vpop.f32.mrf.mxu2  ;;  %v1051_v41 = vpop.f32.mrf.mxu3 }
  0xc0   : > { %v437_v39 = vpop.f32.mrf.mxu0  ;;  %v1046_v40 = vpop.f32.mrf.mxu1  ;;  %528 = vst [vmem:[%s1011_s19 + $0x90] sm:$0xff] %v1044_v38 }
  0xc1   : > { %513 = vst [vmem:[%s1011_s19 + $0x18] sm:$0xff] %v437_v39  ;;  %v582_v56 = vmul.f32 %v437_v39, %v437_v39  ;;  %v544_v61 = vadd.f32 %v543_v55, %v437_v39  ;;  %v590_v26 = vmul.f32 %v1046_v40, %v1046_v40 }
  0xc2   : > { %521 = vst [vmem:[%s1011_s19 + $0x58] sm:$0xff] %v1046_v40 }
  0xc3   : > { %536 = vst [vmem:[%s1011_s19 + $0xd0] sm:$0xff] %v1051_v41  ;;  %v613_v0 = vadd.f32 %v612_v60, %v582_v56 }
  0xc7   : > { %v1057_v42 = vpop.f32.mrf.mxu2  ;;  %v1064_v45 = vpop.f32.mrf.mxu3 }
  0xc8   : > { %v440_v43 = vpop.f32.mrf.mxu0  ;;  %v1059_v44 = vpop.f32.mrf.mxu1  ;;  %529 = vst [vmem:[%s1011_s19 + $0x98] sm:$0xff] %v1057_v42 }
  0xc9   : > { %514 = vst [vmem:[%s1011_s19 + $0x20] sm:$0xff] %v440_v43  ;;  %v583_v62 = vmul.f32 %v440_v43, %v440_v43  ;;  %v545_v1 = vadd.f32 %v544_v61, %v440_v43  ;;  %v598_v61 = vmul.f32 %v1057_v42, %v1057_v42 }
  0xca   : > { %522 = vst [vmem:[%s1011_s19 + $0x60] sm:$0xff] %v1059_v44 }
  0xcb   : > { %537 = vst [vmem:[%s1011_s19 + $0xd8] sm:$0xff] %v1064_v45  ;;  %v614_v3 = vadd.f32 %v613_v0, %v583_v62 }
  0xcf   : > { %v1070_v46 = vpop.f32.mrf.mxu2  ;;  %v1077_v49 = vpop.f32.mrf.mxu3 }
  0xd0   : > { %v442_v47 = vpop.f32.mrf.mxu0  ;;  %v1072_v48 = vpop.f32.mrf.mxu1  ;;  %530 = vst [vmem:[%s1011_s19 + $0xa0] sm:$0xff] %v1070_v46 }
  0xd1   : > { %515 = vst [vmem:[%s1011_s19 + $0x28] sm:$0xff] %v442_v47  ;;  %v584_v2 = vmul.f32 %v442_v47, %v442_v47  ;;  %v546_v4 = vadd.f32 %v545_v1, %v442_v47  ;;  %v592_v35 = vmul.f32 %v1072_v48, %v1072_v48 }
  0xd2   : > { %523 = vst [vmem:[%s1011_s19 + $0x68] sm:$0xff] %v1072_v48 }
  0xd3   : > { %538 = vst [vmem:[%s1011_s19 + $0xe0] sm:$0xff] %v1077_v49  ;;  %v615_v7 = vadd.f32 %v614_v3, %v584_v2 }
  0xd7   : > { %v1083_v57 = vpop.f32.mrf.mxu2  ;;  %v1088_v63 = vpop.f32.mrf.mxu3 }
  0xd8   : > { %v445_v58 = vpop.f32.mrf.mxu0  ;;  %v465_v59 = vpop.f32.mrf.mxu1  ;;  %531 = vst [vmem:[%s1011_s19 + $0xa8] sm:$0xff] %v1083_v57  ;;  %v600_v3 = vmul.f32 %v1083_v57, %v1083_v57 }
  0xd9   : > { %516 = vst [vmem:[%s1011_s19 + $0x30] sm:$0xff] %v445_v58  ;;  %v585_v5 = vmul.f32 %v445_v58, %v445_v58  ;;  %v547_v8 = vadd.f32 %v546_v4, %v445_v58  ;;  %v593_v47 = vmul.f32 %v465_v59, %v465_v59 }
  0xda   : > { %524 = vst [vmem:[%s1011_s19 + $0x70] sm:$0xff] %v465_v59 }
  0xdb   : > { %539 = vst [vmem:[%s1011_s19 + $0xe8] sm:$0xff] %v1088_v63  ;;  %v616_v12 = vadd.f32 %v615_v7, %v585_v5 }
  0xdf   : > { %v485_v9 = vpop.f32.mrf.mxu2  ;;  %v1095_v16 = vpop.f32.mrf.mxu3 }
  0xe0   : > { %v447_v10 = vpop.f32.mrf.mxu0  ;;  %v467_v11 = vpop.f32.mrf.mxu1  ;;  %532 = vst [vmem:[%s1011_s19 + $0xb0] sm:$0xff] %v485_v9  ;;  %v601_v7 = vmul.f32 %v485_v9, %v485_v9 }
  0xe1   : > { %517 = vst [vmem:[%s1011_s19 + $0x38] sm:$0xff] %v447_v10  ;;  %v548_v13 = vadd.f32 %v547_v8, %v447_v10  ;;  %v586_v15 = vmul.f32 %v447_v10, %v447_v10 }
  0xe2   : > { %525 = vst [vmem:[%s1011_s19 + $0x78] sm:$0xff] %v467_v11 }
  0xe3   : > { %v549_v18 = vadd.f32 %v548_v13, %v1013_v29  ;;  %v617_v19 = vadd.f32 %v616_v12, %v586_v15  ;;  %540 = vst [vmem:[%s1011_s19 + $0xf0] sm:$0xff] %v1095_v16  ;;  %v591_v29 = vmul.f32 %v1059_v44, %v1059_v44 }
  0xe5   : > { %v550_v20 = vadd.f32 %v549_v18, %v1020_v32  ;;  %v618_v21 = vadd.f32 %v617_v19, %v587_v17  ;;  %v606_v19 = vmul.f32 %v1064_v45, %v1064_v45 }
  0xe7   : > { %v551_v23 = vadd.f32 %v550_v20, %v1033_v36  ;;  %v619_v24 = vadd.f32 %v618_v21, %v588_v6  ;;  %v487_v25 = vpop.f32.mrf.mxu2  ;;  %v507_v14 = vpop.f32.mrf.mxu3 }
  0xe8   : > { %533 = vst [vmem:[%s1011_s19 + $0xb8] sm:$0xff] %v487_v25 }
  0xe9   : > { %v620_v27 = vadd.f32 %v619_v24, %v589_v22  ;;  %v552_v28 = vadd.f32 %v551_v23, %v1046_v40  ;;  %541 = vst [vmem:[%s1011_s19 + $0xf8] sm:$0xff] %v507_v14  ;;  %v594_v40 = vmul.f32 %v467_v11, %v467_v11  ;;  %v608_v23 = vmul.f32 %v1088_v63, %v1088_v63 }
  0xeb   : > { %v553_v31 = vadd.f32 %v552_v28, %v1059_v44  ;;  %v621_v32 = vadd.f32 %v620_v27, %v590_v26  ;;  %v596_v44 = vmul.f32 %v1031_v34, %v1031_v34  ;;  %v609_v26 = vmul.f32 %v1095_v16, %v1095_v16 }
  0xec   : > { %v610_v28 = vmul.f32 %v507_v14, %v507_v14 }
  0xed   : > { %v554_v36 = vadd.f32 %v553_v31, %v1072_v48  ;;  %v622_v39 = vadd.f32 %v621_v32, %v591_v29  ;;  %v597_v48 = vmul.f32 %v1044_v38, %v1044_v38 }
  0xef   : > { %v555_v43 = vadd.f32 %v554_v36, %v465_v59  ;;  %v623_v50 = vadd.f32 %v622_v39, %v592_v35 }
  0xf1   : > { %v624_v51 = vadd.f32 %v623_v50, %v593_v47  ;;  %v556_v52 = vadd.f32 %v555_v43, %v467_v11  ;;  %v602_v11 = vmul.f32 %v487_v25, %v487_v25 }
  0xf3   : > { %v557_v54 = vadd.f32 %v556_v52, %v1018_v30  ;;  %v625_v55 = vadd.f32 %v624_v51, %v594_v40  ;;  %v599_v30 = vmul.f32 %v1070_v46, %v1070_v46 }
  0xf5   : > { %v558_v56 = vadd.f32 %v557_v54, %v1031_v34  ;;  %v626_v58 = vadd.f32 %v625_v55, %v595_v53 }
  0xf7   : > { %v559_v59 = vadd.f32 %v558_v56, %v1044_v38  ;;  %v627_v60 = vadd.f32 %v626_v58, %v596_v44 }
  0xf9   : > { %v628_v62 = vadd.f32 %v627_v60, %v597_v48  ;;  %v560_v0 = vadd.f32 %v559_v59, %v1057_v42  ;;  %v603_v42 = vmul.f32 %v1025_v33, %v1025_v33 }
  0xfb   : > { %v561_v1 = vadd.f32 %v560_v0, %v1070_v46  ;;  %v629_v2 = vadd.f32 %v628_v62, %v598_v61  ;;  %v604_v46 = vmul.f32 %v1038_v37, %v1038_v37 }
  0xfd   : > { %v562_v34 = vadd.f32 %v561_v1, %v1083_v57  ;;  %v630_v4 = vadd.f32 %v629_v2, %v599_v30  ;;  %v605_v57 = vmul.f32 %v1051_v41, %v1051_v41 }
  0xff   : > { %v631_v38 = vadd.f32 %v630_v4, %v600_v3  ;;  %v563_v5 = vadd.f32 %v562_v34, %v485_v9 }
 0x101   : > { %v632_v8 = vadd.f32 %v631_v38, %v601_v7  ;;  %v564_v10 = vadd.f32 %v563_v5, %v487_v25 }
 0x103   : > { %v565_v12 = vadd.f32 %v564_v10, %v1025_v33  ;;  %v633_v13 = vadd.f32 %v632_v8, %v602_v11  ;;  %v607_v33 = vmul.f32 %v1077_v49, %v1077_v49 }
 0x105   : > { %v566_v15 = vadd.f32 %v565_v12, %v1038_v37  ;;  %v634_v17 = vadd.f32 %v633_v13, %v603_v42 }
 0x107   : > { %v567_v9 = vadd.f32 %v566_v15, %v1051_v41  ;;  %v635_v18 = vadd.f32 %v634_v17, %v604_v46 }
 0x109   : > { %v636_v6 = vadd.f32 %v635_v18, %v605_v57  ;;  %v568_v20 = vadd.f32 %v567_v9, %v1064_v45 }
 0x10b   : > { %v569_v21 = vadd.f32 %v568_v20, %v1077_v49  ;;  %v637_v22 = vadd.f32 %v636_v6, %v606_v19 }
 0x10d   : > { %v570_v37 = vadd.f32 %v569_v21, %v1088_v63  ;;  %v638_v24 = vadd.f32 %v637_v22, %v607_v33 }
 0x10f   : > { %v639_v41 = vadd.f32 %v638_v24, %v608_v23  ;;  %v571_v25 = vadd.f32 %v570_v37, %v1095_v16 }
 0x111   : > { %v640_v45 = vadd.f32 %v639_v41, %v609_v26  ;;  %v572_v27 = vadd.f32 %v571_v25, %v507_v14 }
 0x113   : > { %v573_v29 = vrot.slane %v572_v27, 4  ;;  %v641_v31 = vadd.f32 %v640_v45, %v610_v28 }
 0x115   : > { %v574_v49 = vadd.f32 %v573_v29, %v572_v27  ;;  %v642_v32 = vrot.slane %v641_v31, 4 }
 0x117   : > { %v575_v35 = vrot.slane %v574_v49, 2  ;;  %v643_v36 = vadd.f32 %v642_v32, %v641_v31 }
 0x119   : > { %v576_v39 = vadd.f32 %v575_v35, %v574_v49  ;;  %v644_v43 = vrot.slane %v643_v36, 2 }
 0x11b   : > { %v577_v63 = vrot.slane %v576_v39, 1  ;;  %v645_v47 = vadd.f32 %v644_v43, %v643_v36 }
 0x11d   : > { %v646_v50 = vrot.slane %v645_v47, 1  ;;  %v578_v16 = vadd.f32 %v577_v63, %v576_v39 }
 0x11f   : > { %v647_v51 = vadd.f32 %v646_v50, %v645_v47 }
 0x121   : > { %v649_v14 = vsel %vm648_vm0, %v578_v16, %v647_v51 }
 0x122   : > { %650 = vst [vmem:[%s208_s23] sm:$0x3] %v649_v14 }
 0x123 PF: > { %s15_s15 = sadd.s32 1, %s831_s15  }
 0x124   : > { %p12_p4 = scmp.ge.s32.totalorder %s15_s15, 4  }
 0x126   :  { %14 = sbr.rel (!%p12_p4) target bundleno = 1 (0x1), region = 74 }

// kernel: bottleneck_forward.5
= control target key start
LH: loop header
LB: loop body
LE: loop exit
PB: predicated region body
PF: predicated region fallthrough
CT: control target
= control target key end

     0   :  { %s3142_s15 = smov 0   ;;  %s4070_s0 = inlined_call_operand.vmem [shape: f32[2,256,128], index: 0, kind: input, shape index: {}]   ;;  %s4071_s1 = inlined_call_operand.vmem [shape: f32[2,128], index: 1, kind: input, shape index: {}]   ;;  %s4072_s2 = inlined_call_operand.vmem [shape: bf16[1152,128], index: 2, kind: input, shape index: {}]   ;;  %s4073_s3 = inlined_call_operand.vmem [shape: f32[2,256,128], index: 3, kind: output, shape index: {0}]   ;;  %s4074_s4 = inlined_call_operand.vmem [shape: f32[2,2,128], index: 4, kind: output, shape index: {1}]  }
   0x1 LB: > { %s2594_s16 = sadd.s32 4294967295, %s3112_s15   ;;  %p2598_p0 = scmp.ge.s32.totalorder %s3112_s15, 1  ;;  %s3112_s15 = sphi %s3142_s15, %s15_s15  }
   0x2   : > { %p165_p1 = scmp.lt.s32.totalorder %s3112_s15, 3 }
   0x4   : > { %p166_p2 = pnand %p2598_p0, %p165_p1 }
   0x5   : > { %p195_p3 = scmp.lt.s32.totalorder (!%p166_p2), %s2594_s16, 1 }
   0x6   : > { %169 = sbr.rel (%p166_p2) target bundleno = 767 (0x2ff), region = 32 }
   0xb   : > { %v2903_v0 = vld [vmem:[%s4072_s2 + $0x38] sm:$0xff]  ;;  %v2902_v1 = vld [vmem:[%s4072_s2 + $0x30] sm:$0xff]  ;;  %s4078_s16 = smov (!%p195_p3, %s2594_s16), 1  ;;  %v3114_v2 = vmov 0.0   ;;  %v3161_v3 = vld [vmem:[%s4071_s1] ss:$0 sm:$0xff] }
   0xc   : > { %2968 = vmatpush.bf16.msra.mxu1 %v2903_v0  ;;  %2969 = vmatpush.bf16.msra.mxu2 %v2903_v0  ;;  %341 = vst [vmem:[#allocation2] sm:$0xff] %v3114_v2  ;;  %s2894_s23 = sshll.u32 %s4078_s16, 8  ;;  %v2901_v4 = vld [vmem:[%s4072_s2 + $0x28] sm:$0xff]  ;;  %v3177_v5 = vld [vmem:[%s4071_s1 + $0x1] ss:$0 sm:$0xff]  ;;  %vm380_vm0 = vcmask 1040384  }
   0xd   : > { %2970 = vmatpush.bf16.msra.mxu3 %v2903_v0  ;;  %1567 = vmatpush.bf16.msra.mxu0 %v2903_v0  ;;  %342 = vst [vmem:[#allocation2 + $0x8] sm:$0xff] %v3114_v2  ;;  %s3172_s28 = scalar_lea.vmem %s4070_s0, %s2894_s23  ;;  %v2900_v24 = vld [vmem:[%s4072_s2 + $0x20] sm:$0xff]  ;;  %v2899_v40 = vld [vmem:[%s4072_s2 + $0x18] sm:$0xff]  ;;  %v2898_v57 = vld [vmem:[%s4072_s2 + $0x10] sm:$0xff]  ;;  %vm3115_vm2 = vmmov 1   ;;  %s3992_s18 = scalar_lea.vmem %s4073_s3, %s2894_s23 }
   0xe   : > { %343 = vst [vmem:[#allocation2 + $0x10] sm:$0x3] %v3114_v2  ;;  %v217_v6 = vld [vmem:[%s3172_s28 + $0x30] sm:$0xff]  ;;  %v218_v7 = vld [vmem:[%s3172_s28 + $0x38] sm:$0xff]  ;;  %v219_v18 = vld [vmem:[%s3172_s28 + $0x40] sm:$0xff]  ;;  %s2603_s23 = sshll.u32 %s4078_s16, 1 }
   0xf   : > { %v225_v8 = vld [vmem:[%s3172_s28 + $0x70] sm:$0xff]  ;;  %345 = vst [vmem:[#allocation2 + $0x198] sm:$0xff] %v3114_v2  ;;  %v250_v9 = vmul.f32 %v3161_v3, %v217_v6  ;;  %v251_v10 = vmul.f32 %v3161_v3, %v218_v7  ;;  %v226_v11 = vld [vmem:[%s3172_s28 + $0x78] sm:$0xff]  ;;  %v220_v19 = vld [vmem:[%s3172_s28 + $0x48] sm:$0xff]  ;;  %v252_v23 = vmul.f32 %v3161_v3, %v219_v18  ;;  %s208_s21 = scalar_lea.vmem %s4074_s4, %s2603_s23 }
  0x10   : > { %2971 = vmatpush.bf16.msra.mxu1 %v2902_v1  ;;  %2972 = vmatpush.bf16.msra.mxu2 %v2902_v1  ;;  %v258_v12 = vmul.f32 %v3161_v3, %v225_v8  ;;  %v233_v13 = vld [vmem:[%s3172_s28 + $0xb0] sm:$0xff]  ;;  %v234_v14 = vld [vmem:[%s3172_s28 + $0xb8] sm:$0xff]  ;;  %346 = vst [vmem:[#allocation2 + $0x1a0] sm:$0xff] %v3114_v2  ;;  %v259_v15 = vmul.f32 %v3161_v3, %v226_v11  ;;  %v227_v47 = vld [vmem:[%s3172_s28 + $0x80] sm:$0xff] }
  0x11   : > { %2973 = vmatpush.bf16.msra.mxu3 %v2902_v1  ;;  %1568 = vmatpush.bf16.msra.mxu0 %v2902_v1  ;;  %v266_v16 = vmul.f32 %v3161_v3, %v233_v13  ;;  %v267_v17 = vmul.f32 %v3161_v3, %v234_v14  ;;  %347 = vst [vmem:[#allocation2 + $0x1a8] sm:$0x3] %v3114_v2  ;;  %v228_v48 = vld [vmem:[%s3172_s28 + $0x88] sm:$0xff]  ;;  %v235_v49 = vld [vmem:[%s3172_s28 + $0xc0] sm:$0xff]  ;;  %v221_v8 = vld [vmem:[%s3172_s28 + $0x50] sm:$0xff] }
  0x12   : > { %v283_v20 = vadd.f32 %v3177_v5, %v250_v9  ;;  %v284_v21 = vadd.f32 %v3177_v5, %v251_v10  ;;  %v291_v22 = vadd.f32 %v3177_v5, %v258_v12  ;;  %v292_v25 = vadd.f32 %v3177_v5, %v259_v15  ;;  %v236_v52 = vld [vmem:[%s3172_s28 + $0xc8] sm:$0xff]  ;;  %v211_v61 = vld [vmem:[%s3172_s28] sm:$0xff]  ;;  %v222_v12 = vld [vmem:[%s3172_s28 + $0x58] sm:$0xff] }
  0x13   : > { %v299_v26 = vadd.f32 %v3177_v5, %v266_v16  ;;  %v300_v27 = vadd.f32 %v3177_v5, %v267_v17  ;;  %v253_v31 = vmul.f32 %v3161_v3, %v220_v19  ;;  %v285_v35 = vadd.f32 %v3177_v5, %v252_v23  ;;  %v212_v62 = vld [vmem:[%s3172_s28 + $0x8] sm:$0xff]  ;;  %vm3006_vm1 = vmneg %vm380_vm0 }
  0x14   : > { %2974 = vmatpush.bf16.msra.mxu1 %v2901_v4  ;;  %2975 = vmatpush.bf16.msra.mxu2 %v2901_v4  ;;  %v315_v28 = vmax.f32 %v283_v20, 0.0  ;;  %v316_v29 = vmax.f32 %v284_v21, 0.0  ;;  %v323_v30 = vmax.f32 %v291_v22, 0.0  ;;  %v324_v32 = vmax.f32 %v292_v25, 0.0  ;;  %v2897_v14 = vld [vmem:[%s4072_s2 + $0x8] sm:$0xff]  ;;  %vm3365_vm3 = vmpackc.low %vm3115_vm2, %vm3006_vm1 }
  0x15   : > { %2976 = vmatpush.bf16.msra.mxu3 %v2901_v4  ;;  %1569 = vmatpush.bf16.msra.mxu0 %v2901_v4  ;;  %v331_v33 = vmax.f32 %v299_v26, 0.0  ;;  %v332_v34 = vmax.f32 %v300_v27, 0.0  ;;  %v286_v39 = vadd.f32 %v3177_v5, %v253_v31  ;;  %v317_v44 = vmax.f32 %v285_v35, 0.0  ;;  %v2896_v31 = vld [vmem:[%s4072_s2] sm:$0xff]  ;;  %v237_v35 = vld [vmem:[%s3172_s28 + $0xd0] sm:$0xff] }
  0x16   : > { %v3205_v36 = vrot.slane %v315_v28, 7  ;;  %v3207_v37 = vrot.slane %v316_v29, 7  ;;  %v3209_v38 = vrot.slane %v323_v30, 7  ;;  %v3215_v41 = vrot.slane %v324_v32, 7  ;;  %v229_v30 = vld [vmem:[%s3172_s28 + $0x90] sm:$0xff] }
  0x17   : > { %v3217_v42 = vrot.slane %v331_v33, 7  ;;  %v3219_v43 = vrot.slane %v332_v34, 7  ;;  %v318_v46 = vmax.f32 %v286_v39, 0.0  ;;  %v3245_v55 = vrot.slane %v317_v44, 7  ;;  %v230_v34 = vld [vmem:[%s3172_s28 + $0x98] sm:$0xff] }
  0x18   : > { %2977 = vmatpush.bf16.msra.mxu1 %v2900_v24  ;;  %2978 = vmatpush.bf16.msra.mxu2 %v2900_v24  ;;  %v480_v45 = vsel %vm380_vm0, 0.0, %v3205_v36  ;;  %v3229_v50 = vsel %vm380_vm0, %v3205_v36, %v3207_v37  ;;  %v484_v51 = vsel %vm380_vm0, 0.0, %v3209_v38  ;;  %v3238_v53 = vsel %vm380_vm0, %v3209_v38, %v3215_v41  ;;  %v2919_v39 = vld [vmem:[%s4072_s2 + $0xb8] sm:$0xff] }
  0x19   : > { %2979 = vmatpush.bf16.msra.mxu3 %v2900_v24  ;;  %1570 = vmatpush.bf16.msra.mxu0 %v2900_v24  ;;  %519 = vst [vmem:[#allocation2 + $0x60] sm:$0xff] %v480_v45  ;;  %v3243_v54 = vsel %vm380_vm0, %v3217_v42, %v3219_v43  ;;  %v3247_v56 = vrot.slane %v318_v46, 7  ;;  %v260_v58 = vmul.f32 %v3161_v3, %v227_v47  ;;  %v488_v63 = vsel %vm380_vm0, 0.0, %v3217_v42  ;;  %v2927_v46 = vld [vmem:[%s4072_s2 + $0xf8] sm:$0xff] }
  0x1a   : > { %520 = vst [vmem:[#allocation2 + $0x68] sm:$0xff] %v3229_v50  ;;  %v261_v59 = vmul.f32 %v3161_v3, %v228_v48  ;;  %v268_v60 = vmul.f32 %v3161_v3, %v235_v49  ;;  %v269_v1 = vmul.f32 %v3161_v3, %v236_v52  ;;  %v481_v2 = vsel %vm380_vm0, 0.0, %v3245_v55  ;;  %v238_v52 = vld [vmem:[%s3172_s28 + $0xd8] sm:$0xff] }
  0x1b   : > { %531 = vst [vmem:[#allocation2 + $0xc0] sm:$0xff] %v484_v51  ;;  %v3263_v0 = vsel %vm380_vm0, %v3245_v55, %v3247_v56  ;;  %v293_v4 = vadd.f32 %v3177_v5, %v260_v58  ;;  %v244_v10 = vmul.f32 %v3161_v3, %v211_v61  ;;  %v245_v11 = vmul.f32 %v3161_v3, %v212_v62 }
  0x1c   : > { %2980 = vmatpush.bf16.msra.mxu1 %v2899_v40  ;;  %2981 = vmatpush.bf16.msra.mxu2 %v2899_v40  ;;  %532 = vst [vmem:[#allocation2 + $0xc8] sm:$0xff] %v3238_v53  ;;  %v294_v6 = vadd.f32 %v3177_v5, %v261_v59  ;;  %v301_v7 = vadd.f32 %v3177_v5, %v268_v60  ;;  %v213_v60 = vld [vmem:[%s3172_s28 + $0x10] sm:$0xff] }
  0x1d   : > { %2982 = vmatpush.bf16.msra.mxu3 %v2899_v40  ;;  %1571 = vmatpush.bf16.msra.mxu0 %v2899_v40  ;;  %543 = vst [vmem:[#allocation2 + $0x120] sm:$0xff] %v488_v63  ;;  %v302_v9 = vadd.f32 %v3177_v5, %v269_v1  ;;  %v254_v13 = vmul.f32 %v3161_v3, %v221_v8  ;;  %v325_v15 = vmax.f32 %v293_v4, 0.0  ;;  %v2935_v4 = vld [vmem:[%s4072_s2 + $0x138] sm:$0xff] }
  0x1e   : > { %544 = vst [vmem:[#allocation2 + $0x128] sm:$0xff] %v3243_v54  ;;  %v326_v16 = vmax.f32 %v294_v6, 0.0  ;;  %v333_v17 = vmax.f32 %v301_v7, 0.0  ;;  %v255_v18 = vmul.f32 %v3161_v3, %v222_v12  ;;  %v277_v20 = vadd.f32 %v3177_v5, %v244_v10  ;;  %v2918_v10 = vld [vmem:[%s4072_s2 + $0xb0] sm:$0xff] }
  0x1f   : > { %522 = vst [vmem:[#allocation2 + $0x78] sm:$0xff] %v481_v2  ;;  %v334_v19 = vmax.f32 %v302_v9, 0.0  ;;  %v278_v21 = vadd.f32 %v3177_v5, %v245_v11  ;;  %v3285_v22 = vrot.slane %v325_v15, 7  ;;  %v287_v25 = vadd.f32 %v3177_v5, %v254_v13  ;;  %v2911_v2 = vld [vmem:[%s4072_s2 + $0x78] sm:$0xff]  ;;  %v2926_v11 = vld [vmem:[%s4072_s2 + $0xf0] sm:$0xff] }
  0x20   : > { %2983 = vmatpush.bf16.msra.mxu1 %v2898_v57  ;;  %2984 = vmatpush.bf16.msra.mxu2 %v2898_v57  ;;  %523 = vst [vmem:[#allocation2 + $0x80] sm:$0xff] %v3263_v0  ;;  %v3287_v23 = vrot.slane %v326_v16, 7  ;;  %v3289_v24 = vrot.slane %v333_v17, 7  ;;  %v309_v27 = vmax.f32 %v277_v20, 0.0  ;;  %v288_v29 = vadd.f32 %v3177_v5, %v255_v18  ;;  %v214_v9 = vld [vmem:[%s3172_s28 + $0x18] sm:$0xff] }
  0x21   : > { %2985 = vmatpush.bf16.msra.mxu3 %v2898_v57  ;;  %1572 = vmatpush.bf16.msra.mxu0 %v2898_v57  ;;  %v3292_v26 = vrot.slane %v334_v19, 7  ;;  %v310_v28 = vmax.f32 %v278_v21, 0.0  ;;  %v485_v32 = vsel %vm380_vm0, 0.0, %v3285_v22  ;;  %v319_v33 = vmax.f32 %v287_v25, 0.0 }
  0x22   : > { %v3309_v40 = vsel %vm380_vm0, %v3285_v22, %v3287_v23  ;;  %534 = vst [vmem:[#allocation2 + $0xd8] sm:$0xff] %v485_v32  ;;  %v3311_v44 = vrot.slane %v309_v27, 7  ;;  %v489_v47 = vsel %vm380_vm0, 0.0, %v3289_v24  ;;  %v320_v48 = vmax.f32 %v288_v29, 0.0 }
  0x23   : > { %v3313_v45 = vrot.slane %v310_v28, 7  ;;  %535 = vst [vmem:[#allocation2 + $0xe0] sm:$0xff] %v3309_v40  ;;  %v3321_v49 = vrot.slane %v319_v33, 7  ;;  %v262_v51 = vmul.f32 %v3161_v3, %v229_v30  ;;  %v3328_v57 = vsel %vm380_vm0, %v3289_v24, %v3292_v26  ;;  %v2917_v30 = vld [vmem:[%s4072_s2 + $0xa8] sm:$0xff] }
  0x24   : > { %2986 = vmatpush.bf16.msra.mxu1 %v2897_v14  ;;  %2987 = vmatpush.bf16.msra.mxu2 %v2897_v14  ;;  %546 = vst [vmem:[#allocation2 + $0x138] sm:$0xff] %v489_v47  ;;  %v263_v58 = vmul.f32 %v3161_v3, %v230_v34  ;;  %v270_v59 = vmul.f32 %v3161_v3, %v237_v35  ;;  %v477_v62 = vsel %vm380_vm0, 0.0, %v3311_v44  ;;  %v3341_v63 = vrot.slane %v320_v48, 7  ;;  %v223_v35 = vld [vmem:[%s3172_s28 + $0x60] sm:$0xff]  ;;  %v224_v48 = vld [vmem:[%s3172_s28 + $0x68] sm:$0xff] }
  0x25   : > { %2988 = vmatpush.bf16.msra.mxu3 %v2897_v14  ;;  %1573 = vmatpush.bf16.msra.mxu0 %v2897_v14  ;;  %547 = vst [vmem:[#allocation2 + $0x140] sm:$0xff] %v3328_v57  ;;  %v3337_v61 = vsel %vm380_vm0, %v3311_v44, %v3313_v45  ;;  %v295_v1 = vadd.f32 %v3177_v5, %v262_v51  ;;  %v482_v12 = vsel %vm380_vm0, 0.0, %v3321_v49 }
  0x26   : > { %510 = vst [vmem:[#allocation2 + $0x18] sm:$0xff] %v477_v62  ;;  %v296_v6 = vadd.f32 %v3177_v5, %v263_v58  ;;  %v271_v7 = vmul.f32 %v3161_v3, %v238_v52  ;;  %v303_v8 = vadd.f32 %v3177_v5, %v270_v59  ;;  %v246_v14 = vmul.f32 %v3161_v3, %v213_v60  ;;  %v231_v60 = vld [vmem:[%s3172_s28 + $0xa0] sm:$0xff]  ;;  %v232_v62 = vld [vmem:[%s3172_s28 + $0xa8] sm:$0xff] }
  0x27   : > { %511 = vst [vmem:[#allocation2 + $0x20] sm:$0xff] %v3337_v61  ;;  %v327_v13 = vmax.f32 %v295_v1, 0.0  ;;  %v3371_v16 = vpack.c.bf16 %v3229_v50, %v3205_v36  ;;  %v3012_v17 = vpack.c.bf16 %v3238_v53, %v3209_v38  ;;  %v3383_v18 = vsel %vm380_vm0, %v3321_v49, %v3341_v63  ;;  %v239_v1 = vld [vmem:[%s3172_s28 + $0xe0] sm:$0xff] }
  0x28   : > { %2989 = vmatpush.bf16.msra.mxu1 %v2896_v31  ;;  %2990 = vmatpush.bf16.msra.mxu2 %v2896_v31  ;;  %525 = vst [vmem:[#allocation2 + $0x90] sm:$0xff] %v482_v12  ;;  %v328_v19 = vmax.f32 %v296_v6, 0.0  ;;  %v304_v36 = vadd.f32 %v3177_v5, %v271_v7  ;;  %v335_v50 = vmax.f32 %v303_v8, 0.0  ;;  %v3016_v20 = vpack.c.bf16 %v3243_v54, %v3217_v42  ;;  %v2910_v42 = vld [vmem:[%s4072_s2 + $0x70] sm:$0xff] }
  0x29   : > { %2991 = vmatpush.bf16.msra.mxu3 %v2896_v31  ;;  %1574 = vmatpush.bf16.msra.mxu0 %v2896_v31  ;;  %v3116_v38 = vmov 0.0|0.0   ;;  %526 = vst [vmem:[#allocation2 + $0x98] sm:$0xff] %v3383_v18  ;;  %v3391_v53 = vrot.slane %v327_v13, 7  ;;  %v247_v21 = vmul.f32 %v3161_v3, %v214_v9  ;;  %v279_v25 = vadd.f32 %v3177_v5, %v246_v14  ;;  %v2934_v54 = vld [vmem:[%s4072_s2 + $0x130] sm:$0xff]  ;;  %v2925_v31 = vld [vmem:[%s4072_s2 + $0xe8] sm:$0xff] }
  0x2a   : > { %v3401_v27 = vrot.slane %v328_v19, 7  ;;  %v336_v28 = vmax.f32 %v304_v36, 0.0  ;;  %v3403_v29 = vrot.slane %v335_v50, 7  ;;  %v256_v51 = vmul.f32 %v3161_v3, %v223_v35  ;;  %v240_v9 = vld [vmem:[%s3172_s28 + $0xe8] sm:$0xff]  ;;  %v2923_v35 = vld [vmem:[%s4072_s2 + $0xd8] sm:$0xff] }
  0x2b   : > { %3009 = vmatmul.msk.bf16.vlgmr.msra.gmra.mxu1 %vm3365_vm3, %v3371_v16  ;;  %3013 = vmatmul.msk.bf16.vlgmr.msra.gmra.mxu2 %vm3365_vm3, %v3012_v17  ;;  %v486_v32 = vsel %vm380_vm0, 0.0, %v3391_v53  ;;  %v280_v33 = vadd.f32 %v3177_v5, %v247_v21  ;;  %v311_v34 = vmax.f32 %v279_v25, 0.0  ;;  %v257_v59 = vmul.f32 %v3161_v3, %v224_v48  ;;  %v215_v17 = vld [vmem:[%s3172_s28 + $0x20] sm:$0xff] }
  0x2c   : > { %1745 = vmatpush.bf16.msrb.mxu2 %v2919_v39  ;;  %3017 = vmatmul.msk.bf16.vlgmr.msra.gmra.mxu3 %vm3365_vm3, %v3016_v20  ;;  %v3418_v39 = vsel %vm380_vm0, %v3391_v53, %v3401_v27  ;;  %537 = vst [vmem:[#allocation2 + $0xf0] sm:$0xff] %v486_v32  ;;  %v490_v47 = vsel %vm380_vm0, 0.0, %v3403_v29  ;;  %v289_v7 = vadd.f32 %v3177_v5, %v256_v51 }
  0x2d   : > { %1834 = vmatpush.bf16.msrb.mxu3 %v2927_v46  ;;  %1575 = vmatmul.bf16.vlgmr.msra.gmra.mxu0 %v3116_v38  ;;  %v3420_v46 = vrot.slane %v336_v28, 7  ;;  %538 = vst [vmem:[#allocation2 + $0xf8] sm:$0xff] %v3418_v39  ;;  %v312_v52 = vmax.f32 %v280_v33, 0.0  ;;  %v3427_v58 = vrot.slane %v311_v34, 7  ;;  %v264_v8 = vmul.f32 %v3161_v3, %v231_v60  ;;  %v216_v38 = vld [vmem:[%s3172_s28 + $0x28] sm:$0xff]  ;;  %v2908_v28 = vld [vmem:[%s4072_s2 + $0x60] sm:$0xff] }
  0x2e   : > { %1656 = vmatpush.bf16.msrb.mxu1 %v2911_v2  ;;  %1923 = vmatpush.bf16.msrb.mxu0 %v2935_v4  ;;  %v2909_v2 = vld [vmem:[%s4072_s2 + $0x68] sm:$0xff]  ;;  %549 = vst [vmem:[#allocation2 + $0x150] sm:$0xff] %v490_v47  ;;  %v290_v14 = vadd.f32 %v3177_v5, %v257_v59  ;;  %v321_v19 = vmax.f32 %v289_v7, 0.0  ;;  %v265_v36 = vmul.f32 %v3161_v3, %v232_v62  ;;  %v2915_v34 = vld [vmem:[%s4072_s2 + $0x98] sm:$0xff] }
  0x2f   : > { %v2933_v4 = vld [vmem:[%s4072_s2 + $0x128] sm:$0xff]  ;;  %v3442_v6 = vsel %vm380_vm0, %v3403_v29, %v3420_v46  ;;  %v3454_v12 = vrot.slane %v312_v52, 7  ;;  %v478_v13 = vsel %vm380_vm0, 0.0, %v3427_v58  ;;  %v297_v50 = vadd.f32 %v3177_v5, %v264_v8 }
  0x30   : > { %1746 = vmatpush.bf16.msrb.mxu2 %v2918_v10  ;;  %v2916_v10 = vld [vmem:[%s4072_s2 + $0xa0] sm:$0xff]  ;;  %550 = vst [vmem:[#allocation2 + $0x158] sm:$0xff] %v3442_v6  ;;  %v272_v20 = vmul.f32 %v3161_v3, %v239_v1  ;;  %v322_v25 = vmax.f32 %v290_v14, 0.0  ;;  %v298_v32 = vadd.f32 %v3177_v5, %v265_v36  ;;  %v249_v52 = vmul.f32 %v3161_v3, %v216_v38  ;;  %v2922_v14 = vld [vmem:[%s4072_s2 + $0xd0] sm:$0xff] }
  0x31   : > { %1835 = vmatpush.bf16.msrb.mxu3 %v2926_v11  ;;  %v2924_v11 = vld [vmem:[%s4072_s2 + $0xe0] sm:$0xff]  ;;  %513 = vst [vmem:[#allocation2 + $0x30] sm:$0xff] %v478_v13  ;;  %v3467_v21 = vsel %vm380_vm0, %v3427_v58, %v3454_v12  ;;  %v329_v33 = vmax.f32 %v297_v50, 0.0  ;;  %v3526_v50 = vpack.c.bf16 %v3263_v0, %v3245_v55  ;;  %v3028_v55 = vpack.c.bf16 %v3328_v57, %v3289_v24  ;;  %v2906_v24 = vld [vmem:[%s4072_s2 + $0x50] sm:$0xff] }
  0x32   : > { %1657 = vmatpush.bf16.msrb.mxu1 %v2910_v42  ;;  %1924 = vmatpush.bf16.msrb.mxu0 %v2934_v54  ;;  %v273_v42 = vmul.f32 %v3161_v3, %v240_v9  ;;  %v248_v54 = vmul.f32 %v3161_v3, %v215_v17  ;;  %514 = vst [vmem:[#allocation2 + $0x38] sm:$0xff] %v3467_v21  ;;  %v3487_v47 = vrot.slane %v322_v25, 7  ;;  %v330_v60 = vmax.f32 %v298_v32, 0.0  ;;  %v2907_v3 = vld [vmem:[%s4072_s2 + $0x58] sm:$0xff]  ;;  %v2930_v57 = vld [vmem:[%s4072_s2 + $0x110] sm:$0xff]  ;;  %v2929_v32 = vld [vmem:[%s4072_s2 + $0x108] sm:$0xff] }
  0x33   : > { %v305_v48 = vadd.f32 %v3177_v5, %v272_v20  ;;  %v3494_v62 = vrot.slane %v329_v33, 7  ;;  %v282_v8 = vadd.f32 %v3177_v5, %v249_v52  ;;  %v2931_v9 = vld [vmem:[%s4072_s2 + $0x118] sm:$0xff]  ;;  %v3024_v20 = vpack.c.bf16 %v3309_v40, %v3285_v22  ;;  %v2912_v33 = vld [vmem:[%s4072_s2 + $0x80] sm:$0xff] }
  0x34   : > { %1747 = vmatpush.bf16.msrb.mxu2 %v2917_v30  ;;  %v2932_v30 = vld [vmem:[%s4072_s2 + $0x120] sm:$0xff]  ;;  %v306_v51 = vadd.f32 %v3177_v5, %v273_v42  ;;  %v281_v1 = vadd.f32 %v3177_v5, %v248_v54  ;;  %v2914_v5 = vld [vmem:[%s4072_s2 + $0x90] sm:$0xff]  ;;  %v3546_v0 = vpack.c.bf16 %v3337_v61, %v3311_v44  ;;  %v2913_v61 = vld [vmem:[%s4072_s2 + $0x88] sm:$0xff]  ;;  %v3594_v52 = vpack.c.bf16 %v3383_v18, %v3321_v49 }
  0x35   : > { %1836 = vmatpush.bf16.msrb.mxu3 %v2925_v31  ;;  %v3478_v31 = vrot.slane %v321_v19, 7  ;;  %v314_v36 = vmax.f32 %v282_v8, 0.0  ;;  %v2921_v54 = vld [vmem:[%s4072_s2 + $0xc8] sm:$0xff]  ;;  %v3048_v49 = vpack.c.bf16 %v3467_v21, %v3427_v58  ;;  %v2951_v18 = vld [vmem:[%s4072_s2 + $0x1b8] sm:$0xff]  ;;  %v494_v58 = vsel %vm380_vm0, %v3454_v12, 0.0 }
  0x36   : > { %1658 = vmatpush.bf16.msrb.mxu1 %v2909_v2  ;;  %1925 = vmatpush.bf16.msrb.mxu0 %v2933_v4  ;;  %v337_v4 = vmax.f32 %v305_v48, 0.0  ;;  %v338_v7 = vmax.f32 %v306_v51, 0.0  ;;  %v313_v13 = vmax.f32 %v281_v1, 0.0  ;;  %v2904_v48 = vld [vmem:[%s4072_s2 + $0x40] sm:$0xff]  ;;  %515 = vst [vmem:[#allocation2 + $0x40] sm:$0x3] %v494_v58 }
  0x37   : > { %v483_v59 = vsel %vm380_vm0, 0.0, %v3478_v31  ;;  %v3500_v2 = vsel %vm380_vm0, %v3478_v31, %v3487_v47  ;;  %v388_v40 = vrot.slane %v314_v36, 7  ;;  %v2928_v51 = vld [vmem:[%s4072_s2 + $0x100] sm:$0xff]  ;;  %v496_v36 = vsel %vm380_vm0, %v3207_v37, 0.0 }
  0x38   : > { %1748 = vmatpush.bf16.msrb.mxu2 %v2916_v10  ;;  %528 = vst [vmem:[#allocation2 + $0xa8] sm:$0xff] %v483_v59  ;;  %v3510_v10 = vrot.slane %v330_v60, 7  ;;  %v3520_v17 = vrot.slane %v337_v4, 7  ;;  %v3522_v19 = vrot.slane %v338_v7, 7  ;;  %v3538_v25 = vrot.slane %v313_v13, 7  ;;  %v623_v4 = vld [vmem:[#allocation2 + $0xa] sm:$0xff] }
  0x39   : > { %1837 = vmatpush.bf16.msrb.mxu3 %v2924_v11  ;;  %529 = vst [vmem:[#allocation2 + $0xb0] sm:$0xff] %v3500_v2  ;;  %v487_v11 = vsel %vm380_vm0, 0.0, %v3494_v62  ;;  %v3044_v59 = vpack.c.bf16 %v3442_v6, %v3403_v29  ;;  %v2943_v29 = vld [vmem:[%s4072_s2 + $0x178] sm:$0xff]  ;;  %v3630_v6 = vpack.c.bf16 %v3500_v2, %v3478_v31  ;;  %v590_v31 = vld [vmem:[#allocation2 + $0x1] sm:$0xff]  ;;  %v495_v1 = vsel %vm380_vm0, %v388_v40, 0.0  ;;  %v591_v2 = vld [vmem:[#allocation2 + $0x9] sm:$0xff] }
  0x3a   : > { %1659 = vmatpush.bf16.msrb.mxu1 %v2908_v28  ;;  %1926 = vmatpush.bf16.msrb.mxu0 %v2932_v30  ;;  %540 = vst [vmem:[#allocation2 + $0x108] sm:$0xff] %v487_v11  ;;  %v413_v38 = vsel %vm380_vm0, %v3494_v62, %v3510_v10  ;;  %v491_v22 = vsel %vm380_vm0, 0.0, %v3520_v17  ;;  %v425_v44 = vsel %vm380_vm0, %v3520_v17, %v3522_v19  ;;  %v479_v42 = vsel %vm380_vm0, 0.0, %v3538_v25  ;;  %v2905_v30 = vld [vmem:[%s4072_s2 + $0x48] sm:$0xff]  ;;  %v686_v7 = vld [vmem:[#allocation2 + $0x19] sm:$0xff]  ;;  %v2950_v13 = vld [vmem:[%s4072_s2 + $0x1b0] sm:$0xff] }
  0x3b   : > { %3021 = vmatmul.msk.bf16.gmra.mxu1 %vm3365_vm3, %v3526_v50  ;;  %3025 = vmatmul.msk.bf16.gmra.mxu2 %vm3365_vm3, %v3024_v20  ;;  %541 = vst [vmem:[#allocation2 + $0x110] sm:$0xff] %v413_v38  ;;  %v389_v28 = vsel %vm380_vm0, %v3538_v25, %v388_v40  ;;  %v3636_v21 = vpack.c.bf16 %v413_v38, %v3494_v62  ;;  %v622_v62 = vld [vmem:[#allocation2 + $0x2] sm:$0xff]  ;;  %v624_v20 = vld [vmem:[#allocation2 + $0x1a] sm:$0xff]  ;;  %v497_v40 = vsel %vm380_vm0, %v3247_v56, 0.0 }
  0x3c   : > { %1749 = vmatpush.bf16.msrb.mxu2 %v2915_v34  ;;  %3029 = vmatmul.msk.bf16.gmra.mxu3 %vm3365_vm3, %v3028_v55  ;;  %552 = vst [vmem:[#allocation2 + $0x168] sm:$0xff] %v491_v22  ;;  %v2920_v34 = vld [vmem:[%s4072_s2 + $0xc0] sm:$0xff]  ;;  %v3060_v60 = vpack.c.bf16 %v425_v44, %v3520_v17  ;;  %v3064_v12 = vpack.c.bf16 %v389_v28, %v3538_v25  ;;  %v2966_v17 = vld [vmem:[%s4072_s2 + $0x230] sm:$0xff]  ;;  %v2957_v56 = vld [vmem:[%s4072_s2 + $0x1e8] sm:$0xff] }
  0x3d   : > { %1838 = vmatpush.bf16.msrb.mxu3 %v2923_v35  ;;  %3033 = vmatmul.msk.bf16.gmra.mxu0 %vm3365_vm3, %v3546_v0  ;;  %553 = vst [vmem:[#allocation2 + $0x170] sm:$0xff] %v425_v44  ;;  %v493_v35 = vsel %vm380_vm0, %v3313_v45, 0.0  ;;  %v3601_v45 = vpack.c.bf16 %v3418_v39, %v3391_v53  ;;  %v2959_v53 = vld [vmem:[%s4072_s2 + $0x1f8] sm:$0xff] }
  0x3e   : > { %1660 = vmatpush.bf16.msrb.mxu1 %v2907_v3  ;;  %1927 = vmatpush.bf16.msrb.mxu0 %v2931_v9  ;;  %516 = vst [vmem:[#allocation2 + $0x48] sm:$0xff] %v479_v42  ;;  %v2967_v39 = vld [vmem:[%s4072_s2 + $0x238] sm:$0xff]  ;;  %v848_v3 = vpack.c.bf16 %v591_v2, %v590_v31  ;;  %v849_v9 = vpack.c.bf16 %v623_v4, %v622_v62  ;;  %v2940_v2 = vld [vmem:[%s4072_s2 + $0x160] sm:$0xff] }
  0x3f   : > { %517 = vst [vmem:[#allocation2 + $0x50] sm:$0xff] %v389_v28  ;;  %v688_v25 = vld [vmem:[#allocation2 + $0x31] sm:$0xff]  ;;  %v689_v55 = vld [vmem:[#allocation2 + $0x39] sm:$0xff]  ;;  %v2941_v28 = vld [vmem:[%s4072_s2 + $0x168] sm:$0xff] }
  0x40   : > { %1750 = vmatpush.bf16.msrb.mxu2 %v2914_v5  ;;  %512 = vst [vmem:[#allocation2 + $0x28] sm:$0x3] %v493_v35  ;;  %v2958_v5 = vld [vmem:[%s4072_s2 + $0x1f0] sm:$0xff]  ;;  %v860_v22 = vpack.c.bf16 %v689_v55, %v688_v25  ;;  %v627_v44 = vld [vmem:[#allocation2 + $0x3a] sm:$0xff] }
  0x41   : > { %1839 = vmatpush.bf16.msrb.mxu3 %v2922_v14  ;;  %518 = vst [vmem:[#allocation2 + $0x58] sm:$0x3] %v495_v1  ;;  %v2942_v14 = vld [vmem:[%s4072_s2 + $0x170] sm:$0xff]  ;;  %v692_v35 = vld [vmem:[#allocation2 + $0x61] sm:$0xff]  ;;  %v784_v15 = vld [vmem:[#allocation2 + $0x39] sm:$0xff] }
  0x42   : > { %1661 = vmatpush.bf16.msrb.mxu1 %v2906_v24  ;;  %1928 = vmatpush.bf16.msrb.mxu0 %v2930_v57  ;;  %521 = vst [vmem:[#allocation2 + $0x70] sm:$0x3] %v496_v36  ;;  %v626_v24 = vld [vmem:[#allocation2 + $0x32] sm:$0xff]  ;;  %v2964_v4 = vld [vmem:[%s4072_s2 + $0x220] sm:$0xff] }
  0x43   : > { %524 = vst [vmem:[#allocation2 + $0x88] sm:$0x3] %v497_v40 }
  0x44   : > { %1751 = vmatpush.bf16.msrb.mxu2 %v2913_v61  ;;  %v867_v61 = vpack.c.bf16 %v627_v44, %v626_v24  ;;  %v698_v24 = vld [vmem:[#allocation2 + $0xa9] sm:$0xff] }
  0x45   : > { %1840 = vmatpush.bf16.msrb.mxu3 %v2921_v54  ;;  %v2949_v54 = vld [vmem:[%s4072_s2 + $0x1a8] sm:$0xff] }
  0x46   : > { %1662 = vmatpush.bf16.msrb.mxu1 %v2905_v30  ;;  %1929 = vmatpush.bf16.msrb.mxu0 %v2929_v32  ;;  %v690_v37 = vld [vmem:[#allocation2 + $0x49] sm:$0xff]  ;;  %v498_v32 = vsel %vm380_vm0, %v3341_v63, 0.0  ;;  %v694_v63 = vld [vmem:[#allocation2 + $0x79] sm:$0xff] }
  0x47   : > { %v687_v8 = vld [vmem:[#allocation2 + $0x21] sm:$0xff]  ;;  %527 = vst [vmem:[#allocation2 + $0xa0] sm:$0x3] %v498_v32 }
  0x48   : > { %1752 = vmatpush.bf16.msrb.mxu2 %v2912_v33  ;;  %v851_v11 = vpack.c.bf16 %v687_v8, %v686_v7  ;;  %v625_v38 = vld [vmem:[#allocation2 + $0x22] sm:$0xff]  ;;  %v691_v57 = vld [vmem:[#allocation2 + $0x51] sm:$0xff]  ;;  %v500_v7 = vsel %vm380_vm0, %v3215_v41, 0.0  ;;  %v632_v8 = vld [vmem:[#allocation2 + $0x7a] sm:$0xff] }
  0x49   : > { %1841 = vmatpush.bf16.msrb.mxu3 %v2920_v34  ;;  %v869_v42 = vpack.c.bf16 %v691_v57, %v690_v37  ;;  %v2965_v30 = vld [vmem:[%s4072_s2 + $0x228] sm:$0xff]  ;;  %v629_v34 = vld [vmem:[#allocation2 + $0x52] sm:$0xff]  ;;  %533 = vst [vmem:[#allocation2 + $0xd0] sm:$0x3] %v500_v7 }
  0x4a   : > { %1663 = vmatpush.bf16.msrb.mxu1 %v2904_v48  ;;  %1930 = vmatpush.bf16.msrb.mxu0 %v2928_v51  ;;  %v628_v33 = vld [vmem:[#allocation2 + $0x4a] sm:$0xff] }
  0x4b   : > { %3037 = vmatmul.msk.bf16.gmra.mxu1 %vm3365_vm3, %v3594_v52  ;;  %3041 = vmatmul.msk.bf16.gmra.mxu2 %vm3365_vm3, %v3601_v45  ;;  %v693_v48 = vld [vmem:[#allocation2 + $0x69] sm:$0xff]  ;;  %v876_v51 = vpack.c.bf16 %v629_v34, %v628_v33  ;;  %v2963_v34 = vld [vmem:[%s4072_s2 + $0x218] sm:$0xff] }
  0x4c   : > { %3045 = vmatmul.msk.bf16.gmra.mxu3 %vm3365_vm3, %v3044_v59  ;;  %2101 = vmatpush.bf16.msra.mxu2 %v2951_v18  ;;  %v878_v59 = vpack.c.bf16 %v693_v48, %v692_v35  ;;  %v630_v18 = vld [vmem:[#allocation2 + $0x62] sm:$0xff]  ;;  %v502_v35 = vsel %vm380_vm0, %v3401_v27, 0.0  ;;  %v636_v48 = vld [vmem:[#allocation2 + $0xaa] sm:$0xff] }
  0x4d   : > { %3049 = vmatmul.msk.bf16.gmra.mxu0 %vm3365_vm3, %v3048_v49  ;;  %2190 = vmatpush.bf16.msra.mxu3 %v2959_v53  ;;  %v631_v53 = vld [vmem:[#allocation2 + $0x6a] sm:$0xff]  ;;  %539 = vst [vmem:[#allocation2 + $0x100] sm:$0x3] %v502_v35 }
  0x4e   : > { %2012 = vmatpush.bf16.msra.mxu1 %v2943_v29  ;;  %2279 = vmatpush.bf16.msra.mxu0 %v2967_v39  ;;  %v695_v29 = vld [vmem:[#allocation2 + $0x81] sm:$0xff]  ;;  %v885_v39 = vpack.c.bf16 %v631_v53, %v630_v18 }
  0x4f   : > { %v635_v40 = vld [vmem:[#allocation2 + $0x9a] sm:$0xff] }
  0x50   : > { %2102 = vmatpush.bf16.msra.mxu2 %v2950_v13  ;;  %v700_v18 = vld [vmem:[#allocation2 + $0xc1] sm:$0xff]  ;;  %v701_v53 = vld [vmem:[#allocation2 + $0xc9] sm:$0xff] }
  0x51   : > { %2191 = vmatpush.bf16.msra.mxu3 %v2958_v5 }
  0x52   : > { %2013 = vmatpush.bf16.msra.mxu1 %v2942_v14  ;;  %2280 = vmatpush.bf16.msra.mxu0 %v2966_v17 }
  0x54   : > { %2103 = vmatpush.bf16.msra.mxu2 %v2949_v54 }
  0x55   : > { %2192 = vmatpush.bf16.msra.mxu3 %v2957_v56  ;;  %v2955_v56 = vld [vmem:[%s4072_s2 + $0x1d8] sm:$0xff] }
  0x56   : > { %2014 = vmatpush.bf16.msra.mxu1 %v2941_v28  ;;  %2281 = vmatpush.bf16.msra.mxu0 %v2965_v30 }
  0x5a   : > { %2015 = vmatpush.bf16.msra.mxu1 %v2940_v2  ;;  %2282 = vmatpush.bf16.msra.mxu0 %v2964_v4 }
  0x5b   : > { %3053 = vmatmul.msk.bf16.gmra.mxu1 %vm3365_vm3, %v3630_v6  ;;  %3057 = vmatmul.msk.bf16.gmra.mxu2 %vm3365_vm3, %v3636_v21 }
  0x5c   : > { %3061 = vmatmul.msk.bf16.gmra.mxu3 %vm3365_vm3, %v3060_v60  ;;  %v887_v60 = vpack.c.bf16 %v695_v29, %v694_v63 }
  0x5d   : > { %3065 = vmatmul.msk.bf16.gmra.mxu0 %vm3365_vm3, %v3064_v12 }
  0x5e   : > { %2283 = vmatpush.bf16.msra.mxu0 %v2963_v34  ;;  %v2954_v34 = vld [vmem:[%s4072_s2 + $0x1d0] sm:$0xff] }
  0x6b   : > { %1664 = vmatmul.bf16.vlgmr.msrb.gmra.mxu1 %v848_v3  ;;  %1753 = vmatmul.bf16.vlgmr.msrb.gmra.mxu2 %v849_v9  ;;  %v633_v3 = vld [vmem:[#allocation2 + $0x82] sm:$0xff]  ;;  %v696_v9 = vld [vmem:[#allocation2 + $0x91] sm:$0xff] }
  0x6c   : > { %3069 = vmatmul.msk.bf16.vlgmr.msrb.gmra.mxu3 %vm3365_vm3, %v3546_v0  ;;  %v858_v0 = vpack.c.bf16 %v625_v38, %v624_v20  ;;  %v894_v14 = vpack.c.bf16 %v633_v3, %v632_v8  ;;  %v503_v3 = vsel %vm380_vm0, %v3510_v10, 0.0  ;;  %v2946_v10 = vld [vmem:[%s4072_s2 + $0x190] sm:$0xff] }
  0x6d   : > { %1931 = vmatmul.bf16.vlgmr.msrb.gmra.mxu0 %v851_v11  ;;  %542 = vst [vmem:[#allocation2 + $0x118] sm:$0x3] %v503_v3  ;;  %v640_v3 = vld [vmem:[#allocation2 + $0xda] sm:$0xff] }
  0x7b   : > { %1669 = vmatmul.bf16.gmra.mxu1 %v851_v11  ;;  %1758 = vmatmul.bf16.gmra.mxu2 %v858_v0  ;;  %v697_v11 = vld [vmem:[#allocation2 + $0x99] sm:$0xff]  ;;  %v501_v0 = vsel %vm380_vm0, %v3287_v23, 0.0 }
  0x7c   : > { %3073 = vmatmul.msk.bf16.gmra.mxu3 %vm3365_vm3, %v3048_v49  ;;  %v499_v49 = vsel %vm380_vm0, %v3487_v47, 0.0  ;;  %v2956_v47 = vld [vmem:[%s4072_s2 + $0x1e0] sm:$0xff]  ;;  %v896_v36 = vpack.c.bf16 %v697_v11, %v696_v9  ;;  %536 = vst [vmem:[#allocation2 + $0xe8] sm:$0x3] %v501_v0  ;;  %v2947_v23 = vld [vmem:[%s4072_s2 + $0x198] sm:$0xff]  ;;  %v639_v11 = vld [vmem:[#allocation2 + $0xca] sm:$0xff] }
  0x7d   : > { %1936 = vmatmul.bf16.gmra.mxu0 %v860_v22  ;;  %530 = vst [vmem:[#allocation2 + $0xb8] sm:$0x3] %v499_v49  ;;  %2193 = vmatpush.bf16.msra.mxu3 %v2956_v47  ;;  %v669_v49 = vld [vmem:[#allocation2 + $0xc8] sm:$0xff]  ;;  %v914_v47 = vpack.c.bf16 %v701_v53, %v700_v18  ;;  %v702_v0 = vld [vmem:[#allocation2 + $0xd9] sm:$0xff]  ;;  %v2938_v53 = vld [vmem:[%s4072_s2 + $0x150] sm:$0xff] }
  0x7e   : > { %v638_v9 = vld [vmem:[#allocation2 + $0xc2] sm:$0xff] }
  0x81   : > { %2194 = vmatpush.bf16.msra.mxu3 %v2955_v56 }
  0x84   : > { %v699_v44 = vld [vmem:[#allocation2 + $0xb1] sm:$0xff] }
  0x85   : > { %2195 = vmatpush.bf16.msra.mxu3 %v2954_v34 }
  0x8b   : > { %1674 = vmatmul.bf16.gmra.mxu1 %v860_v22  ;;  %1763 = vmatmul.bf16.gmra.mxu2 %v867_v61  ;;  %v634_v22 = vld [vmem:[#allocation2 + $0x92] sm:$0xff] }
  0x8c   : > { %3077 = vmatmul.msk.bf16.gmra.mxu3 %vm3365_vm3, %v3064_v12  ;;  %v903_v57 = vpack.c.bf16 %v635_v40, %v634_v22  ;;  %v703_v22 = vld [vmem:[#allocation2 + $0xe1] sm:$0xff] }
  0x8d   : > { %1941 = vmatmul.bf16.gmra.mxu0 %v869_v42 }
  0x9b   : > { %1679 = vmatmul.bf16.gmra.mxu1 %v869_v42  ;;  %1768 = vmatmul.bf16.gmra.mxu2 %v876_v51  ;;  %v905_v42 = vpack.c.bf16 %v699_v44, %v698_v24  ;;  %v637_v51 = vld [vmem:[#allocation2 + $0xb2] sm:$0xff]  ;;  %v921_v44 = vpack.c.bf16 %v639_v11, %v638_v9  ;;  %v641_v9 = vld [vmem:[#allocation2 + $0xe2] sm:$0xff] }
  0x9c   : > { %3081 = vmatmul.msk.bf16.gmra.mxu3 %vm3365_vm3, %v3371_v16  ;;  %v2948_v16 = vld [vmem:[%s4072_s2 + $0x1a0] sm:$0xff] }
  0x9d   : > { %1946 = vmatmul.bf16.gmra.mxu0 %v878_v59  ;;  %2104 = vmatpush.bf16.msra.mxu2 %v2948_v16  ;;  %v705_v11 = vld [vmem:[#allocation2 + $0xf9] sm:$0xff] }
  0xa1   : > { %2105 = vmatpush.bf16.msra.mxu2 %v2947_v23  ;;  %v923_v23 = vpack.c.bf16 %v703_v22, %v702_v0  ;;  %v3813_v22 = vpack.c.bf16 %v641_v9, %v640_v3 }
  0xa5   : > { %2106 = vmatpush.bf16.msra.mxu2 %v2946_v10 }
  0xa8   : > { %v3690_v58 = vpop.f32.mrf.mxu1 }
  0xaa   : > { %v3692_v12 = vpop.f32.mrf.mxu0 }
  0xab   : > { %1684 = vmatmul.bf16.gmra.mxu1 %v878_v59  ;;  %1773 = vmatmul.bf16.gmra.mxu2 %v885_v39  ;;  %v668_v59 = vld [vmem:[#allocation2 + $0xc0] sm:$0xff]  ;;  %v912_v39 = vpack.c.bf16 %v637_v51, %v636_v48 }
  0xac   : > { %3085 = vmatmul.msk.bf16.gmra.mxu3 %vm3365_vm3, %v3526_v50  ;;  %v913_v16 = vpack.c.bf16 %v669_v49, %v668_v59 }
  0xad   : > { %1951 = vmatmul.bf16.gmra.mxu0 %v887_v60 }
  0xae   : > { %v3703_v31 = vpop.f32.mrf.mxu2 }
  0xaf   : > { %v3705_v1 = vpop.f32.mrf.mxu3 }
  0xb0   : > { %v3710_v50 = vpop.f32.mrf.mxu1 }
  0xb2   : > { %v3712_v62 = vpop.f32.mrf.mxu0 }
  0xb6   : > { %v3719_v13 = vpop.f32.mrf.mxu2 }
  0xb7   : > { %v3721_v5 = vpop.f32.mrf.mxu3 }
  0xb8   : > { %v3723_v17 = vpop.f32.mrf.mxu1 }
  0xba   : > { %v3725_v20 = vpop.f32.mrf.mxu0 }
  0xbb   : > { %1689 = vmatmul.bf16.gmra.mxu1 %v887_v60  ;;  %1778 = vmatmul.bf16.gmra.mxu2 %v894_v14  ;;  %v670_v14 = vld [vmem:[#allocation2 + $0xd8] sm:$0xff] }
  0xbc   : > { %3089 = vmatmul.msk.bf16.gmra.mxu3 %vm3365_vm3, %v3594_v52 }
  0xbd   : > { %1956 = vmatmul.bf16.gmra.mxu0 %v896_v36 }
  0xbe   : > { %v3730_v41 = vpop.f32.mrf.mxu2 }
  0xbf   : > { %v3732_v38 = vpop.f32.mrf.mxu3 }
  0xc0   : > { %v3734_v25 = vpop.f32.mrf.mxu1 }
  0xc2   : > { %v3736_v55 = vpop.f32.mrf.mxu0 }
  0xc6   : > { %v3740_v37 = vpop.f32.mrf.mxu2 }
  0xc7   : > { %v3742_v52 = vpop.f32.mrf.mxu3 }
  0xc8   : > { %v3744_v61 = vpop.f32.mrf.mxu1 }
  0xca   : > { %v3746_v54 = vpop.f32.mrf.mxu0 }
  0xcb   : > { %1694 = vmatmul.bf16.gmra.mxu1 %v896_v36  ;;  %1783 = vmatmul.bf16.gmra.mxu2 %v903_v57  ;;  %v671_v36 = vld [vmem:[#allocation2 + $0xe0] sm:$0xff] }
  0xcc   : > { %3093 = vmatmul.msk.bf16.gmra.mxu3 %vm3365_vm3, %v3630_v6  ;;  %v2939_v6 = vld [vmem:[%s4072_s2 + $0x158] sm:$0xff] }
  0xcd   : > { %1961 = vmatmul.bf16.gmra.mxu0 %v905_v42  ;;  %2016 = vmatpush.bf16.msra.mxu1 %v2939_v6 }
  0xce   : > { %v3757_v28 = vpop.f32.mrf.mxu2 }
  0xcf   : > { %v3759_v30 = vpop.f32.mrf.mxu3 }
  0xd0   : > { %v3761_v32 = vpop.f32.mrf.mxu1 }
  0xd1   : > { %2017 = vmatpush.bf16.msra.mxu1 %v2938_v53  ;;  %v706_v53 = vld [vmem:[#allocation2 + $0x109] sm:$0xff] }
  0xd2   : > { %v3763_v33 = vpop.f32.mrf.mxu0 }
  0xd6   : > { %v3773_v63 = vpop.f32.mrf.mxu2 }
  0xd7   : > { %v3775_v29 = vpop.f32.mrf.mxu3 }
  0xd8   : > { %v3777_v60 = vpop.f32.mrf.mxu1 }
  0xda   : > { %v3779_v2 = vpop.f32.mrf.mxu0 }
  0xdb   : > { %1699 = vmatmul.bf16.gmra.mxu1 %v905_v42  ;;  %1788 = vmatmul.bf16.gmra.mxu2 %v912_v39  ;;  %v922_v42 = vpack.c.bf16 %v671_v36, %v670_v14  ;;  %v2962_v39 = vld [vmem:[%s4072_s2 + $0x210] sm:$0xff] }
  0xdc   : > { %1877 = vmatmul.bf16.gmra.mxu3 %v913_v16  ;;  %2284 = vmatpush.bf16.msra.mxu0 %v2962_v39  ;;  %v504_v16 = vsel %vm380_vm0, %v3219_v43, 0.0  ;;  %v707_v39 = vld [vmem:[#allocation2 + $0x111] sm:$0xff] }
  0xdd   : > { %1966 = vmatmul.bf16.gmra.mxu0 %v914_v47  ;;  %545 = vst [vmem:[#allocation2 + $0x130] sm:$0x3] %v504_v16 }
  0xde   : > { %v3781_v27 = vpop.f32.mrf.mxu2 }
  0xdf   : > { %v3783_v4 = vpop.f32.mrf.mxu3 }
  0xe0   : > { %v3785_v7 = vpop.f32.mrf.mxu1 }
  0xe2   : > { %v3787_v8 = vpop.f32.mrf.mxu0 }
  0xe6   : > { %v3791_v40 = vpop.f32.mrf.mxu2 }
  0xe7   : > { %v3793_v24 = vpop.f32.mrf.mxu3 }
  0xe8   : > { %v1665_v57 = vpop.f32.mrf.mxu1 }
  0xe9   : > { %v1666_v56 = vadd.f32 %v1665_v57, %v3692_v12 }
  0xea   : > { %v1932_v6 = vpop.f32.mrf.mxu0 }
  0xeb   : > { %1704 = vmatmul.bf16.gmra.mxu1 %v914_v47  ;;  %1793 = vmatmul.bf16.gmra.mxu2 %v921_v44 }
  0xec   : > { %1882 = vmatmul.bf16.gmra.mxu3 %v922_v42 }
  0xed   : > { %1971 = vmatmul.bf16.gmra.mxu0 %v923_v23 }
  0xee   : > { %v1754_v35 = vpop.f32.mrf.mxu2 }
  0xef   : > { %v1755_v48 = vadd.f32 %v1754_v35, %v1666_v56  ;;  %v1843_v51 = vpop.f32.mrf.mxu3 }
  0xf0   : > { %v1667_v59 = vpop.f32.mrf.mxu1 }
  0xf1   : > { %v1844_v12 = vadd.f32 %v1843_v51, %v1755_v48  ;;  %v1668_v49 = vadd.f32 %v1667_v59, %v3712_v62  ;;  %v704_v62 = vld [vmem:[#allocation2 + $0xf1] sm:$0xff] }
  0xf2   : > { %v1934_v18 = vpop.f32.mrf.mxu0  ;;  %v932_v57 = vpack.c.bf16 %v705_v11, %v704_v62  ;;  %v941_v11 = vpack.c.bf16 %v707_v39, %v706_v53 }
  0xf3   : > { %v3811_v47 = vadd.f32 %v1932_v6, %v1844_v12 }
  0xf6   : > { %v1756_v14 = vpop.f32.mrf.mxu2 }
  0xf7   : > { %v1757_v36 = vadd.f32 %v1756_v14, %v1668_v49  ;;  %v1845_v0 = vpop.f32.mrf.mxu3  ;;  %v642_v49 = vld [vmem:[#allocation2 + $0xf2] sm:$0xff] }
  0xf8   : > { %v1670_v44 = vpop.f32.mrf.mxu1 }
  0xf9   : > { %v1846_v42 = vadd.f32 %v1845_v0, %v1757_v36  ;;  %v1671_v56 = vadd.f32 %v1670_v44, %v3725_v20  ;;  %v505_v20 = vsel %vm380_vm0, %v3292_v26, 0.0  ;;  %v2945_v0 = vld [vmem:[%s4072_s2 + $0x188] sm:$0xff] }
  0xfa   : > { %v1937_v10 = vpop.f32.mrf.mxu0  ;;  %548 = vst [vmem:[#allocation2 + $0x148] sm:$0x3] %v505_v20  ;;  %v2953_v44 = vld [vmem:[%s4072_s2 + $0x1c8] sm:$0xff]  ;;  %2107 = vmatpush.bf16.msra.mxu2 %v2945_v0  ;;  %v676_v20 = vld [vmem:[#allocation2 + $0x120] sm:$0xff] }
  0xfb   : > { %1709 = vmatmul.bf16.gmra.mxu1 %v923_v23  ;;  %1798 = vmatmul.bf16.gmra.mxu2 %v3813_v22  ;;  %v3817_v43 = vadd.f32 %v1934_v18, %v1846_v42  ;;  %v643_v18 = vld [vmem:[#allocation2 + $0xfa] sm:$0xff] }
  0xfc   : > { %3097 = vmatmul.msk.bf16.gmra.mxu3 %vm3365_vm3, %v3601_v45  ;;  %v3827_v9 = vpack.c.bf16 %v643_v18, %v642_v49  ;;  %v708_v49 = vld [vmem:[#allocation2 + $0x121] sm:$0xff]  ;;  %v709_v18 = vld [vmem:[#allocation2 + $0x129] sm:$0xff] }
  0xfd   : > { %1976 = vmatmul.bf16.gmra.mxu0 %v932_v57  ;;  %2196 = vmatpush.bf16.msra.mxu3 %v2953_v44 }
  0xfe   : > { %v1759_v6 = vpop.f32.mrf.mxu2 }
  0xff   : > { %v1760_v34 = vadd.f32 %v1759_v6, %v1671_v56  ;;  %v1848_v35 = vpop.f32.mrf.mxu3 }
 0x100   : > { %v1672_v48 = vpop.f32.mrf.mxu1 }
 0x101   : > { %v1849_v51 = vadd.f32 %v1848_v35, %v1760_v34  ;;  %v1673_v59 = vadd.f32 %v1672_v48, %v3736_v55  ;;  %v2961_v35 = vld [vmem:[%s4072_s2 + $0x208] sm:$0xff]  ;;  %v506_v48 = vsel %vm380_vm0, %v3420_v46, 0.0 }
 0x102   : > { %v1939_v12 = vpop.f32.mrf.mxu0  ;;  %2285 = vmatpush.bf16.msra.mxu0 %v2961_v35  ;;  %551 = vst [vmem:[#allocation2 + $0x160] sm:$0x3] %v506_v48  ;;  %v647_v35 = vld [vmem:[#allocation2 + $0x12a] sm:$0xff]  ;;  %v679_v48 = vld [vmem:[#allocation2 + $0x140] sm:$0xff] }
 0x103   : > { %v3825_v23 = vadd.f32 %v1937_v10, %v1849_v51 }
 0x106   : > { %v1761_v45 = vpop.f32.mrf.mxu2 }
 0x107   : > { %v1762_v16 = vadd.f32 %v1761_v45, %v1673_v59  ;;  %v1850_v3 = vpop.f32.mrf.mxu3  ;;  %v644_v59 = vld [vmem:[#allocation2 + $0x10a] sm:$0xff] }
 0x108   : > { %v1675_v62 = vpop.f32.mrf.mxu1 }
 0x109   : > { %v1851_v14 = vadd.f32 %v1850_v3, %v1762_v16  ;;  %v1676_v55 = vadd.f32 %v1675_v62, %v3746_v54 }
 0x10a   : > { %v1942_v36 = vpop.f32.mrf.mxu0 }
 0x10b   : > { %1714 = vmatmul.bf16.gmra.mxu1 %v932_v57  ;;  %1803 = vmatmul.bf16.gmra.mxu2 %v3827_v9  ;;  %v3831_v26 = vadd.f32 %v1939_v12, %v1851_v14  ;;  %v645_v12 = vld [vmem:[#allocation2 + $0x112] sm:$0xff]  ;;  %v950_v14 = vpack.c.bf16 %v709_v18, %v708_v49 }
 0x10c   : > { %3101 = vmatmul.msk.bf16.gmra.mxu3 %vm3365_vm3, %v3636_v21  ;;  %v2937_v21 = vld [vmem:[%s4072_s2 + $0x148] sm:$0xff]  ;;  %v3853_v16 = vpack.c.bf16 %v645_v12, %v644_v59  ;;  %v710_v59 = vld [vmem:[#allocation2 + $0x139] sm:$0xff] }
 0x10d   : > { %1981 = vmatmul.bf16.gmra.mxu0 %v941_v11  ;;  %2018 = vmatpush.bf16.msra.mxu1 %v2937_v21  ;;  %v507_v21 = vsel %vm380_vm0, %v3522_v19, 0.0  ;;  %v711_v12 = vld [vmem:[#allocation2 + $0x141] sm:$0xff] }
 0x10e   : > { %v1764_v54 = vpop.f32.mrf.mxu2  ;;  %554 = vst [vmem:[#allocation2 + $0x178] sm:$0x3] %v507_v21 }
 0x10f   : > { %v1765_v57 = vadd.f32 %v1764_v54, %v1676_v55  ;;  %v1853_v42 = vpop.f32.mrf.mxu3 }
 0x110   : > { %v1677_v56 = vpop.f32.mrf.mxu1 }
 0x111   : > { %v1854_v10 = vadd.f32 %v1853_v42, %v1765_v57  ;;  %v1678_v6 = vadd.f32 %v1677_v56, %v3763_v33  ;;  %v677_v33 = vld [vmem:[#allocation2 + $0x128] sm:$0xff] }
 0x112   : > { %v1944_v34 = vpop.f32.mrf.mxu0  ;;  %v949_v62 = vpack.c.bf16 %v677_v33, %v676_v20 }
 0x113   : > { %v3851_v51 = vadd.f32 %v1942_v36, %v1854_v10 }
 0x116   : > { %v1766_v53 = vpop.f32.mrf.mxu2 }
 0x117   : > { %v1767_v39 = vadd.f32 %v1766_v53, %v1678_v6  ;;  %v1855_v45 = vpop.f32.mrf.mxu3 }
 0x118   : > { %v1680_v3 = vpop.f32.mrf.mxu1 }
 0x119   : > { %v1856_v55 = vadd.f32 %v1855_v45, %v1767_v39  ;;  %v1681_v46 = vadd.f32 %v1680_v3, %v3779_v2  ;;  %v959_v39 = vpack.c.bf16 %v711_v12, %v710_v59  ;;  %v241_v3 = vld [vmem:[%s3172_s28 + $0xf0] sm:$0xff] }
 0x11a   : > { %v1947_v36 = vpop.f32.mrf.mxu0 }
 0x11b   : > { %1719 = vmatmul.bf16.gmra.mxu1 %v941_v11  ;;  %1808 = vmatmul.bf16.gmra.mxu2 %v3853_v16  ;;  %v3857_v0 = vadd.f32 %v1944_v34, %v1856_v55  ;;  %v646_v11 = vld [vmem:[#allocation2 + $0x122] sm:$0xff]  ;;  %v678_v34 = vld [vmem:[#allocation2 + $0x138] sm:$0xff]  ;;  %v3003_v55 = vld [vmem:[%s4071_s1] ss:$0 sm:$0xff] }
 0x11c   : > { %1897 = vmatmul.bf16.gmra.mxu3 %v949_v62  ;;  %v3864_v18 = vpack.c.bf16 %v647_v35, %v646_v11  ;;  %v958_v53 = vpack.c.bf16 %v679_v48, %v678_v34  ;;  %v242_v62 = vld [vmem:[%s3172_s28 + $0xf8] sm:$0xff] }
 0x11d   : > { %1986 = vmatmul.bf16.gmra.mxu0 %v950_v14 }
 0x11e   : > { %v1769_v44 = vpop.f32.mrf.mxu2 }
 0x11f   : > { %v1770_v54 = vadd.f32 %v1769_v44, %v1681_v46  ;;  %v1858_v57 = vpop.f32.mrf.mxu3  ;;  %v274_v46 = vmul.f32 %v3003_v55, %v241_v3  ;;  %v2944_v44 = vld [vmem:[%s4072_s2 + $0x180] sm:$0xff] }
 0x120   : > { %v1682_v42 = vpop.f32.mrf.mxu1  ;;  %2108 = vmatpush.bf16.msra.mxu2 %v2944_v44  ;;  %v681_v44 = vld [vmem:[#allocation2 + $0x158] sm:$0xff] }
 0x121   : > { %v1859_v56 = vadd.f32 %v1858_v57, %v1770_v54  ;;  %v1683_v10 = vadd.f32 %v1682_v42, %v3787_v8  ;;  %v2952_v54 = vld [vmem:[%s4072_s2 + $0x1c0] sm:$0xff] }
 0x122   : > { %v1949_v6 = vpop.f32.mrf.mxu0  ;;  %v3004_v42 = vld [vmem:[%s4071_s1 + $0x1] ss:$0 sm:$0xff]  ;;  %2197 = vmatpush.bf16.msra.mxu3 %v2952_v54  ;;  %v712_v54 = vld [vmem:[#allocation2 + $0x151] sm:$0xff] }
 0x123   : > { %v3862_v2 = vadd.f32 %v1947_v36, %v1859_v56  ;;  %v275_v36 = vmul.f32 %v3003_v55, %v242_v62  ;;  %v307_v56 = vadd.f32 %v3004_v42, %v274_v46  ;;  %v648_v62 = vld [vmem:[#allocation2 + $0x13a] sm:$0xff]  ;;  %v649_v55 = vld [vmem:[#allocation2 + $0x142] sm:$0xff]  ;;  %v680_v46 = vld [vmem:[#allocation2 + $0x150] sm:$0xff] }
 0x125   : > { %v339_v34 = vmax.f32 %v307_v56, 0.0 }
 0x126   : > { %v1771_v20 = vpop.f32.mrf.mxu2 }
 0x127   : > { %v1772_v33 = vadd.f32 %v1771_v20, %v1683_v10  ;;  %v1860_v49 = vpop.f32.mrf.mxu3  ;;  %v308_v10 = vadd.f32 %v3004_v42, %v275_v36 }
 0x128   : > { %v1685_v8 = vpop.f32.mrf.mxu1 }
 0x129   : > { %v1861_v19 = vadd.f32 %v1860_v49, %v1772_v33  ;;  %v340_v48 = vmax.f32 %v308_v10, 0.0  ;;  %v3890_v33 = vrot.slane %v339_v34, 7 }
 0x12a   : > { %v1952_v45 = vpop.f32.mrf.mxu0 }
 0x12b   : > { %1724 = vmatmul.bf16.gmra.mxu1 %v950_v14  ;;  %1813 = vmatmul.bf16.gmra.mxu2 %v3864_v18  ;;  %v3878_v57 = vadd.f32 %v1949_v6, %v1861_v19  ;;  %v1686_v14 = vadd.f32 %v1685_v8, %v3690_v58  ;;  %v2936_v58 = vld [vmem:[%s4072_s2 + $0x140] sm:$0xff]  ;;  %v427_v49 = vrot.slane %v340_v48, 7 }
 0x12c   : > { %1902 = vmatmul.bf16.gmra.mxu3 %v958_v53  ;;  %v2960_v6 = vld [vmem:[%s4072_s2 + $0x200] sm:$0xff]  ;;  %2019 = vmatpush.bf16.msra.mxu1 %v2936_v58  ;;  %v492_v53 = vsel %vm380_vm0, 0.0, %v3890_v33 }
 0x12d   : > { %1991 = vmatmul.bf16.gmra.mxu0 %v959_v39  ;;  %v3894_v8 = vsel %vm380_vm0, %v3890_v33, %v427_v49  ;;  %v508_v19 = vsel %vm380_vm0, %v427_v49, 0.0  ;;  %555 = vst [vmem:[#allocation2 + $0x180] sm:$0xff] %v492_v53 }
 0x12e   : > { %v1774_v21 = vpop.f32.mrf.mxu2  ;;  %2286 = vmatpush.bf16.msra.mxu0 %v2960_v6  ;;  %556 = vst [vmem:[#allocation2 + $0x188] sm:$0xff] %v3894_v8 }
 0x12f   : > { %v1775_v11 = vadd.f32 %v1774_v21, %v1686_v14  ;;  %v1863_v35 = vpop.f32.mrf.mxu3  ;;  %v713_v14 = vld [vmem:[#allocation2 + $0x159] sm:$0xff]  ;;  %557 = vst [vmem:[#allocation2 + $0x190] sm:$0x3] %v508_v19  ;;  %v3903_v21 = vpack.c.bf16 %v649_v55, %v648_v62 }
 0x130   : > { %v1687_v59 = vpop.f32.mrf.mxu1  ;;  %v650_v55 = vld [vmem:[#allocation2 + $0x152] sm:$0xff] }
 0x131   : > { %v1864_v12 = vadd.f32 %v1863_v35, %v1775_v11  ;;  %v1688_v36 = vadd.f32 %v1687_v59, %v3710_v50  ;;  %v968_v35 = vpack.c.bf16 %v713_v14, %v712_v54  ;;  %v715_v54 = vld [vmem:[#allocation2 + $0x171] sm:$0xff] }
 0x132   : > { %v1954_v20 = vpop.f32.mrf.mxu0 }
 0x133   : > { %v3899_v3 = vadd.f32 %v1952_v45, %v1864_v12  ;;  %v967_v45 = vpack.c.bf16 %v681_v44, %v680_v46  ;;  %v651_v46 = vld [vmem:[#allocation2 + $0x15a] sm:$0xff]  ;;  %v683_v44 = vld [vmem:[#allocation2 + $0x170] sm:$0xff] }
 0x136   : > { %v1776_v42 = vpop.f32.mrf.mxu2 }
 0x137   : > { %v1777_v56 = vadd.f32 %v1776_v42, %v1688_v36  ;;  %v1865_v10 = vpop.f32.mrf.mxu3  ;;  %v682_v36 = vld [vmem:[#allocation2 + $0x168] sm:$0xff] }
 0x138   : > { %v1690_v11 = vpop.f32.mrf.mxu1 }
 0x139   : > { %v1866_v34 = vadd.f32 %v1865_v10, %v1777_v56  ;;  %v1691_v59 = vadd.f32 %v1690_v11, %v3723_v17  ;;  %v3912_v17 = vpack.c.bf16 %v651_v46, %v650_v55  ;;  %v976_v11 = vpack.c.bf16 %v683_v44, %v682_v36  ;;  %v652_v36 = vld [vmem:[#allocation2 + $0x16a] sm:$0xff]  ;;  %v716_v44 = vld [vmem:[#allocation2 + $0x181] sm:$0xff] }
 0x13a   : > { %v1957_v48 = vpop.f32.mrf.mxu0 }
 0x13b   : > { %1729 = vmatmul.bf16.gmra.mxu1 %v959_v39  ;;  %1818 = vmatmul.bf16.gmra.mxu2 %v3903_v21  ;;  %v3906_v50 = vadd.f32 %v1954_v20, %v1866_v34  ;;  %v714_v20 = vld [vmem:[#allocation2 + $0x169] sm:$0xff] }
 0x13c   : > { %1907 = vmatmul.bf16.gmra.mxu3 %v967_v45  ;;  %v977_v45 = vpack.c.bf16 %v715_v54, %v714_v20  ;;  %v717_v20 = vld [vmem:[#allocation2 + $0x189] sm:$0xff] }
 0x13d   : > { %1996 = vmatmul.bf16.gmra.mxu0 %v968_v35 }
 0x13e   : > { %v1779_v12 = vpop.f32.mrf.mxu2 }
 0x13f   : > { %v1780_v58 = vadd.f32 %v1779_v12, %v1691_v59  ;;  %v1868_v6 = vpop.f32.mrf.mxu3 }
 0x140   : > { %v1692_v49 = vpop.f32.mrf.mxu1 }
 0x141   : > { %v1869_v53 = vadd.f32 %v1868_v6, %v1780_v58  ;;  %v1693_v39 = vadd.f32 %v1692_v49, %v3734_v25 }
 0x142   : > { %v1959_v19 = vpop.f32.mrf.mxu0 }
 0x143   : > { %v3909_v62 = vadd.f32 %v1957_v48, %v1869_v53 }
 0x146   : > { %v1781_v14 = vpop.f32.mrf.mxu2 }
 0x147   : > { %v1782_v42 = vadd.f32 %v1781_v14, %v1693_v39  ;;  %v1870_v56 = vpop.f32.mrf.mxu3  ;;  %v653_v39 = vld [vmem:[#allocation2 + $0x172] sm:$0xff] }
 0x148   : > { %v1695_v10 = vpop.f32.mrf.mxu1 }
 0x149   : > { %v1871_v34 = vadd.f32 %v1870_v56, %v1782_v42  ;;  %v1696_v25 = vadd.f32 %v1695_v10, %v3744_v61  ;;  %v3921_v42 = vpack.c.bf16 %v653_v39, %v652_v36  ;;  %v986_v56 = vpack.c.bf16 %v717_v20, %v716_v44  ;;  %v719_v36 = vld [vmem:[#allocation2 + $0x22] sm:$0xff]  ;;  %v783_v44 = vld [vmem:[#allocation2 + $0x31] sm:$0xff]  ;;  %v816_v20 = vld [vmem:[#allocation2 + $0x3a] sm:$0xff] }
 0x14a   : > { %v1962_v59 = vpop.f32.mrf.mxu0 }
 0x14b   : > { %1734 = vmatmul.bf16.gmra.mxu1 %v968_v35  ;;  %1823 = vmatmul.bf16.gmra.mxu2 %v3912_v17  ;;  %v3915_v48 = vadd.f32 %v1959_v19, %v1871_v34 }
 0x14c   : > { %1912 = vmatmul.bf16.gmra.mxu3 %v976_v11 }
 0x14d   : > { %2001 = vmatmul.bf16.gmra.mxu0 %v977_v45 }
 0x14e   : > { %v1784_v12 = vpop.f32.mrf.mxu2 }
 0x14f   : > { %v1785_v58 = vadd.f32 %v1784_v12, %v1696_v25  ;;  %v1873_v6 = vpop.f32.mrf.mxu3 }
 0x150   : > { %v1697_v49 = vpop.f32.mrf.mxu1 }
 0x151   : > { %v1874_v53 = vadd.f32 %v1873_v6, %v1785_v58  ;;  %v1698_v35 = vadd.f32 %v1697_v49, %v3761_v32 }
 0x152   : > { %v1964_v55 = vpop.f32.mrf.mxu0 }
 0x153   : > { %v3918_v46 = vadd.f32 %v1962_v59, %v1874_v53  ;;  %v3104_v59 = vpack.c.bf16 %v3894_v8, %v3890_v33  ;;  %v815_v8 = vld [vmem:[#allocation2 + $0x32] sm:$0xff] }
 0x156   : > { %v1786_v19 = vpop.f32.mrf.mxu2 }
 0x157   : > { %v1787_v54 = vadd.f32 %v1786_v19, %v1698_v35  ;;  %v1875_v14 = vpop.f32.mrf.mxu3  ;;  %v752_v35 = vld [vmem:[#allocation2 + $0x38] sm:$0xff] }
 0x158   : > { %v1700_v61 = vpop.f32.mrf.mxu1 }
 0x159   : > { %v1876_v10 = vadd.f32 %v1875_v14, %v1787_v54  ;;  %v1701_v32 = vadd.f32 %v1700_v61, %v3777_v60 }
 0x15a   : > { %v1967_v11 = vpop.f32.mrf.mxu0 }
 0x15b   : > { %1739 = vmatmul.bf16.gmra.mxu1 %v977_v45  ;;  %1828 = vmatmul.bf16.gmra.mxu2 %v3921_v42  ;;  %v3924_v34 = vadd.f32 %v1964_v55, %v1876_v10  ;;  %v718_v45 = vld [vmem:[#allocation2 + $0x1a] sm:$0xff]  ;;  %v751_v55 = vld [vmem:[#allocation2 + $0x30] sm:$0xff]  ;;  %v854_v10 = vpack.c.bf16 %v784_v15, %v783_v44 }
 0x15c   : > { %3105 = vmatmul.msk.bf16.gmra.mxu3 %vm3365_vm3, %v3104_v59  ;;  %v852_v14 = vpack.c.bf16 %v719_v36, %v718_v45  ;;  %v853_v61 = vpack.c.bf16 %v752_v35, %v751_v55  ;;  %v855_v59 = vpack.c.bf16 %v816_v20, %v815_v8  ;;  %v753_v55 = vld [vmem:[#allocation2 + $0x48] sm:$0xff]  ;;  %v754_v35 = vld [vmem:[#allocation2 + $0x50] sm:$0xff] }
 0x15d   : > { %2006 = vmatmul.bf16.gmra.mxu0 %v986_v56  ;;  %v785_v44 = vld [vmem:[#allocation2 + $0x49] sm:$0xff]  ;;  %v786_v8 = vld [vmem:[#allocation2 + $0x51] sm:$0xff] }
 0x15e   : > { %v1789_v25 = vpop.f32.mrf.mxu2  ;;  %v818_v20 = vld [vmem:[#allocation2 + $0x52] sm:$0xff] }
 0x15f   : > { %v1790_v12 = vadd.f32 %v1789_v25, %v1701_v32  ;;  %v1878_v58 = vpop.f32.mrf.mxu3 }
 0x160   : > { %v1702_v6 = vpop.f32.mrf.mxu1 }
 0x161   : > { %v1879_v49 = vadd.f32 %v1878_v58, %v1790_v12  ;;  %v1703_v33 = vadd.f32 %v1702_v6, %v3785_v7 }
 0x162   : > { %v1969_v53 = vpop.f32.mrf.mxu0 }
 0x163   : > { %v3931_v39 = vadd.f32 %v1967_v11, %v1879_v49 }
 0x166   : > { %v1791_v19 = vpop.f32.mrf.mxu2 }
 0x167   : > { %v1792_v60 = vadd.f32 %v1791_v19, %v1703_v33  ;;  %v1880_v54 = vpop.f32.mrf.mxu3 }
 0x168   : > { %v1705_v56 = vpop.f32.mrf.mxu1 }
 0x169   : > { %v1881_v32 = vadd.f32 %v1880_v54, %v1792_v60  ;;  %v1706_v7 = vadd.f32 %v1705_v56, %v3703_v31  ;;  %v862_v31 = vpack.c.bf16 %v754_v35, %v753_v55  ;;  %v755_v35 = vld [vmem:[#allocation2 + $0x60] sm:$0xff] }
 0x16a   : > { %v1972_v25 = vpop.f32.mrf.mxu0 }
 0x16b   : > { %2020 = vmatmul.bf16.vlgmr.msra.gmra.mxu1 %v852_v14  ;;  %2109 = vmatmul.bf16.vlgmr.msra.gmra.mxu2 %v853_v61  ;;  %v3934_v11 = vadd.f32 %v1969_v53, %v1881_v32  ;;  %v817_v53 = vld [vmem:[#allocation2 + $0x4a] sm:$0xff]  ;;  %v863_v61 = vpack.c.bf16 %v786_v8, %v785_v44 }
 0x16c   : > { %2198 = vmatmul.bf16.vlgmr.msra.gmra.mxu3 %v854_v10  ;;  %v864_v56 = vpack.c.bf16 %v818_v20, %v817_v53  ;;  %v756_v44 = vld [vmem:[#allocation2 + $0x68] sm:$0xff] }
 0x16d   : > { %2287 = vmatmul.bf16.vlgmr.msra.gmra.mxu0 %v855_v59  ;;  %v788_v8 = vld [vmem:[#allocation2 + $0x69] sm:$0xff] }
 0x16e   : > { %v1794_v12 = vpop.f32.mrf.mxu2  ;;  %v820_v53 = vld [vmem:[#allocation2 + $0x6a] sm:$0xff] }
 0x16f   : > { %v1795_v58 = vadd.f32 %v1794_v12, %v1706_v7  ;;  %v1883_v6 = vpop.f32.mrf.mxu3 }
 0x170   : > { %v1707_v49 = vpop.f32.mrf.mxu1 }
 0x171   : > { %v1884_v33 = vadd.f32 %v1883_v6, %v1795_v58  ;;  %v1708_v15 = vadd.f32 %v1707_v49, %v3719_v13 }
 0x172   : > { %v1974_v45 = vpop.f32.mrf.mxu0 }
 0x173   : > { %v3937_v36 = vadd.f32 %v1972_v25, %v1884_v33 }
 0x176   : > { %v1796_v19 = vpop.f32.mrf.mxu2 }
 0x177   : > { %v1797_v60 = vadd.f32 %v1796_v19, %v1708_v15  ;;  %v1885_v54 = vpop.f32.mrf.mxu3  ;;  %v787_v15 = vld [vmem:[#allocation2 + $0x61] sm:$0xff] }
 0x178   : > { %v1710_v14 = vpop.f32.mrf.mxu1 }
 0x179   : > { %v1886_v10 = vadd.f32 %v1885_v54, %v1797_v60  ;;  %v1711_v13 = vadd.f32 %v1710_v14, %v3730_v41  ;;  %v871_v41 = vpack.c.bf16 %v756_v44, %v755_v35  ;;  %v757_v44 = vld [vmem:[#allocation2 + $0x78] sm:$0xff] }
 0x17a   : > { %v1977_v32 = vpop.f32.mrf.mxu0 }
 0x17b   : > { %2025 = vmatmul.bf16.gmra.mxu1 %v855_v59  ;;  %2114 = vmatmul.bf16.gmra.mxu2 %v862_v31  ;;  %v3940_v25 = vadd.f32 %v1974_v45, %v1886_v10  ;;  %v819_v45 = vld [vmem:[#allocation2 + $0x62] sm:$0xff]  ;;  %v872_v31 = vpack.c.bf16 %v788_v8, %v787_v15 }
 0x17c   : > { %2203 = vmatmul.bf16.gmra.mxu3 %v863_v61  ;;  %v873_v14 = vpack.c.bf16 %v820_v53, %v819_v45  ;;  %v758_v15 = vld [vmem:[#allocation2 + $0x80] sm:$0xff] }
 0x17d   : > { %2292 = vmatmul.bf16.gmra.mxu0 %v864_v56  ;;  %v790_v8 = vld [vmem:[#allocation2 + $0x81] sm:$0xff] }
 0x17e   : > { %v1799_v7 = vpop.f32.mrf.mxu2  ;;  %v822_v45 = vld [vmem:[#allocation2 + $0x82] sm:$0xff] }
 0x17f   : > { %v1800_v12 = vadd.f32 %v1799_v7, %v1711_v13  ;;  %v1888_v58 = vpop.f32.mrf.mxu3 }
 0x180   : > { %v1712_v6 = vpop.f32.mrf.mxu1 }
 0x181   : > { %v1889_v49 = vadd.f32 %v1888_v58, %v1800_v12  ;;  %v1713_v59 = vadd.f32 %v1712_v6, %v3740_v37 }
 0x182   : > { %v1979_v33 = vpop.f32.mrf.mxu0 }
 0x183   : > { %v3943_v55 = vadd.f32 %v1977_v32, %v1889_v49 }
 0x186   : > { %v1801_v20 = vpop.f32.mrf.mxu2 }
 0x187   : > { %v1802_v19 = vadd.f32 %v1801_v20, %v1713_v59  ;;  %v1890_v60 = vpop.f32.mrf.mxu3  ;;  %v789_v59 = vld [vmem:[#allocation2 + $0x79] sm:$0xff] }
 0x188   : > { %v1715_v54 = vpop.f32.mrf.mxu1 }
 0x189   : > { %v1891_v61 = vadd.f32 %v1890_v60, %v1802_v19  ;;  %v1716_v37 = vadd.f32 %v1715_v54, %v3757_v28  ;;  %v880_v28 = vpack.c.bf16 %v758_v15, %v757_v44  ;;  %v759_v15 = vld [vmem:[#allocation2 + $0x90] sm:$0xff] }
 0x18a   : > { %v1982_v10 = vpop.f32.mrf.mxu0 }
 0x18b   : > { %2030 = vmatmul.bf16.gmra.mxu1 %v864_v56  ;;  %2119 = vmatmul.bf16.gmra.mxu2 %v871_v41  ;;  %v3946_v32 = vadd.f32 %v1979_v33, %v1891_v61  ;;  %v821_v33 = vld [vmem:[#allocation2 + $0x7a] sm:$0xff]  ;;  %v881_v41 = vpack.c.bf16 %v790_v8, %v789_v59 }
 0x18c   : > { %2208 = vmatmul.bf16.gmra.mxu3 %v872_v31  ;;  %v882_v54 = vpack.c.bf16 %v822_v45, %v821_v33  ;;  %v760_v59 = vld [vmem:[#allocation2 + $0x98] sm:$0xff] }
 0x18d   : > { %2297 = vmatmul.bf16.gmra.mxu0 %v873_v14  ;;  %v792_v8 = vld [vmem:[#allocation2 + $0x99] sm:$0xff] }
 0x18e   : > { %v1804_v13 = vpop.f32.mrf.mxu2  ;;  %v824_v33 = vld [vmem:[#allocation2 + $0x9a] sm:$0xff] }
 0x18f   : > { %v1805_v7 = vadd.f32 %v1804_v13, %v1716_v37  ;;  %v1893_v12 = vpop.f32.mrf.mxu3 }
 0x190   : > { %v1717_v58 = vpop.f32.mrf.mxu1 }
 0x191   : > { %v1894_v6 = vadd.f32 %v1893_v12, %v1805_v7  ;;  %v1718_v56 = vadd.f32 %v1717_v58, %v3773_v63 }
 0x192   : > { %v1984_v49 = vpop.f32.mrf.mxu0 }
 0x193   : > { %v3949_v35 = vadd.f32 %v1982_v10, %v1894_v6 }
 0x196   : > { %v1806_v53 = vpop.f32.mrf.mxu2 }
 0x197   : > { %v1807_v20 = vadd.f32 %v1806_v53, %v1718_v56  ;;  %v1895_v19 = vpop.f32.mrf.mxu3  ;;  %v791_v56 = vld [vmem:[#allocation2 + $0x91] sm:$0xff] }
 0x198   : > { %v1720_v60 = vpop.f32.mrf.mxu1 }
 0x199   : > { %v1896_v31 = vadd.f32 %v1895_v19, %v1807_v20  ;;  %v1721_v63 = vadd.f32 %v1720_v60, %v3781_v27  ;;  %v889_v27 = vpack.c.bf16 %v760_v59, %v759_v15  ;;  %v761_v59 = vld [vmem:[#allocation2 + $0xa8] sm:$0xff] }
 0x19a   : > { %v1987_v61 = vpop.f32.mrf.mxu0 }
 0x19b   : > { %2035 = vmatmul.bf16.gmra.mxu1 %v873_v14  ;;  %2124 = vmatmul.bf16.gmra.mxu2 %v880_v28  ;;  %v3952_v10 = vadd.f32 %v1984_v49, %v1896_v31  ;;  %v823_v49 = vld [vmem:[#allocation2 + $0x92] sm:$0xff]  ;;  %v890_v28 = vpack.c.bf16 %v792_v8, %v791_v56 }
 0x19c   : > { %2213 = vmatmul.bf16.gmra.mxu3 %v881_v41  ;;  %v891_v60 = vpack.c.bf16 %v824_v33, %v823_v49  ;;  %v762_v56 = vld [vmem:[#allocation2 + $0xb0] sm:$0xff] }
 0x19d   : > { %2302 = vmatmul.bf16.gmra.mxu0 %v882_v54  ;;  %v794_v8 = vld [vmem:[#allocation2 + $0xb1] sm:$0xff] }
 0x19e   : > { %v1809_v37 = vpop.f32.mrf.mxu2  ;;  %v826_v49 = vld [vmem:[#allocation2 + $0xb2] sm:$0xff] }
 0x19f   : > { %v1810_v13 = vadd.f32 %v1809_v37, %v1721_v63  ;;  %v1898_v7 = vpop.f32.mrf.mxu3 }
 0x1a0   : > { %v1722_v12 = vpop.f32.mrf.mxu1 }
 0x1a1   : > { %v1899_v58 = vadd.f32 %v1898_v7, %v1810_v13  ;;  %v1723_v14 = vadd.f32 %v1722_v12, %v3791_v40 }
 0x1a2   : > { %v1989_v6 = vpop.f32.mrf.mxu0 }
 0x1a3   : > { %v3955_v44 = vadd.f32 %v1987_v61, %v1899_v58 }
 0x1a6   : > { %v1811_v45 = vpop.f32.mrf.mxu2 }
 0x1a7   : > { %v1812_v53 = vadd.f32 %v1811_v45, %v1723_v14  ;;  %v1900_v20 = vpop.f32.mrf.mxu3  ;;  %v793_v14 = vld [vmem:[#allocation2 + $0xa9] sm:$0xff] }
 0x1a8   : > { %v1725_v19 = vpop.f32.mrf.mxu1 }
 0x1a9   : > { %v1901_v41 = vadd.f32 %v1900_v20, %v1812_v53  ;;  %v1726_v40 = vadd.f32 %v1725_v19, %v3705_v1  ;;  %v898_v1 = vpack.c.bf16 %v762_v56, %v761_v59  ;;  %v763_v56 = vld [vmem:[#allocation2 + $0xc0] sm:$0xff] }
 0x1aa   : > { %v1992_v31 = vpop.f32.mrf.mxu0 }
 0x1ab   : > { %2040 = vmatmul.bf16.gmra.mxu1 %v882_v54  ;;  %2129 = vmatmul.bf16.gmra.mxu2 %v889_v27  ;;  %v3958_v61 = vadd.f32 %v1989_v6, %v1901_v41  ;;  %v825_v6 = vld [vmem:[#allocation2 + $0xaa] sm:$0xff]  ;;  %v899_v27 = vpack.c.bf16 %v794_v8, %v793_v14 }
 0x1ac   : > { %2218 = vmatmul.bf16.gmra.mxu3 %v890_v28  ;;  %v900_v19 = vpack.c.bf16 %v826_v49, %v825_v6  ;;  %v764_v14 = vld [vmem:[#allocation2 + $0xc8] sm:$0xff] }
 0x1ad   : > { %2307 = vmatmul.bf16.gmra.mxu0 %v891_v60  ;;  %v796_v8 = vld [vmem:[#allocation2 + $0xc9] sm:$0xff] }
 0x1ae   : > { %v1814_v63 = vpop.f32.mrf.mxu2  ;;  %v828_v6 = vld [vmem:[#allocation2 + $0xca] sm:$0xff] }
 0x1af   : > { %v1815_v37 = vadd.f32 %v1814_v63, %v1726_v40  ;;  %v1903_v13 = vpop.f32.mrf.mxu3 }
 0x1b0   : > { %v1727_v7 = vpop.f32.mrf.mxu1 }
 0x1b1   : > { %v1904_v12 = vadd.f32 %v1903_v13, %v1815_v37  ;;  %v1728_v54 = vadd.f32 %v1727_v7, %v3721_v5 }
 0x1b2   : > { %v1994_v58 = vpop.f32.mrf.mxu0 }
 0x1b3   : > { %v3961_v15 = vadd.f32 %v1992_v31, %v1904_v12 }
 0x1b6   : > { %v1816_v33 = vpop.f32.mrf.mxu2 }
 0x1b7   : > { %v1817_v45 = vadd.f32 %v1816_v33, %v1728_v54  ;;  %v1905_v53 = vpop.f32.mrf.mxu3  ;;  %v795_v54 = vld [vmem:[#allocation2 + $0xc1] sm:$0xff] }
 0x1b8   : > { %v1730_v20 = vpop.f32.mrf.mxu1 }
 0x1b9   : > { %v1906_v28 = vadd.f32 %v1905_v53, %v1817_v45  ;;  %v1731_v5 = vadd.f32 %v1730_v20, %v3732_v38  ;;  %v907_v38 = vpack.c.bf16 %v764_v14, %v763_v56  ;;  %v765_v14 = vld [vmem:[#allocation2 + $0xd8] sm:$0xff] }
 0x1ba   : > { %v1997_v41 = vpop.f32.mrf.mxu0 }
 0x1bb   : > { %2045 = vmatmul.bf16.gmra.mxu1 %v891_v60  ;;  %2134 = vmatmul.bf16.gmra.mxu2 %v898_v1  ;;  %v3964_v31 = vadd.f32 %v1994_v58, %v1906_v28  ;;  %v827_v58 = vld [vmem:[#allocation2 + $0xc2] sm:$0xff]  ;;  %v908_v1 = vpack.c.bf16 %v796_v8, %v795_v54 }
 0x1bc   : > { %2223 = vmatmul.bf16.gmra.mxu3 %v899_v27  ;;  %v909_v20 = vpack.c.bf16 %v828_v6, %v827_v58  ;;  %v766_v54 = vld [vmem:[#allocation2 + $0xe0] sm:$0xff] }
 0x1bd   : > { %2312 = vmatmul.bf16.gmra.mxu0 %v900_v19  ;;  %v798_v8 = vld [vmem:[#allocation2 + $0xe1] sm:$0xff] }
 0x1be   : > { %v1819_v40 = vpop.f32.mrf.mxu2 }
 0x1bf   : > { %v1820_v63 = vadd.f32 %v1819_v40, %v1731_v5  ;;  %v1908_v37 = vpop.f32.mrf.mxu3 }
 0x1c0   : > { %v1732_v13 = vpop.f32.mrf.mxu1 }
 0x1c1   : > { %v1909_v7 = vadd.f32 %v1908_v37, %v1820_v63  ;;  %v1733_v60 = vadd.f32 %v1732_v13, %v3742_v52 }
 0x1c2   : > { %v1999_v12 = vpop.f32.mrf.mxu0 }
 0x1c3   : > { %v3967_v59 = vadd.f32 %v1997_v41, %v1909_v7 }
 0x1c6   : > { %v1821_v49 = vpop.f32.mrf.mxu2 }
 0x1c7   : > { %v1822_v33 = vadd.f32 %v1821_v49, %v1733_v60  ;;  %v1910_v45 = vpop.f32.mrf.mxu3  ;;  %v916_v49 = vpack.c.bf16 %v766_v54, %v765_v14  ;;  %v767_v14 = vld [vmem:[#allocation2 + $0xf0] sm:$0xff] }
 0x1c8   : > { %v1735_v53 = vpop.f32.mrf.mxu1  ;;  %v799_v54 = vld [vmem:[#allocation2 + $0xf1] sm:$0xff] }
 0x1c9   : > { %v1911_v27 = vadd.f32 %v1910_v45, %v1822_v33  ;;  %v1736_v52 = vadd.f32 %v1735_v53, %v3759_v30 }
 0x1ca   : > { %v2002_v28 = vpop.f32.mrf.mxu0 }
 0x1cb   : > { %2050 = vmatmul.bf16.gmra.mxu1 %v900_v19  ;;  %2139 = vmatmul.bf16.gmra.mxu2 %v907_v38  ;;  %v3970_v41 = vadd.f32 %v1999_v12, %v1911_v27  ;;  %v797_v19 = vld [vmem:[#allocation2 + $0xd9] sm:$0xff] }
 0x1cc   : > { %2228 = vmatmul.bf16.gmra.mxu3 %v908_v1  ;;  %v917_v30 = vpack.c.bf16 %v798_v8, %v797_v19 }
 0x1cd   : > { %2317 = vmatmul.bf16.gmra.mxu0 %v909_v20 }
 0x1ce   : > { %v1824_v5 = vpop.f32.mrf.mxu2 }
 0x1cf   : > { %v1825_v40 = vadd.f32 %v1824_v5, %v1736_v52  ;;  %v1913_v63 = vpop.f32.mrf.mxu3 }
 0x1d0   : > { %v1737_v37 = vpop.f32.mrf.mxu1 }
 0x1d1   : > { %v1914_v13 = vadd.f32 %v1913_v63, %v1825_v40  ;;  %v1738_v60 = vadd.f32 %v1737_v37, %v3775_v29  ;;  %v734_v63 = vld [vmem:[#allocation2 + $0xda] sm:$0xff] }
 0x1d2   : > { %v2004_v7 = vpop.f32.mrf.mxu0 }
 0x1d3   : > { %v3973_v56 = vadd.f32 %v2002_v28, %v1914_v13  ;;  %v735_v13 = vld [vmem:[#allocation2 + $0xe2] sm:$0xff] }
 0x1d6   : > { %v1826_v12 = vpop.f32.mrf.mxu2 }
 0x1d7   : > { %v1827_v58 = vadd.f32 %v1826_v12, %v1738_v60  ;;  %v1915_v6 = vpop.f32.mrf.mxu3  ;;  %v800_v60 = vld [vmem:[#allocation2 + $0xf9] sm:$0xff] }
 0x1d8   : > { %v1740_v33 = vpop.f32.mrf.mxu1 }
 0x1d9   : > { %v1916_v45 = vadd.f32 %v1915_v6, %v1827_v58  ;;  %v1741_v1 = vadd.f32 %v1740_v33, %v3783_v4  ;;  %v924_v4 = vpack.c.bf16 %v735_v13, %v734_v63  ;;  %v926_v6 = vpack.c.bf16 %v800_v60, %v799_v54  ;;  %v769_v63 = vld [vmem:[#allocation2 + $0x108] sm:$0xff] }
 0x1da   : > { %v2007_v38 = vpop.f32.mrf.mxu0  ;;  %v801_v13 = vld [vmem:[#allocation2 + $0x109] sm:$0xff] }
 0x1db   : > { %2055 = vmatmul.bf16.gmra.mxu1 %v909_v20  ;;  %2144 = vmatmul.bf16.gmra.mxu2 %v916_v49  ;;  %v3976_v53 = vadd.f32 %v2004_v7, %v1916_v45  ;;  %v768_v20 = vld [vmem:[#allocation2 + $0xf8] sm:$0xff] }
 0x1dc   : > { %2233 = vmatmul.bf16.gmra.mxu3 %v917_v30  ;;  %v925_v12 = vpack.c.bf16 %v768_v20, %v767_v14  ;;  %v802_v14 = vld [vmem:[#allocation2 + $0x111] sm:$0xff] }
 0x1dd   : > { %2322 = vmatmul.bf16.gmra.mxu0 %v3813_v22 }
 0x1de   : > { %v1829_v29 = vpop.f32.mrf.mxu2 }
 0x1df   : > { %v1830_v27 = vadd.f32 %v1829_v29, %v1741_v1  ;;  %v1918_v28 = vpop.f32.mrf.mxu3 }
 0x1e0   : > { %v1742_v52 = vpop.f32.mrf.mxu1 }
 0x1e1   : > { %v1919_v5 = vadd.f32 %v1918_v28, %v1830_v27  ;;  %v1743_v7 = vadd.f32 %v1742_v52, %v3793_v24 }
 0x1e2   : > { %v2009_v40 = vpop.f32.mrf.mxu0 }
 0x1e3   : > { %v3980_v37 = vadd.f32 %v2007_v38, %v1919_v5  ;;  %v736_v5 = vld [vmem:[#allocation2 + $0xf2] sm:$0xff] }
 0x1e6   : > { %v1831_v19 = vpop.f32.mrf.mxu2 }
 0x1e7   : > { %v1832_v22 = vadd.f32 %v1831_v19, %v1743_v7  ;;  %v1920_v8 = vpop.f32.mrf.mxu3 }
 0x1e8   : > { %v2021_v58 = vpop.f32.mrf.mxu1 }
 0x1e9   : > { %v1921_v49 = vadd.f32 %v1920_v8, %v1832_v22  ;;  %v2022_v24 = vadd.f32 %v2021_v58, %v3811_v47  ;;  %v935_v8 = vpack.c.bf16 %v802_v14, %v801_v13  ;;  %v803_v14 = vld [vmem:[#allocation2 + $0x121] sm:$0xff] }
 0x1ea   : > { %v2288_v33 = vpop.f32.mrf.mxu0 }
 0x1eb   : > { %2060 = vmatmul.bf16.gmra.mxu1 %v924_v4  ;;  %2149 = vmatmul.bf16.gmra.mxu2 %v925_v12  ;;  %v3983_v30 = vadd.f32 %v2009_v40, %v1921_v49  ;;  %v737_v40 = vld [vmem:[#allocation2 + $0xfa] sm:$0xff] }
 0x1ec   : > { %2238 = vmatmul.bf16.gmra.mxu3 %v926_v6  ;;  %v933_v60 = vpack.c.bf16 %v737_v40, %v736_v5  ;;  %v738_v40 = vld [vmem:[#allocation2 + $0x10a] sm:$0xff] }
 0x1ed   : > { %2327 = vmatmul.bf16.gmra.mxu0 %v3827_v9  ;;  %v770_v9 = vld [vmem:[#allocation2 + $0x110] sm:$0xff] }
 0x1ee   : > { %v2110_v45 = vpop.f32.mrf.mxu2  ;;  %v934_v19 = vpack.c.bf16 %v770_v9, %v769_v63  ;;  %v739_v63 = vld [vmem:[#allocation2 + $0x112] sm:$0xff]  ;;  %v771_v9 = vld [vmem:[#allocation2 + $0x120] sm:$0xff] }
 0x1ef   : > { %v2111_v38 = vadd.f32 %v2110_v45, %v2022_v24  ;;  %v2199_v1 = vpop.f32.mrf.mxu3 }
 0x1f0   : > { %v2023_v29 = vpop.f32.mrf.mxu1 }
 0x1f1   : > { %v2200_v27 = vadd.f32 %v2199_v1, %v2111_v38  ;;  %v2024_v47 = vadd.f32 %v2023_v29, %v3817_v43 }
 0x1f2   : > { %v2290_v28 = vpop.f32.mrf.mxu0 }
 0x1f3   : > { %v2289_v52 = vadd.f32 %v2288_v33, %v2200_v27 }
 0x1f5   : > { %2368 = vst [vmem:[%s3992_s18] sm:$0xff] %v2289_v52  ;;  %v2437_v6 = vmul.f32 %v2289_v52, %v2289_v52 }
 0x1f6   : > { %v2112_v20 = vpop.f32.mrf.mxu2 }
 0x1f7   : > { %v2113_v7 = vadd.f32 %v2112_v20, %v2024_v47  ;;  %v2201_v54 = vpop.f32.mrf.mxu3  ;;  %v772_v47 = vld [vmem:[#allocation2 + $0x128] sm:$0xff] }
 0x1f8   : > { %v2026_v22 = vpop.f32.mrf.mxu1  ;;  %v804_v20 = vld [vmem:[#allocation2 + $0x129] sm:$0xff] }
 0x1f9   : > { %v2202_v4 = vadd.f32 %v2201_v54, %v2113_v7  ;;  %v2027_v33 = vadd.f32 %v2026_v22, %v3825_v23  ;;  %v943_v22 = vpack.c.bf16 %v772_v47, %v771_v9  ;;  %v774_v9 = vld [vmem:[#allocation2 + $0x140] sm:$0xff] }
 0x1fa   : > { %v2293_v12 = vpop.f32.mrf.mxu0 }
 0x1fb   : > { %v2291_v58 = vadd.f32 %v2290_v28, %v2202_v4  ;;  %2065 = vmatmul.bf16.gmra.mxu1 %v933_v60  ;;  %2154 = vmatmul.bf16.gmra.mxu2 %v934_v19  ;;  %v942_v19 = vpack.c.bf16 %v739_v63, %v738_v40  ;;  %v944_v4 = vpack.c.bf16 %v804_v20, %v803_v14  ;;  %v741_v40 = vld [vmem:[#allocation2 + $0x12a] sm:$0xff]  ;;  %v773_v63 = vld [vmem:[#allocation2 + $0x138] sm:$0xff] }
 0x1fc   : > { %2243 = vmatmul.bf16.gmra.mxu3 %v935_v8 }
 0x1fd   : > { %2332 = vmatmul.bf16.gmra.mxu0 %v3853_v16  ;;  %2369 = vst [vmem:[%s3992_s18 + $0x8] sm:$0xff] %v2291_v58  ;;  %v2400_v43 = vadd.f32 %v2291_v58, %v2289_v52  ;;  %v2438_v49 = vmul.f32 %v2291_v58, %v2291_v58 }
 0x1fe   : > { %v2115_v24 = vpop.f32.mrf.mxu2 }
 0x1ff   : > { %v2469_v45 = vadd.f32 %v2438_v49, %v2437_v6  ;;  %v2116_v38 = vadd.f32 %v2115_v24, %v2027_v33  ;;  %v2204_v1 = vpop.f32.mrf.mxu3 }
 0x200   : > { %v2028_v29 = vpop.f32.mrf.mxu1 }
 0x201   : > { %v2205_v27 = vadd.f32 %v2204_v1, %v2116_v38  ;;  %v2029_v52 = vadd.f32 %v2028_v29, %v3831_v26 }
 0x202   : > { %v2295_v5 = vpop.f32.mrf.mxu0 }
 0x203   : > { %v2294_v28 = vadd.f32 %v2293_v12, %v2205_v27 }
 0x205   : > { %2370 = vst [vmem:[%s3992_s18 + $0x10] sm:$0xff] %v2294_v28  ;;  %v2401_v16 = vadd.f32 %v2400_v43, %v2294_v28  ;;  %v2439_v13 = vmul.f32 %v2294_v28, %v2294_v28 }
 0x206   : > { %v2117_v23 = vpop.f32.mrf.mxu2 }
 0x207   : > { %v2470_v7 = vadd.f32 %v2469_v45, %v2439_v13  ;;  %v2118_v54 = vadd.f32 %v2117_v23, %v2029_v52  ;;  %v2206_v60 = vpop.f32.mrf.mxu3  ;;  %v805_v13 = vld [vmem:[#allocation2 + $0x139] sm:$0xff]  ;;  %v806_v52 = vld [vmem:[#allocation2 + $0x141] sm:$0xff] }
 0x208   : > { %v2031_v8 = vpop.f32.mrf.mxu1 }
 0x209   : > { %v2207_v12 = vadd.f32 %v2206_v60, %v2118_v54  ;;  %v2032_v49 = vadd.f32 %v2031_v8, %v3851_v51  ;;  %v952_v54 = vpack.c.bf16 %v774_v9, %v773_v63  ;;  %v807_v63 = vld [vmem:[#allocation2 + $0x151] sm:$0xff]  ;;  %v808_v9 = vld [vmem:[#allocation2 + $0x159] sm:$0xff] }
 0x20a   : > { %v2298_v58 = vpop.f32.mrf.mxu0 }
 0x20b   : > { %v2296_v6 = vadd.f32 %v2295_v5, %v2207_v12  ;;  %2070 = vmatmul.bf16.gmra.mxu1 %v942_v19  ;;  %2159 = vmatmul.bf16.gmra.mxu2 %v943_v22  ;;  %v740_v5 = vld [vmem:[#allocation2 + $0x122] sm:$0xff]  ;;  %v953_v19 = vpack.c.bf16 %v806_v52, %v805_v13 }
 0x20c   : > { %2248 = vmatmul.bf16.gmra.mxu3 %v944_v4 }
 0x20d   : > { %2337 = vmatmul.bf16.gmra.mxu0 %v3864_v18  ;;  %2371 = vst [vmem:[%s3992_s18 + $0x18] sm:$0xff] %v2296_v6  ;;  %v2402_v26 = vadd.f32 %v2401_v16, %v2296_v6  ;;  %v2440_v43 = vmul.f32 %v2296_v6, %v2296_v6 }
 0x20e   : > { %v2120_v33 = vpop.f32.mrf.mxu2 }
 0x20f   : > { %v2471_v24 = vadd.f32 %v2470_v7, %v2440_v43  ;;  %v2121_v45 = vadd.f32 %v2120_v33, %v2032_v49  ;;  %v2209_v38 = vpop.f32.mrf.mxu3  ;;  %v951_v7 = vpack.c.bf16 %v741_v40, %v740_v5 }
 0x210   : > { %v2033_v1 = vpop.f32.mrf.mxu1 }
 0x211   : > { %v2210_v29 = vadd.f32 %v2209_v38, %v2121_v45  ;;  %v2034_v16 = vadd.f32 %v2033_v1, %v3857_v0  ;;  %v742_v1 = vld [vmem:[#allocation2 + $0x13a] sm:$0xff] }
 0x212   : > { %v2300_v27 = vpop.f32.mrf.mxu0 }
 0x213   : > { %v2299_v28 = vadd.f32 %v2298_v58, %v2210_v29  ;;  %v743_v29 = vld [vmem:[#allocation2 + $0x142] sm:$0xff] }
 0x214   : > { %v960_v13 = vpack.c.bf16 %v743_v29, %v742_v1  ;;  %v810_v1 = vld [vmem:[#allocation2 + $0x171] sm:$0xff] }
 0x215   : > { %2372 = vst [vmem:[%s3992_s18 + $0x20] sm:$0xff] %v2299_v28  ;;  %v2403_v18 = vadd.f32 %v2402_v26, %v2299_v28  ;;  %v2441_v47 = vmul.f32 %v2299_v28, %v2299_v28  ;;  %v776_v28 = vld [vmem:[#allocation2 + $0x158] sm:$0xff] }
 0x216   : > { %v2122_v51 = vpop.f32.mrf.mxu2 }
 0x217   : > { %v2472_v14 = vadd.f32 %v2471_v24, %v2441_v47  ;;  %v2123_v20 = vadd.f32 %v2122_v51, %v2034_v16  ;;  %v2211_v23 = vpop.f32.mrf.mxu3 }
 0x218   : > { %v2036_v60 = vpop.f32.mrf.mxu1 }
 0x219   : > { %v2212_v22 = vadd.f32 %v2211_v23, %v2123_v20  ;;  %v2037_v58 = vadd.f32 %v2036_v60, %v3862_v2 }
 0x21a   : > { %v2303_v8 = vpop.f32.mrf.mxu0 }
 0x21b   : > { %v2301_v4 = vadd.f32 %v2300_v27, %v2212_v22  ;;  %2075 = vmatmul.bf16.gmra.mxu1 %v951_v7  ;;  %2164 = vmatmul.bf16.gmra.mxu2 %v952_v54  ;;  %v775_v27 = vld [vmem:[#allocation2 + $0x150] sm:$0xff] }
 0x21c   : > { %2253 = vmatmul.bf16.gmra.mxu3 %v953_v19  ;;  %v961_v52 = vpack.c.bf16 %v776_v28, %v775_v27 }
 0x21d   : > { %2342 = vmatmul.bf16.gmra.mxu0 %v3903_v21  ;;  %2373 = vst [vmem:[%s3992_s18 + $0x28] sm:$0xff] %v2301_v4  ;;  %v2404_v0 = vadd.f32 %v2403_v18, %v2301_v4  ;;  %v2442_v12 = vmul.f32 %v2301_v4, %v2301_v4 }
 0x21e   : > { %v2125_v6 = vpop.f32.mrf.mxu2 }
 0x21f   : > { %v2473_v26 = vadd.f32 %v2472_v14, %v2442_v12  ;;  %v2126_v43 = vadd.f32 %v2125_v6, %v2037_v58  ;;  %v2214_v49 = vpop.f32.mrf.mxu3  ;;  %v962_v14 = vpack.c.bf16 %v808_v9, %v807_v63 }
 0x220   : > { %v2038_v33 = vpop.f32.mrf.mxu1 }
 0x221   : > { %v2215_v24 = vadd.f32 %v2214_v49, %v2126_v43  ;;  %v2039_v40 = vadd.f32 %v2038_v33, %v3878_v57  ;;  %v745_v43 = vld [vmem:[#allocation2 + $0x15a] sm:$0xff]  ;;  %v777_v49 = vld [vmem:[#allocation2 + $0x168] sm:$0xff]  ;;  %v778_v33 = vld [vmem:[#allocation2 + $0x170] sm:$0xff] }
 0x222   : > { %v2305_v45 = vpop.f32.mrf.mxu0 }
 0x223   : > { %v2304_v38 = vadd.f32 %v2303_v8, %v2215_v24 }
 0x225   : > { %2374 = vst [vmem:[%s3992_s18 + $0x30] sm:$0xff] %v2304_v38  ;;  %v2405_v21 = vadd.f32 %v2404_v0, %v2304_v38  ;;  %v2443_v5 = vmul.f32 %v2304_v38, %v2304_v38  ;;  %v809_v38 = vld [vmem:[#allocation2 + $0x169] sm:$0xff] }
 0x226   : > { %v2127_v2 = vpop.f32.mrf.mxu2  ;;  %v971_v63 = vpack.c.bf16 %v810_v1, %v809_v38 }
 0x227   : > { %v2474_v18 = vadd.f32 %v2473_v26, %v2443_v5  ;;  %v2128_v47 = vadd.f32 %v2127_v2, %v2039_v40  ;;  %v2216_v16 = vpop.f32.mrf.mxu3  ;;  %v744_v26 = vld [vmem:[#allocation2 + $0x152] sm:$0xff]  ;;  %v970_v5 = vpack.c.bf16 %v778_v33, %v777_v49 }
 0x228   : > { %v2041_v51 = vpop.f32.mrf.mxu1 }
 0x229   : > { %v2217_v20 = vadd.f32 %v2216_v16, %v2128_v47  ;;  %v2042_v60 = vadd.f32 %v2041_v51, %v3899_v3 }
 0x22a   : > { %v2308_v23 = vpop.f32.mrf.mxu0 }
 0x22b   : > { %v2306_v7 = vadd.f32 %v2305_v45, %v2217_v20  ;;  %2080 = vmatmul.bf16.gmra.mxu1 %v960_v13  ;;  %2169 = vmatmul.bf16.gmra.mxu2 %v961_v52 }
 0x22c   : > { %2258 = vmatmul.bf16.gmra.mxu3 %v962_v14 }
 0x22d   : > { %2347 = vmatmul.bf16.gmra.mxu0 %v3912_v17  ;;  %2375 = vst [vmem:[%s3992_s18 + $0x38] sm:$0xff] %v2306_v7  ;;  %v2406_v57 = vadd.f32 %v2405_v21, %v2306_v7  ;;  %v2444_v54 = vmul.f32 %v2306_v7, %v2306_v7  ;;  %v969_v21 = vpack.c.bf16 %v745_v43, %v744_v26 }
 0x22e   : > { %v2130_v19 = vpop.f32.mrf.mxu2 }
 0x22f   : > { %v2475_v22 = vadd.f32 %v2474_v18, %v2444_v54  ;;  %v2131_v8 = vadd.f32 %v2130_v19, %v2042_v60  ;;  %v2219_v4 = vpop.f32.mrf.mxu3  ;;  %v746_v54 = vld [vmem:[#allocation2 + $0x16a] sm:$0xff]  ;;  %v747_v60 = vld [vmem:[#allocation2 + $0x172] sm:$0xff]  ;;  %v779_v19 = vld [vmem:[#allocation2 + $0x180] sm:$0xff] }
 0x230   : > { %v2043_v0 = vpop.f32.mrf.mxu1  ;;  %v978_v33 = vpack.c.bf16 %v747_v60, %v746_v54  ;;  %v3005_v54 = vld [vmem:[#allocation2] sm:$0xff] }
 0x231   : > { %v2220_v12 = vadd.f32 %v2219_v4, %v2131_v8  ;;  %v2044_v45 = vadd.f32 %v2043_v0, %v3906_v50  ;;  %v811_v8 = vld [vmem:[#allocation2 + $0x181] sm:$0xff]  ;;  %v988_v60 = vpack.c.bf16 %v3005_v54, %v3005_v54 }
 0x232   : > { %v2310_v58 = vpop.f32.mrf.mxu0 }
 0x233   : > { %v2309_v6 = vadd.f32 %v2308_v23, %v2220_v12  ;;  %v812_v12 = vld [vmem:[#allocation2 + $0x189] sm:$0xff] }
 0x235   : > { %2376 = vst [vmem:[%s3992_s18 + $0x40] sm:$0xff] %v2309_v6  ;;  %v2407_v17 = vadd.f32 %v2406_v57, %v2309_v6  ;;  %v2445_v24 = vmul.f32 %v2309_v6, %v2309_v6 }
 0x236   : > { %v2132_v3 = vpop.f32.mrf.mxu2 }
 0x237   : > { %v2476_v29 = vadd.f32 %v2475_v22, %v2445_v24  ;;  %v2133_v27 = vadd.f32 %v2132_v3, %v2044_v45  ;;  %v2221_v28 = vpop.f32.mrf.mxu3  ;;  %v780_v22 = vld [vmem:[#allocation2 + $0x188] sm:$0xff]  ;;  %v980_v45 = vpack.c.bf16 %v812_v12, %v811_v8 }
 0x238   : > { %v2046_v40 = vpop.f32.mrf.mxu1 }
 0x239   : > { %v2222_v9 = vadd.f32 %v2221_v28, %v2133_v27  ;;  %v2047_v16 = vadd.f32 %v2046_v40, %v3909_v62  ;;  %v843_v62 = vld [vmem:[#allocation2 + $0x182] sm:$0xff] }
 0x23a   : > { %v2313_v2 = vpop.f32.mrf.mxu0 }
 0x23b   : > { %v2311_v18 = vadd.f32 %v2310_v58, %v2222_v9  ;;  %2085 = vmatmul.bf16.gmra.mxu1 %v969_v21  ;;  %2174 = vmatmul.bf16.gmra.mxu2 %v970_v5  ;;  %v844_v58 = vld [vmem:[#allocation2 + $0x18a] sm:$0xff] }
 0x23c   : > { %2263 = vmatmul.bf16.gmra.mxu3 %v971_v63  ;;  %v981_v38 = vpack.c.bf16 %v844_v58, %v843_v62 }
 0x23d   : > { %2352 = vmatmul.bf16.gmra.mxu0 %v3921_v42  ;;  %2377 = vst [vmem:[%s3992_s18 + $0x48] sm:$0xff] %v2311_v18  ;;  %v2408_v50 = vadd.f32 %v2407_v17, %v2311_v18  ;;  %v2446_v47 = vmul.f32 %v2311_v18, %v2311_v18  ;;  %v979_v17 = vpack.c.bf16 %v780_v22, %v779_v19 }
 0x23e   : > { %v2135_v13 = vpop.f32.mrf.mxu2 }
 0x23f   : > { %v2477_v52 = vadd.f32 %v2476_v29, %v2446_v47  ;;  %v2136_v51 = vadd.f32 %v2135_v13, %v2047_v16  ;;  %v2224_v14 = vpop.f32.mrf.mxu3  ;;  %v813_v47 = vld [vmem:[#allocation2 + $0x199] sm:$0xff] }
 0x240   : > { %v2048_v20 = vpop.f32.mrf.mxu1 }
 0x241   : > { %v2225_v23 = vadd.f32 %v2224_v14, %v2136_v51  ;;  %v2049_v0 = vadd.f32 %v2048_v20, %v3915_v48  ;;  %v814_v51 = vld [vmem:[#allocation2 + $0x1a1] sm:$0xff] }
 0x242   : > { %v2315_v7 = vpop.f32.mrf.mxu0  ;;  %v845_v14 = vld [vmem:[#allocation2 + $0x19a] sm:$0xff]  ;;  %v846_v20 = vld [vmem:[#allocation2 + $0x1a2] sm:$0xff]  ;;  %v989_v22 = vpack.c.bf16 %v814_v51, %v813_v47 }
 0x243   : > { %v2314_v57 = vadd.f32 %v2313_v2, %v2225_v23  ;;  %v990_v8 = vpack.c.bf16 %v846_v20, %v845_v14 }
 0x245   : > { %2378 = vst [vmem:[%s3992_s18 + $0x50] sm:$0xff] %v2314_v57  ;;  %v2409_v42 = vadd.f32 %v2408_v50, %v2314_v57  ;;  %v2447_v4 = vmul.f32 %v2314_v57, %v2314_v57 }
 0x246   : > { %v2137_v6 = vpop.f32.mrf.mxu2 }
 0x247   : > { %v2478_v26 = vadd.f32 %v2477_v52, %v2447_v4  ;;  %v2138_v43 = vadd.f32 %v2137_v6, %v2049_v0  ;;  %v2226_v49 = vpop.f32.mrf.mxu3 }
 0x248   : > { %v2051_v24 = vpop.f32.mrf.mxu1 }
 0x249   : > { %v2227_v1 = vadd.f32 %v2226_v49, %v2138_v43  ;;  %v2052_v28 = vadd.f32 %v2051_v24, %v3918_v46 }
 0x24a   : > { %v2318_v3 = vpop.f32.mrf.mxu0 }
 0x24b   : > { %v2316_v29 = vadd.f32 %v2315_v7, %v2227_v1  ;;  %2090 = vmatmul.bf16.gmra.mxu1 %v978_v33  ;;  %2179 = vmatmul.bf16.gmra.mxu2 %v979_v17 }
 0x24c   : > { %2268 = vmatmul.bf16.gmra.mxu3 %v980_v45 }
 0x24d   : > { %2357 = vmatmul.bf16.gmra.mxu0 %v981_v38  ;;  %2379 = vst [vmem:[%s3992_s18 + $0x58] sm:$0xff] %v2316_v29  ;;  %v2410_v48 = vadd.f32 %v2409_v42, %v2316_v29  ;;  %v2448_v27 = vmul.f32 %v2316_v29, %v2316_v29 }
 0x24e   : > { %v2140_v21 = vpop.f32.mrf.mxu2 }
 0x24f   : > { %v2479_v5 = vadd.f32 %v2478_v26, %v2448_v27  ;;  %v2141_v40 = vadd.f32 %v2140_v21, %v2052_v28  ;;  %v2229_v63 = vpop.f32.mrf.mxu3 }
 0x250   : > { %v2053_v9 = vpop.f32.mrf.mxu1 }
 0x251   : > { %v2230_v2 = vadd.f32 %v2229_v63, %v2141_v40  ;;  %v2054_v52 = vadd.f32 %v2053_v9, %v3924_v34 }
 0x252   : > { %v2320_v18 = vpop.f32.mrf.mxu0 }
 0x253   : > { %v2319_v50 = vadd.f32 %v2318_v3, %v2230_v2 }
 0x255   : > { %2380 = vst [vmem:[%s3992_s18 + $0x60] sm:$0xff] %v2319_v50  ;;  %v2411_v16 = vadd.f32 %v2410_v48, %v2319_v50  ;;  %v2449_v13 = vmul.f32 %v2319_v50, %v2319_v50 }
 0x256   : > { %v2142_v23 = vpop.f32.mrf.mxu2 }
 0x257   : > { %v2480_v46 = vadd.f32 %v2479_v5, %v2449_v13  ;;  %v2143_v7 = vadd.f32 %v2142_v23, %v2054_v52  ;;  %v2231_v57 = vpop.f32.mrf.mxu3 }
 0x258   : > { %v2056_v19 = vpop.f32.mrf.mxu1 }
 0x259   : > { %v2232_v42 = vadd.f32 %v2231_v57, %v2143_v7  ;;  %v2057_v62 = vadd.f32 %v2056_v19, %v3931_v39 }
 0x25a   : > { %v2323_v4 = vpop.f32.mrf.mxu0 }
 0x25b   : > { %v2321_v0 = vadd.f32 %v2320_v18, %v2232_v42  ;;  %2095 = vmatmul.bf16.gmra.mxu1 %v981_v38  ;;  %2184 = vmatmul.bf16.gmra.mxu2 %v988_v60 }
 0x25c   : > { %2273 = vmatmul.bf16.gmra.mxu3 %v989_v22 }
 0x25d   : > { %2362 = vmatmul.bf16.gmra.mxu0 %v990_v8  ;;  %2381 = vst [vmem:[%s3992_s18 + $0x68] sm:$0xff] %v2321_v0  ;;  %v2412_v34 = vadd.f32 %v2411_v16, %v2321_v0  ;;  %v2450_v12 = vmul.f32 %v2321_v0, %v2321_v0 }
 0x25e   : > { %v2145_v58 = vpop.f32.mrf.mxu2 }
 0x25f   : > { %v2481_v6 = vadd.f32 %v2480_v46, %v2450_v12  ;;  %v2146_v26 = vadd.f32 %v2145_v58, %v2057_v62  ;;  %v2234_v43 = vpop.f32.mrf.mxu3 }
 0x260   : > { %v2058_v49 = vpop.f32.mrf.mxu1 }
 0x261   : > { %v2235_v33 = vadd.f32 %v2234_v43, %v2146_v26  ;;  %v2059_v1 = vadd.f32 %v2058_v49, %v3934_v11 }
 0x262   : > { %v2325_v17 = vpop.f32.mrf.mxu0 }
 0x263   : > { %v2324_v24 = vadd.f32 %v2323_v4, %v2235_v33 }
 0x265   : > { %2382 = vst [vmem:[%s3992_s18 + $0x70] sm:$0xff] %v2324_v24  ;;  %v2413_v45 = vadd.f32 %v2412_v34, %v2324_v24  ;;  %v2451_v38 = vmul.f32 %v2324_v24, %v2324_v24 }
 0x266   : > { %v2147_v3 = vpop.f32.mrf.mxu2 }
 0x267   : > { %v2482_v29 = vadd.f32 %v2481_v6, %v2451_v38  ;;  %v2148_v48 = vadd.f32 %v2147_v3, %v2059_v1  ;;  %v2236_v27 = vpop.f32.mrf.mxu3 }
 0x268   : > { %v2061_v28 = vpop.f32.mrf.mxu1 }
 0x269   : > { %v2237_v39 = vadd.f32 %v2236_v27, %v2148_v48  ;;  %v2062_v9 = vadd.f32 %v2061_v28, %v3937_v36 }
 0x26a   : > { %v2328_v21 = vpop.f32.mrf.mxu0 }
 0x26b   : > { %v2326_v5 = vadd.f32 %v2325_v17, %v2237_v39 }
 0x26d   : > { %2383 = vst [vmem:[%s3992_s18 + $0x78] sm:$0xff] %v2326_v5  ;;  %v2414_v40 = vadd.f32 %v2413_v45, %v2326_v5  ;;  %v2452_v63 = vmul.f32 %v2326_v5, %v2326_v5 }
 0x26e   : > { %v2150_v2 = vpop.f32.mrf.mxu2 }
 0x26f   : > { %v2483_v18 = vadd.f32 %v2482_v29, %v2452_v63  ;;  %v2151_v50 = vadd.f32 %v2150_v2, %v2062_v9  ;;  %v2239_v47 = vpop.f32.mrf.mxu3 }
 0x270   : > { %v2063_v16 = vpop.f32.mrf.mxu1 }
 0x271   : > { %v2240_v11 = vadd.f32 %v2239_v47, %v2151_v50  ;;  %v2064_v20 = vadd.f32 %v2063_v16, %v3940_v25 }
 0x272   : > { %v2330_v13 = vpop.f32.mrf.mxu0 }
 0x273   : > { %v2329_v52 = vadd.f32 %v2328_v21, %v2240_v11 }
 0x275   : > { %2384 = vst [vmem:[%s3992_s18 + $0x80] sm:$0xff] %v2329_v52  ;;  %v2415_v51 = vadd.f32 %v2414_v40, %v2329_v52  ;;  %v2453_v14 = vmul.f32 %v2329_v52, %v2329_v52 }
 0x276   : > { %v2152_v23 = vpop.f32.mrf.mxu2 }
 0x277   : > { %v2484_v46 = vadd.f32 %v2483_v18, %v2453_v14  ;;  %v2153_v7 = vadd.f32 %v2152_v23, %v2064_v20  ;;  %v2241_v57 = vpop.f32.mrf.mxu3 }
 0x278   : > { %v2066_v54 = vpop.f32.mrf.mxu1 }
 0x279   : > { %v2242_v36 = vadd.f32 %v2241_v57, %v2153_v7  ;;  %v2067_v42 = vadd.f32 %v2066_v54, %v3943_v55 }
 0x27a   : > { %v2333_v60 = vpop.f32.mrf.mxu0 }
 0x27b   : > { %v2331_v19 = vadd.f32 %v2330_v13, %v2242_v36 }
 0x27d   : > { %2385 = vst [vmem:[%s3992_s18 + $0x88] sm:$0xff] %v2331_v19  ;;  %v2416_v22 = vadd.f32 %v2415_v51, %v2331_v19  ;;  %v2454_v8 = vmul.f32 %v2331_v19, %v2331_v19 }
 0x27e   : > { %v2155_v4 = vpop.f32.mrf.mxu2 }
 0x27f   : > { %v2485_v0 = vadd.f32 %v2484_v46, %v2454_v8  ;;  %v2156_v34 = vadd.f32 %v2155_v4, %v2067_v42  ;;  %v2244_v12 = vpop.f32.mrf.mxu3 }
 0x280   : > { %v2068_v62 = vpop.f32.mrf.mxu1 }
 0x281   : > { %v2245_v25 = vadd.f32 %v2244_v12, %v2156_v34  ;;  %v2069_v49 = vadd.f32 %v2068_v62, %v3946_v32 }
 0x282   : > { %v2335_v58 = vpop.f32.mrf.mxu0 }
 0x283   : > { %v2334_v6 = vadd.f32 %v2333_v60, %v2245_v25 }
 0x285   : > { %2386 = vst [vmem:[%s3992_s18 + $0x90] sm:$0xff] %v2334_v6  ;;  %v2417_v26 = vadd.f32 %v2416_v22, %v2334_v6  ;;  %v2455_v43 = vmul.f32 %v2334_v6, %v2334_v6 }
 0x286   : > { %v2157_v33 = vpop.f32.mrf.mxu2 }
 0x287   : > { %v2486_v17 = vadd.f32 %v2485_v0, %v2455_v43  ;;  %v2158_v24 = vadd.f32 %v2157_v33, %v2069_v49  ;;  %v2246_v45 = vpop.f32.mrf.mxu3 }
 0x288   : > { %v2071_v38 = vpop.f32.mrf.mxu1 }
 0x289   : > { %v2247_v55 = vadd.f32 %v2246_v45, %v2158_v24  ;;  %v2072_v27 = vadd.f32 %v2071_v38, %v3949_v35 }
 0x28a   : > { %v2338_v1 = vpop.f32.mrf.mxu0 }
 0x28b   : > { %v2336_v3 = vadd.f32 %v2335_v58, %v2247_v55 }
 0x28d   : > { %2387 = vst [vmem:[%s3992_s18 + $0x98] sm:$0xff] %v2336_v3  ;;  %v2418_v29 = vadd.f32 %v2417_v26, %v2336_v3  ;;  %v2456_v48 = vmul.f32 %v2336_v3, %v2336_v3 }
 0x28e   : > { %v2160_v28 = vpop.f32.mrf.mxu2 }
 0x28f   : > { %v2487_v39 = vadd.f32 %v2486_v17, %v2456_v48  ;;  %v2161_v21 = vadd.f32 %v2160_v28, %v2072_v27  ;;  %v2249_v5 = vpop.f32.mrf.mxu3 }
 0x290   : > { %v2073_v40 = vpop.f32.mrf.mxu1 }
 0x291   : > { %v2250_v32 = vadd.f32 %v2249_v5, %v2161_v21  ;;  %v2074_v50 = vadd.f32 %v2073_v40, %v3952_v10 }
 0x292   : > { %v2340_v63 = vpop.f32.mrf.mxu0 }
 0x293   : > { %v2339_v9 = vadd.f32 %v2338_v1, %v2250_v32 }
 0x295   : > { %2388 = vst [vmem:[%s3992_s18 + $0xa0] sm:$0xff] %v2339_v9  ;;  %v2419_v2 = vadd.f32 %v2418_v29, %v2339_v9  ;;  %v2457_v18 = vmul.f32 %v2339_v9, %v2339_v9 }
 0x296   : > { %v2162_v47 = vpop.f32.mrf.mxu2 }
 0x297   : > { %v2488_v16 = vadd.f32 %v2487_v39, %v2457_v18  ;;  %v2163_v11 = vadd.f32 %v2162_v47, %v2074_v50  ;;  %v2251_v13 = vpop.f32.mrf.mxu3 }
 0x298   : > { %v2076_v52 = vpop.f32.mrf.mxu1 }
 0x299   : > { %v2252_v35 = vadd.f32 %v2251_v13, %v2163_v11  ;;  %v2077_v46 = vadd.f32 %v2076_v52, %v3955_v44 }
 0x29a   : > { %v2343_v51 = vpop.f32.mrf.mxu0 }
 0x29b   : > { %v2341_v14 = vadd.f32 %v2340_v63, %v2252_v35 }
 0x29d   : > { %2389 = vst [vmem:[%s3992_s18 + $0xa8] sm:$0xff] %v2341_v14  ;;  %v2420_v20 = vadd.f32 %v2419_v2, %v2341_v14  ;;  %v2458_v23 = vmul.f32 %v2341_v14, %v2341_v14 }
 0x29e   : > { %v2165_v7 = vpop.f32.mrf.mxu2 }
 0x29f   : > { %v2489_v57 = vadd.f32 %v2488_v16, %v2458_v23  ;;  %v2166_v54 = vadd.f32 %v2165_v7, %v2077_v46  ;;  %v2254_v36 = vpop.f32.mrf.mxu3 }
 0x2a0   : > { %v2078_v60 = vpop.f32.mrf.mxu1 }
 0x2a1   : > { %v2255_v10 = vadd.f32 %v2254_v36, %v2166_v54  ;;  %v2079_v4 = vadd.f32 %v2078_v60, %v3958_v61 }
 0x2a2   : > { %v2345_v19 = vpop.f32.mrf.mxu0 }
 0x2a3   : > { %v2344_v22 = vadd.f32 %v2343_v51, %v2255_v10 }
 0x2a5   : > { %2390 = vst [vmem:[%s3992_s18 + $0xb0] sm:$0xff] %v2344_v22  ;;  %v2421_v8 = vadd.f32 %v2420_v20, %v2344_v22  ;;  %v2459_v42 = vmul.f32 %v2344_v22, %v2344_v22 }
 0x2a6   : > { %v2167_v0 = vpop.f32.mrf.mxu2 }
 0x2a7   : > { %v2490_v34 = vadd.f32 %v2489_v57, %v2459_v42  ;;  %v2168_v12 = vadd.f32 %v2167_v0, %v2079_v4  ;;  %v2256_v62 = vpop.f32.mrf.mxu3 }
 0x2a8   : > { %v2081_v25 = vpop.f32.mrf.mxu1 }
 0x2a9   : > { %v2257_v44 = vadd.f32 %v2256_v62, %v2168_v12  ;;  %v2082_v49 = vadd.f32 %v2081_v25, %v3961_v15 }
 0x2aa   : > { %v2348_v58 = vpop.f32.mrf.mxu0 }
 0x2ab   : > { %v2346_v6 = vadd.f32 %v2345_v19, %v2257_v44 }
 0x2ad   : > { %2391 = vst [vmem:[%s3992_s18 + $0xb8] sm:$0xff] %v2346_v6  ;;  %v2422_v26 = vadd.f32 %v2421_v8, %v2346_v6  ;;  %v2460_v43 = vmul.f32 %v2346_v6, %v2346_v6 }
 0x2ae   : > { %v2170_v33 = vpop.f32.mrf.mxu2 }
 0x2af   : > { %v2491_v17 = vadd.f32 %v2490_v34, %v2460_v43  ;;  %v2171_v24 = vadd.f32 %v2170_v33, %v2082_v49  ;;  %v2259_v45 = vpop.f32.mrf.mxu3 }
 0x2b0   : > { %v2083_v38 = vpop.f32.mrf.mxu1 }
 0x2b1   : > { %v2260_v61 = vadd.f32 %v2259_v45, %v2171_v24  ;;  %v2084_v48 = vadd.f32 %v2083_v38, %v3964_v31 }
 0x2b2   : > { %v2350_v55 = vpop.f32.mrf.mxu0 }
 0x2b3   : > { %v2349_v1 = vadd.f32 %v2348_v58, %v2260_v61 }
 0x2b5   : > { %2392 = vst [vmem:[%s3992_s18 + $0xc0] sm:$0xff] %v2349_v1  ;;  %v2423_v3 = vadd.f32 %v2422_v26, %v2349_v1  ;;  %v2461_v29 = vmul.f32 %v2349_v1, %v2349_v1 }
 0x2b6   : > { %v2172_v27 = vpop.f32.mrf.mxu2 }
 0x2b7   : > { %v2492_v28 = vadd.f32 %v2491_v17, %v2461_v29  ;;  %v2173_v39 = vadd.f32 %v2172_v27, %v2084_v48  ;;  %v2261_v21 = vpop.f32.mrf.mxu3 }
 0x2b8   : > { %v2086_v5 = vpop.f32.mrf.mxu1 }
 0x2b9   : > { %v2262_v15 = vadd.f32 %v2261_v21, %v2173_v39  ;;  %v2087_v2 = vadd.f32 %v2086_v5, %v3967_v59 }
 0x2ba   : > { %v2353_v40 = vpop.f32.mrf.mxu0 }
 0x2bb   : > { %v2351_v32 = vadd.f32 %v2350_v55, %v2262_v15 }
 0x2bd   : > { %2393 = vst [vmem:[%s3992_s18 + $0xc8] sm:$0xff] %v2351_v32  ;;  %v2424_v63 = vadd.f32 %v2423_v3, %v2351_v32  ;;  %v2462_v9 = vmul.f32 %v2351_v32, %v2351_v32 }
 0x2be   : > { %v2175_v18 = vpop.f32.mrf.mxu2 }
 0x2bf   : > { %v2493_v50 = vadd.f32 %v2492_v28, %v2462_v9  ;;  %v2176_v47 = vadd.f32 %v2175_v18, %v2087_v2  ;;  %v2264_v16 = vpop.f32.mrf.mxu3 }
 0x2c0   : > { %v2088_v11 = vpop.f32.mrf.mxu1 }
 0x2c1   : > { %v2265_v31 = vadd.f32 %v2264_v16, %v2176_v47  ;;  %v2089_v14 = vadd.f32 %v2088_v11, %v3970_v41 }
 0x2c2   : > { %v2355_v13 = vpop.f32.mrf.mxu0 }
 0x2c3   : > { %v2354_v52 = vadd.f32 %v2353_v40, %v2265_v31 }
 0x2c5   : > { %2394 = vst [vmem:[%s3992_s18 + $0xd0] sm:$0xff] %v2354_v52  ;;  %v2425_v35 = vadd.f32 %v2424_v63, %v2354_v52  ;;  %v2463_v51 = vmul.f32 %v2354_v52, %v2354_v52 }
 0x2c6   : > { %v2177_v20 = vpop.f32.mrf.mxu2 }
 0x2c7   : > { %v2494_v23 = vadd.f32 %v2493_v50, %v2463_v51  ;;  %v2178_v46 = vadd.f32 %v2177_v20, %v2089_v14  ;;  %v2266_v7 = vpop.f32.mrf.mxu3 }
 0x2c8   : > { %v2091_v59 = vpop.f32.mrf.mxu1 }
 0x2c9   : > { %v2267_v57 = vadd.f32 %v2266_v7, %v2178_v46  ;;  %v2092_v19 = vadd.f32 %v2091_v59, %v3973_v56 }
 0x2ca   : > { %v2358_v36 = vpop.f32.mrf.mxu0 }
 0x2cb   : > { %v2356_v54 = vadd.f32 %v2355_v13, %v2267_v57 }
 0x2cd   : > { %2395 = vst [vmem:[%s3992_s18 + $0xd8] sm:$0xff] %v2356_v54  ;;  %v2426_v60 = vadd.f32 %v2425_v35, %v2356_v54  ;;  %v2464_v10 = vmul.f32 %v2356_v54, %v2356_v54 }
 0x2ce   : > { %v2180_v22 = vpop.f32.mrf.mxu2 }
 0x2cf   : > { %v2495_v8 = vadd.f32 %v2494_v23, %v2464_v10  ;;  %v2181_v42 = vadd.f32 %v2180_v22, %v2092_v19  ;;  %v2269_v4 = vpop.f32.mrf.mxu3 }
 0x2d0   : > { %v2093_v41 = vpop.f32.mrf.mxu1 }
 0x2d1   : > { %v2270_v0 = vadd.f32 %v2269_v4, %v2181_v42  ;;  %v2094_v25 = vadd.f32 %v2093_v41, %v3976_v53 }
 0x2d2   : > { %v2360_v44 = vpop.f32.mrf.mxu0 }
 0x2d3   : > { %v2359_v34 = vadd.f32 %v2358_v36, %v2270_v0 }
 0x2d5   : > { %2396 = vst [vmem:[%s3992_s18 + $0xe0] sm:$0xff] %v2359_v34  ;;  %v2427_v12 = vadd.f32 %v2426_v60, %v2359_v34  ;;  %v2465_v62 = vmul.f32 %v2359_v34, %v2359_v34 }
 0x2d6   : > { %v2182_v58 = vpop.f32.mrf.mxu2 }
 0x2d7   : > { %v2496_v6 = vadd.f32 %v2495_v8, %v2465_v62  ;;  %v2183_v26 = vadd.f32 %v2182_v58, %v2094_v25  ;;  %v2271_v43 = vpop.f32.mrf.mxu3 }
 0x2d8   : > { %v2096_v56 = vpop.f32.mrf.mxu1 }
 0x2d9   : > { %v2272_v49 = vadd.f32 %v2271_v43, %v2183_v26  ;;  %v2097_v45 = vadd.f32 %v2096_v56, %v3980_v37 }
 0x2da   : > { %v2363_v53 = vpop.f32.mrf.mxu0 }
 0x2db   : > { %v2361_v33 = vadd.f32 %v2360_v44, %v2272_v49 }
 0x2dd   : > { %2397 = vst [vmem:[%s3992_s18 + $0xe8] sm:$0xff] %v2361_v33  ;;  %v2428_v17 = vadd.f32 %v2427_v12, %v2361_v33  ;;  %v2466_v24 = vmul.f32 %v2361_v33, %v2361_v33 }
 0x2de   : > { %v2185_v38 = vpop.f32.mrf.mxu2 }
 0x2df   : > { %v2497_v61 = vadd.f32 %v2496_v6, %v2466_v24  ;;  %v2186_v55 = vadd.f32 %v2185_v38, %v2097_v45  ;;  %v2274_v1 = vpop.f32.mrf.mxu3 }
 0x2e0   : > { %v2098_v29 = vpop.f32.mrf.mxu1 }
 0x2e1   : > { %v2275_v3 = vadd.f32 %v2274_v1, %v2186_v55  ;;  %v2099_v39 = vadd.f32 %v2098_v29, %v3983_v30 }
 0x2e2   : > { %v2365_v37 = vpop.f32.mrf.mxu0 }
 0x2e3   : > { %v2364_v48 = vadd.f32 %v2363_v53, %v2275_v3 }
 0x2e5   : > { %2398 = vst [vmem:[%s3992_s18 + $0xf0] sm:$0xff] %v2364_v48  ;;  %v2429_v27 = vadd.f32 %v2428_v17, %v2364_v48  ;;  %v2467_v28 = vmul.f32 %v2364_v48, %v2364_v48 }
 0x2e6   : > { %v2187_v21 = vpop.f32.mrf.mxu2 }
 0x2e7   : > { %v2498_v5 = vadd.f32 %v2497_v61, %v2467_v28  ;;  %v2188_v15 = vadd.f32 %v2187_v21, %v2099_v39  ;;  %v2276_v40 = vpop.f32.mrf.mxu3 }
 0x2e9   : > { %v2277_v32 = vadd.f32 %v2276_v40, %v2188_v15 }
 0x2eb   : > { %v2366_v63 = vadd.f32 %v2365_v37, %v2277_v32 }
 0x2ed   : > { %2399 = vst [vmem:[%s3992_s18 + $0xf8] sm:$0xff] %v2366_v63  ;;  %v2430_v9 = vadd.f32 %v2429_v27, %v2366_v63  ;;  %v2468_v2 = vmul.f32 %v2366_v63, %v2366_v63 }
 0x2ef   : > { %v2431_v18 = vrot.slane %v2430_v9, 4  ;;  %v2499_v50 = vadd.f32 %v2498_v5, %v2468_v2 }
 0x2f1   : > { %v2432_v47 = vadd.f32 %v2431_v18, %v2430_v9  ;;  %v2500_v16 = vrot.slane %v2499_v50, 4 }
 0x2f3   : > { %v2433_v11 = vrot.slane %v2432_v47, 2  ;;  %v2501_v31 = vadd.f32 %v2500_v16, %v2499_v50 }
 0x2f5   : > { %v2434_v13 = vadd.f32 %v2433_v11, %v2432_v47  ;;  %v2502_v52 = vrot.slane %v2501_v31, 2 }
 0x2f7   : > { %v2435_v30 = vrot.slane %v2434_v13, 1  ;;  %v2503_v35 = vadd.f32 %v2502_v52, %v2501_v31 }
 0x2f9   : > { %v2504_v51 = vrot.slane %v2503_v35, 1  ;;  %v2436_v14 = vadd.f32 %v2435_v30, %v2434_v13 }
 0x2fb   : > { %v2505_v20 = vadd.f32 %v2504_v51, %v2503_v35 }
 0x2fd   : > { %v2506_v23 = vsel %vm380_vm0, %v2436_v14, %v2505_v20 }
 0x2fe   : > { %2507 = vst [vmem:[%s208_s21] sm:$0x3] %v2506_v23 }
 0x2ff PF: > { %s15_s15 = sadd.s32 1, %s3112_s15  }
 0x300   : > { %p12_p4 = scmp.ge.s32.totalorder %s15_s15, 4  }
 0x302   :  { %14 = sbr.rel (!%p12_p4) target bundleno = 1 (0x1), region = 77 }

</bundles_post_ra>
